<compile_context>
chip_gen: v6e
topology: v6e:2x2x1
jax: 0.10.0
libtpu: 0.0.40
codegen_flags: <defaults>
</compile_context>

<pallas_src>
import functools

import jax
import jax.numpy as jnp
from jax.experimental import pallas as pl
from jax.experimental.pallas import tpu as pltpu

OUT_DIM = 28 * 28  # 784; written directly (6 of 7 output vregs lane-dense)


def _round_up(x, m):
    return ((x + m - 1) // m) * m


def _generator_mlp_kernel(
    x_ref,
    w1_ref, b1_ref,
    w2_ref, b2_ref,
    w3_ref, b3_ref,
    w4_ref, b4_ref,
    w5_ref, b5_ref,
    out_ref,
):
    def dense(h_f32, w_ref, b_ref):
        # bf16 operands, f32 accumulation on the MXU; bias add in f32 on the VPU.
        acc = jnp.dot(h_f32.astype(jnp.bfloat16), w_ref[...],
                      preferred_element_type=jnp.float32)
        return acc + b_ref[...]

    def sigmoid(h):
        # tanh form: single EUP push per element and no overflow path.
        return 0.5 * jnp.tanh(0.5 * h) + 0.5

    h = x_ref[...].astype(jnp.float32)
    h = jnp.maximum(dense(h, w1_ref, b1_ref), 0.0)   # Linear(latent,128) + ReLU
    h = sigmoid(dense(h, w2_ref, b2_ref))            # Linear(128,256)  + Sigmoid
    h = jnp.maximum(dense(h, w3_ref, b3_ref), 0.0)   # Linear(256,512)  + ReLU
    h = jnp.maximum(dense(h, w4_ref, b4_ref), 0.0)   # Linear(512,1024) + ReLU
    h = sigmoid(dense(h, w5_ref, b5_ref))            # Linear(1024,784) + Sigmoid
    out_ref[...] = h.astype(out_ref.dtype)


def prepare_params(params):
    """One-time weight prep -- call ONCE outside the per-step hot path and reuse.

    Casts weights to bf16 (halves weight HBM->VMEM traffic, native MXU rate),
    keeps biases f32, and zero-pads the first layer's input dim up to a multiple
    of 128 lanes so the x block / first matmul's K dim is lane-dense."""
    latent = params[0][0].shape[0]
    latent_pad = _round_up(latent, 128)
    prepped = []
    for idx, (w, b) in enumerate(params):
        if idx == 0 and latent_pad != latent:
            w = jnp.pad(w, ((0, latent_pad - latent), (0, 0)))
        prepped.append((jnp.asarray(w, jnp.bfloat16), jnp.asarray(b, jnp.float32)))
    return tuple(prepped)


@functools.partial(jax.jit, static_argnames=("max_tile_b",))
def generator_zero_forward(x, prepped_params, *, max_tile_b=512):
    """x: (B, latent_dim) float32, prepped_params from prepare_params()
    -> (B, 28, 28) float32."""
    B, latent = x.shape
    latent_pad = prepped_params[0][0].shape[0]

    # Batch tile: divide B as evenly as possible (minimal padding), sublane
    # aligned; force >= 2 grid steps when B allows so both v7x TCs get work.
    n_tiles = max(1, -(-B // max_tile_b))
    if n_tiles == 1 and B >= 256:
        n_tiles = 2
    TB = _round_up(-(-B // n_tiles), 8)
    B_pad = TB * n_tiles

    x_pad = x
    if B_pad != B or latent_pad != latent:
        x_pad = jnp.pad(x, ((0, B_pad - B), (0, latent_pad - latent)))

    flat_args = [x_pad]
    in_specs = [pl.BlockSpec((TB, latent_pad), lambda i: (i, 0))]
    for (w, b) in prepped_params:
        flat_args += [w, b]
        # Constant index_map -> resident in VMEM across all grid steps;
        # single-buffered since the block never changes.
        in_specs += [
            pl.BlockSpec(w.shape, lambda i: (0, 0), pipeline_mode=pl.Buffered(1)),
            pl.BlockSpec(b.shape, lambda i: (0, 0), pipeline_mode=pl.Buffered(1)),
        ]

    # Advisory cost estimate for the XLA scheduler.
    layer_dims = [w.shape for (w, _) in prepped_params]
    flops = 2 * B_pad * sum(k * n for k, n in layer_dims)
    transcendentals = B_pad * (256 + OUT_DIM)  # one tanh per sigmoid element
    bytes_accessed = (
        x_pad.size * 4
        + sum(w.size * 2 + b.size * 4 for (w, b) in prepped_params)
        + B_pad * OUT_DIM * 4
    )

    out = pl.pallas_call(
        _generator_mlp_kernel,
        out_shape=jax.ShapeDtypeStruct((B_pad, OUT_DIM), jnp.float32),
        grid=(n_tiles,),
        in_specs=in_specs,
        out_specs=pl.BlockSpec((TB, OUT_DIM), lambda i: (i, 0)),
        compiler_params=pltpu.CompilerParams(
            dimension_semantics=("parallel",),
        ),
        cost_estimate=pl.CostEstimate(
            flops=flops,
            transcendentals=transcendentals,
            bytes_accessed=bytes_accessed,
        ),
    )(*flat_args)

    if B_pad != B:
        out = out[:B]
    return out.reshape(B, 28, 28)   # contiguous reshape: metadata-only


def init_params(key, latent_dim):
    """PyTorch-style uniform(+/- 1/sqrt(fan_in)) init.
    Weights stored pre-transposed as (in_features, out_features)."""
    dims = [(latent_dim, 128), (128, 256), (256, 512), (512, 1024),
            (1024, OUT_DIM)]
    params = []
    for (fan_in, fan_out) in dims:
        key, kw, kb = jax.random.split(key, 3)
        bound = 1.0 / jnp.sqrt(jnp.float32(fan_in))
        w = jax.random.uniform(kw, (fan_in, fan_out), jnp.float32, -bound, bound)
        b = jax.random.uniform(kb, (1, fan_out), jnp.float32, -bound, bound)
        params.append((w, b))
    return params


def reference_forward(x, params):
    """Pure-JAX reference mirroring the kernel numerics (bf16 operands,
    f32 accumulate, exact sigmoid)."""
    acts = [jax.nn.relu, jax.nn.sigmoid, jax.nn.relu, jax.nn.relu, jax.nn.sigmoid]
    h = x
    for (w, b), act in zip(params, acts):
        h = jnp.dot(h.astype(jnp.bfloat16), w.astype(jnp.bfloat16),
                    preferred_element_type=jnp.float32) + b
        h = act(h)
    return h.reshape(x.shape[0], 28, 28)


if __name__ == "__main__":
    latent_dim = 32
    batch_size = 2

    key = jax.random.PRNGKey(0)
    key, kx = jax.random.split(key)
    x = jax.random.normal(kx, (batch_size, latent_dim), jnp.float32)
    params = init_params(key, latent_dim)

    # Prep once (outside the hot path), reuse for every forward call.
    prepped = prepare_params(params)

    out = generator_zero_forward(x, prepped)
    out = jax.block_until_ready(out)

    ref = reference_forward(x, params)
    assert out.shape == (batch_size, 28, 28)
    assert jnp.allclose(out, ref, atol=5e-3, rtol=5e-3), (
        float(jnp.max(jnp.abs(out - ref))))

    print("KERNEL_OK")
</pallas_src>

<mosaic_0001>
module attributes {stable_mosaic.version = 11 : i64} {
  func.func @_generator_mlp_kernel(%arg0: i32, %arg1: memref<8x128xf32, #tpu.memory_space<vmem>>, %arg2: memref<128x128xbf16, #tpu.memory_space<vmem>>, %arg3: memref<1x128xf32, #tpu.memory_space<vmem>>, %arg4: memref<128x256xbf16, #tpu.memory_space<vmem>>, %arg5: memref<1x256xf32, #tpu.memory_space<vmem>>, %arg6: memref<256x512xbf16, #tpu.memory_space<vmem>>, %arg7: memref<1x512xf32, #tpu.memory_space<vmem>>, %arg8: memref<512x1024xbf16, #tpu.memory_space<vmem>>, %arg9: memref<1x1024xf32, #tpu.memory_space<vmem>>, %arg10: memref<1024x784xbf16, #tpu.memory_space<vmem>>, %arg11: memref<1x784xf32, #tpu.memory_space<vmem>>, %arg12: memref<8x784xf32, #tpu.memory_space<vmem>>) attributes {dimension_semantics = [#tpu.dimension_semantics<parallel>], iteration_bounds = array<i64: 1>, scalar_prefetch = 0 : i64, scratch_operands = 0 : i64, tpu.core_type = #tpu.core_type<tc>, window_params = [{transform_indices = @transform_0, window_bounds = array<i64: 8, 128>}, {pipeline_mode = #tpu.pipeline_mode<synchronous>, transform_indices = @transform_1, window_bounds = array<i64: 128, 128>}, {pipeline_mode = #tpu.pipeline_mode<synchronous>, transform_indices = @transform_2, window_bounds = array<i64: 1, 128>}, {pipeline_mode = #tpu.pipeline_mode<synchronous>, transform_indices = @transform_3, window_bounds = array<i64: 128, 256>}, {pipeline_mode = #tpu.pipeline_mode<synchronous>, transform_indices = @transform_4, window_bounds = array<i64: 1, 256>}, {pipeline_mode = #tpu.pipeline_mode<synchronous>, transform_indices = @transform_5, window_bounds = array<i64: 256, 512>}, {pipeline_mode = #tpu.pipeline_mode<synchronous>, transform_indices = @transform_6, window_bounds = array<i64: 1, 512>}, {pipeline_mode = #tpu.pipeline_mode<synchronous>, transform_indices = @transform_7, window_bounds = array<i64: 512, 1024>}, {pipeline_mode = #tpu.pipeline_mode<synchronous>, transform_indices = @transform_8, window_bounds = array<i64: 1, 1024>}, {pipeline_mode = #tpu.pipeline_mode<synchronous>, transform_indices = @transform_9, window_bounds = array<i64: 1024, 784>}, {pipeline_mode = #tpu.pipeline_mode<synchronous>, transform_indices = @transform_10, window_bounds = array<i64: 1, 784>}, {transform_indices = @transform_11, window_bounds = array<i64: 8, 784>}]} {
    %c0 = arith.constant 0 : index
    %c0_0 = arith.constant 0 : index
    %0 = vector.load %arg1[%c0, %c0_0] : memref<8x128xf32, #tpu.memory_space<vmem>>, vector<8x128xf32>
    %1 = arith.truncf %0 : vector<8x128xf32> to vector<8x128xbf16>
    %c0_1 = arith.constant 0 : index
    %c0_2 = arith.constant 0 : index
    %2 = vector.load %arg2[%c0_1, %c0_2] : memref<128x128xbf16, #tpu.memory_space<vmem>>, vector<128x128xbf16>
    %cst = arith.constant dense<0.000000e+00> : vector<8x128xf32>
    %3 = tpu.matmul %1, %2, %cst {dimension_numbers = #tpu.dot_dimension_numbers<[1], [0], [0], [1], [0, 0, 1, 1], [], []>} : vector<8x128xbf16>, vector<128x128xbf16>, vector<8x128xf32> -> vector<8x128xf32>
    %c0_3 = arith.constant 0 : index
    %c0_4 = arith.constant 0 : index
    %4 = vector.load %arg3[%c0_3, %c0_4] : memref<1x128xf32, #tpu.memory_space<vmem>>, vector<1x128xf32>
    %5 = vector.broadcast %4 : vector<1x128xf32> to vector<8x128xf32>
    %6 = arith.addf %3, %5 : vector<8x128xf32>
    %cst_5 = arith.constant 0.000000e+00 : f32
    %7 = vector.broadcast %cst_5 : f32 to vector<8x128xf32>
    %8 = arith.maximumf %6, %7 : vector<8x128xf32>
    %9 = arith.truncf %8 : vector<8x128xf32> to vector<8x128xbf16>
    %c0_6 = arith.constant 0 : index
    %c0_7 = arith.constant 0 : index
    %10 = vector.load %arg4[%c0_6, %c0_7] : memref<128x256xbf16, #tpu.memory_space<vmem>>, vector<128x256xbf16>
    %cst_8 = arith.constant dense<0.000000e+00> : vector<8x256xf32>
    %11 = tpu.matmul %9, %10, %cst_8 {dimension_numbers = #tpu.dot_dimension_numbers<[1], [0], [0], [1], [0, 0, 1, 1], [], []>} : vector<8x128xbf16>, vector<128x256xbf16>, vector<8x256xf32> -> vector<8x256xf32>
    %c0_9 = arith.constant 0 : index
    %c0_10 = arith.constant 0 : index
    %12 = vector.load %arg5[%c0_9, %c0_10] : memref<1x256xf32, #tpu.memory_space<vmem>>, vector<1x256xf32>
    %13 = vector.broadcast %12 : vector<1x256xf32> to vector<8x256xf32>
    %14 = arith.addf %11, %13 : vector<8x256xf32>
    %cst_11 = arith.constant 5.000000e-01 : f32
    %15 = vector.broadcast %cst_11 : f32 to vector<8x256xf32>
    %16 = arith.mulf %15, %14 : vector<8x256xf32>
    %17 = math.tanh %16 : vector<8x256xf32>
    %cst_12 = arith.constant 5.000000e-01 : f32
    %18 = vector.broadcast %cst_12 : f32 to vector<8x256xf32>
    %19 = arith.mulf %18, %17 : vector<8x256xf32>
    %cst_13 = arith.constant 5.000000e-01 : f32
    %20 = vector.broadcast %cst_13 : f32 to vector<8x256xf32>
    %21 = arith.addf %19, %20 : vector<8x256xf32>
    %22 = arith.truncf %21 : vector<8x256xf32> to vector<8x256xbf16>
    %c0_14 = arith.constant 0 : index
    %c0_15 = arith.constant 0 : index
    %23 = vector.load %arg6[%c0_14, %c0_15] : memref<256x512xbf16, #tpu.memory_space<vmem>>, vector<256x512xbf16>
    %cst_16 = arith.constant dense<0.000000e+00> : vector<8x512xf32>
    %24 = tpu.matmul %22, %23, %cst_16 {dimension_numbers = #tpu.dot_dimension_numbers<[1], [0], [0], [1], [0, 0, 1, 1], [], []>} : vector<8x256xbf16>, vector<256x512xbf16>, vector<8x512xf32> -> vector<8x512xf32>
    %c0_17 = arith.constant 0 : index
    %c0_18 = arith.constant 0 : index
    %25 = vector.load %arg7[%c0_17, %c0_18] : memref<1x512xf32, #tpu.memory_space<vmem>>, vector<1x512xf32>
    %26 = vector.broadcast %25 : vector<1x512xf32> to vector<8x512xf32>
    %27 = arith.addf %24, %26 : vector<8x512xf32>
    %cst_19 = arith.constant 0.000000e+00 : f32
    %28 = vector.broadcast %cst_19 : f32 to vector<8x512xf32>
    %29 = arith.maximumf %27, %28 : vector<8x512xf32>
    %30 = arith.truncf %29 : vector<8x512xf32> to vector<8x512xbf16>
    %c0_20 = arith.constant 0 : index
    %c0_21 = arith.constant 0 : index
    %31 = vector.load %arg8[%c0_20, %c0_21] : memref<512x1024xbf16, #tpu.memory_space<vmem>>, vector<512x1024xbf16>
    %cst_22 = arith.constant dense<0.000000e+00> : vector<8x1024xf32>
    %32 = tpu.matmul %30, %31, %cst_22 {dimension_numbers = #tpu.dot_dimension_numbers<[1], [0], [0], [1], [0, 0, 1, 1], [], []>} : vector<8x512xbf16>, vector<512x1024xbf16>, vector<8x1024xf32> -> vector<8x1024xf32>
    %c0_23 = arith.constant 0 : index
    %c0_24 = arith.constant 0 : index
    %33 = vector.load %arg9[%c0_23, %c0_24] : memref<1x1024xf32, #tpu.memory_space<vmem>>, vector<1x1024xf32>
    %34 = vector.broadcast %33 : vector<1x1024xf32> to vector<8x1024xf32>
    %35 = arith.addf %32, %34 : vector<8x1024xf32>
    %cst_25 = arith.constant 0.000000e+00 : f32
    %36 = vector.broadcast %cst_25 : f32 to vector<8x1024xf32>
    %37 = arith.maximumf %35, %36 : vector<8x1024xf32>
    %38 = arith.truncf %37 : vector<8x1024xf32> to vector<8x1024xbf16>
    %c0_26 = arith.constant 0 : index
    %c0_27 = arith.constant 0 : index
    %39 = vector.load %arg10[%c0_26, %c0_27] : memref<1024x784xbf16, #tpu.memory_space<vmem>>, vector<1024x784xbf16>
    %cst_28 = arith.constant dense<0.000000e+00> : vector<8x784xf32>
    %40 = tpu.matmul %38, %39, %cst_28 {dimension_numbers = #tpu.dot_dimension_numbers<[1], [0], [0], [1], [0, 0, 1, 1], [], []>} : vector<8x1024xbf16>, vector<1024x784xbf16>, vector<8x784xf32> -> vector<8x784xf32>
    %c0_29 = arith.constant 0 : index
    %c0_30 = arith.constant 0 : index
    %41 = vector.load %arg11[%c0_29, %c0_30] : memref<1x784xf32, #tpu.memory_space<vmem>>, vector<1x784xf32>
    %42 = vector.broadcast %41 : vector<1x784xf32> to vector<8x784xf32>
    %43 = arith.addf %40, %42 : vector<8x784xf32>
    %cst_31 = arith.constant 5.000000e-01 : f32
    %44 = vector.broadcast %cst_31 : f32 to vector<8x784xf32>
    %45 = arith.mulf %44, %43 : vector<8x784xf32>
    %46 = math.tanh %45 : vector<8x784xf32>
    %cst_32 = arith.constant 5.000000e-01 : f32
    %47 = vector.broadcast %cst_32 : f32 to vector<8x784xf32>
    %48 = arith.mulf %47, %46 : vector<8x784xf32>
    %cst_33 = arith.constant 5.000000e-01 : f32
    %49 = vector.broadcast %cst_33 : f32 to vector<8x784xf32>
    %50 = arith.addf %48, %49 : vector<8x784xf32>
    %c0_34 = arith.constant 0 : index
    %c0_35 = arith.constant 0 : index
    %51 = vector.load %arg12[%c0_34, %c0_35] : memref<8x784xf32, #tpu.memory_space<vmem>>, vector<8x784xf32>
    tpu.vector_store %arg12[%c0_34, %c0_35], %50 {strides = array<i32>} : memref<8x784xf32, #tpu.memory_space<vmem>>, vector<8x784xf32>,
    return
  }
  func.func @transform_0(%arg0: i32) -> (i32, i32) {
    %c0_i32 = arith.constant 0 : i32
    %c0_i32_0 = arith.constant 0 : i32
    return %arg0, %c0_i32 : i32, i32
  }
  func.func @transform_1(%arg0: i32) -> (i32, i32) {
    %c0_i32 = arith.constant 0 : i32
    %c0_i32_0 = arith.constant 0 : i32
    %c0_i32_1 = arith.constant 0 : i32
    return %c0_i32, %c0_i32_0 : i32, i32
  }
  func.func @transform_2(%arg0: i32) -> (i32, i32) {
    %c0_i32 = arith.constant 0 : i32
    %c0_i32_0 = arith.constant 0 : i32
    %c0_i32_1 = arith.constant 0 : i32
    return %c0_i32, %c0_i32_0 : i32, i32
  }
  func.func @transform_3(%arg0: i32) -> (i32, i32) {
    %c0_i32 = arith.constant 0 : i32
    %c0_i32_0 = arith.constant 0 : i32
    %c0_i32_1 = arith.constant 0 : i32
    return %c0_i32, %c0_i32_0 : i32, i32
  }
  func.func @transform_4(%arg0: i32) -> (i32, i32) {
    %c0_i32 = arith.constant 0 : i32
    %c0_i32_0 = arith.constant 0 : i32
    %c0_i32_1 = arith.constant 0 : i32
    return %c0_i32, %c0_i32_0 : i32, i32
  }
  func.func @transform_5(%arg0: i32) -> (i32, i32) {
    %c0_i32 = arith.constant 0 : i32
    %c0_i32_0 = arith.constant 0 : i32
    %c0_i32_1 = arith.constant 0 : i32
    return %c0_i32, %c0_i32_0 : i32, i32
  }
  func.func @transform_6(%arg0: i32) -> (i32, i32) {
    %c0_i32 = arith.constant 0 : i32
    %c0_i32_0 = arith.constant 0 : i32
    %c0_i32_1 = arith.constant 0 : i32
    return %c0_i32, %c0_i32_0 : i32, i32
  }
  func.func @transform_7(%arg0: i32) -> (i32, i32) {
    %c0_i32 = arith.constant 0 : i32
    %c0_i32_0 = arith.constant 0 : i32
    %c0_i32_1 = arith.constant 0 : i32
    return %c0_i32, %c0_i32_0 : i32, i32
  }
  func.func @transform_8(%arg0: i32) -> (i32, i32) {
    %c0_i32 = arith.constant 0 : i32
    %c0_i32_0 = arith.constant 0 : i32
    %c0_i32_1 = arith.constant 0 : i32
    return %c0_i32, %c0_i32_0 : i32, i32
  }
  func.func @transform_9(%arg0: i32) -> (i32, i32) {
    %c0_i32 = arith.constant 0 : i32
    %c0_i32_0 = arith.constant 0 : i32
    %c0_i32_1 = arith.constant 0 : i32
    return %c0_i32, %c0_i32_0 : i32, i32
  }
  func.func @transform_10(%arg0: i32) -> (i32, i32) {
    %c0_i32 = arith.constant 0 : i32
    %c0_i32_0 = arith.constant 0 : i32
    %c0_i32_1 = arith.constant 0 : i32
    return %c0_i32, %c0_i32_0 : i32, i32
  }
  func.func @transform_11(%arg0: i32) -> (i32, i32) {
    %c0_i32 = arith.constant 0 : i32
    %c0_i32_0 = arith.constant 0 : i32
    return %arg0, %c0_i32 : i32, i32
  }
}

</mosaic_0001>

<bundles_post_ra>
// kernel: generator_zero_forward.1
= control target key start
LH: loop header
LB: loop body
LE: loop exit
PB: predicated region body
PF: predicated region fallthrough
CT: control target
= control target key end

     0   :  { %v7977_v0 = vmov 0.0   ;;  %vm7978_vm0 = vmmov 0   ;;  %v7979_v27 = vmov 0   ;;  %vm6270_vm1 = vcmask 130048   ;;  %s10632_s1 = inlined_call_operand.vmem [shape: bf16[128,128], index: 1, kind: input, shape index: {}]   ;;  %s10633_s3 = inlined_call_operand.vmem [shape: bf16[128,256], index: 3, kind: input, shape index: {}]   ;;  %s10634_s0 = inlined_call_operand.vmem [shape: f32[8,128], index: 0, kind: input, shape index: {}]   ;;  %s10635_s5 = inlined_call_operand.vmem [shape: bf16[256,512], index: 5, kind: input, shape index: {}]   ;;  %s10636_s2 = inlined_call_operand.vmem [shape: f32[1,128], index: 2, kind: input, shape index: {}]   ;;  %s10637_s7 = inlined_call_operand.vmem [shape: bf16[512,1024], index: 7, kind: input, shape index: {}]   ;;  %s10638_s4 = inlined_call_operand.vmem [shape: f32[1,256], index: 4, kind: input, shape index: {}]   ;;  %s10639_s6 = inlined_call_operand.vmem [shape: f32[1,512], index: 6, kind: input, shape index: {}]   ;;  %s10640_s9 = inlined_call_operand.vmem [shape: bf16[1024,784], index: 9, kind: input, shape index: {}]   ;;  %s10641_s8 = inlined_call_operand.vmem [shape: f32[1,1024], index: 8, kind: input, shape index: {}]   ;;  %s10642_s10 = inlined_call_operand.vmem [shape: f32[1,784], index: 10, kind: input, shape index: {}]   ;;  %s10643_s11 = inlined_call_operand.vmem [shape: f32[8,784], index: 11, kind: output, shape index: {}]  }
   0x1   :  { %7166 = vmatprep.subr.bf16.mxu0 %v7977_v0  ;;  %v7189_v1 = vld [vmem:[%s10632_s1 + $0x38] sm:$0xff]   ;;  %7182 = vmatprep.mubr.msk.bf16.mxu0 %vm7978_vm0, %v7977_v0  ;;  %v7190_v2 = vld [vmem:[%s10632_s1 + $0x30] sm:$0xff]   ;;  %v7191_v3 = vld [vmem:[%s10632_s1 + $0x28] sm:$0xff]  }
   0x2   :  { %7167 = vmatpush3.bf16.msra.mxu0 %v7189_v1  ;;  %v7197_v4 = vld [vmem:[%s10633_s3 + $0x74] ss:$8 sps:$4 sm:$0xff]   ;;  %v7199_v5 = vld [vmem:[%s10633_s3 + $0x70] ss:$8 sps:$4 sm:$0xff]   ;;  %v7192_v6 = vld [vmem:[%s10632_s1 + $0x20] sm:$0xff]   ;;  %294 = vmatprep.mubr.bf16.mxu1 %v7979_v27 }
   0x3   :  { %7168 = vmatprep.subr.bf16.mxu0 %v7977_v0  ;;  %v7200_v7 = vld [vmem:[%s10633_s3 + $0x64] ss:$8 sps:$4 sm:$0xff]   ;;  %262 = vmatprep.subr.bf16.mxu1 %v7197_v4  ;;  %v7202_v8 = vld [vmem:[%s10633_s3 + $0x60] ss:$8 sps:$4 sm:$0xff]   ;;  %v7203_v9 = vld [vmem:[%s10633_s3 + $0x54] ss:$8 sps:$4 sm:$0xff]  }
   0x4   :  { %263 = vmatpush1.bf16.msra.mxu1 %v7199_v5  ;;  %v7193_v10 = vld [vmem:[%s10632_s1 + $0x18] sm:$0xff]   ;;  %v7206_v12 = vld [vmem:[%s10633_s3 + $0x44] ss:$8 sps:$4 sm:$0xff]   ;;  %v7194_v13 = vld [vmem:[%s10632_s1 + $0x10] sm:$0xff]  }
   0x5   :  { %264 = vmatprep.subr.bf16.mxu1 %v7200_v7  ;;  %v7205_v11 = vld [vmem:[%s10633_s3 + $0x50] ss:$8 sps:$4 sm:$0xff]   ;;  %v7208_v14 = vld [vmem:[%s10633_s3 + $0x40] ss:$8 sps:$4 sm:$0xff]   ;;  %v7209_v15 = vld [vmem:[%s10633_s3 + $0x34] ss:$8 sps:$4 sm:$0xff]  }
   0x6   :  { %7169 = vmatpush3.bf16.msra.mxu0 %v7190_v2  ;;  %v7195_v16 = vld [vmem:[%s10632_s1 + $0x8] sm:$0xff]   ;;  %v7211_v17 = vld [vmem:[%s10633_s3 + $0x30] ss:$8 sps:$4 sm:$0xff]   ;;  %v7196_v19 = vld [vmem:[%s10632_s1] sm:$0xff]  }
   0x7   :  { %7170 = vmatprep.subr.bf16.mxu0 %v7977_v0  ;;  %v7212_v18 = vld [vmem:[%s10633_s3 + $0x24] ss:$8 sps:$4 sm:$0xff]   ;;  %v7214_v21 = vld [vmem:[%s10633_s3 + $0x20] ss:$8 sps:$4 sm:$0xff]   ;;  %v7215_v23 = vld [vmem:[%s10633_s3 + $0x14] ss:$8 sps:$4 sm:$0xff]  }
   0x8   :  { %265 = vmatpush1.bf16.msra.mxu1 %v7202_v8  ;;  %v39_v20 = vld [vmem:[%s10634_s0] sm:$0xff]  ;;  %v7217_v24 = vld [vmem:[%s10633_s3 + $0x10] ss:$8 sps:$4 sm:$0xff]   ;;  %v7226_v30 = vld [vmem:[%s10635_s5 + $0xec] ss:$16 sps:$4 sm:$0xff]  }
   0x9   :  { %266 = vmatprep.subr.bf16.mxu1 %v7203_v9  ;;  %v40_v22 = vpack.c.bf16 %v39_v20, %v39_v20  ;;  %v7218_v25 = vld [vmem:[%s10633_s3 + $0x4] ss:$8 sps:$4 sm:$0xff]   ;;  %v7220_v26 = vld [vmem:[%s10633_s3] ss:$8 sps:$4 sm:$0xff]  }
   0xa   :  { %7171 = vmatpush3.bf16.msra.mxu0 %v7191_v3  ;;  %v7221_v28 = vld [vmem:[%s10635_s5 + $0xe0] ss:$16 sps:$4 sm:$0xff]   ;;  %v7223_v29 = vld [vmem:[%s10635_s5 + $0xe4] ss:$16 sps:$4 sm:$0xff]   ;;  %v7224_v53 = vld [vmem:[%s10635_s5 + $0xe8] ss:$16 sps:$4 sm:$0xff]  }
   0xb   :  { %7172 = vmatprep.subr.bf16.mxu0 %v7977_v0  ;;  %v7229_v31 = vld [vmem:[%s10635_s5 + $0xc4] ss:$16 sps:$4 sm:$0xff]   ;;  %v7227_v32 = vld [vmem:[%s10635_s5 + $0xc0] ss:$16 sps:$4 sm:$0xff]   ;;  %v7232_v55 = vld [vmem:[%s10635_s5 + $0xcc] ss:$16 sps:$4 sm:$0xff]  }
   0xc   :  { %267 = vmatpush1.bf16.msra.mxu1 %v7205_v11  ;;  %v7235_v33 = vld [vmem:[%s10635_s5 + $0xa4] ss:$16 sps:$4 sm:$0xff]   ;;  %v7233_v34 = vld [vmem:[%s10635_s5 + $0xa0] ss:$16 sps:$4 sm:$0xff]   ;;  %v7230_v57 = vld [vmem:[%s10635_s5 + $0xc8] ss:$16 sps:$4 sm:$0xff]  }
   0xd   :  { %268 = vmatprep.subr.bf16.mxu1 %v7206_v12  ;;  %v7241_v35 = vld [vmem:[%s10635_s5 + $0x84] ss:$16 sps:$4 sm:$0xff]   ;;  %v7239_v36 = vld [vmem:[%s10635_s5 + $0x80] ss:$16 sps:$4 sm:$0xff]   ;;  %v7238_v58 = vld [vmem:[%s10635_s5 + $0xac] ss:$16 sps:$4 sm:$0xff]  }
   0xe   :  { %7173 = vmatpush3.bf16.msra.mxu0 %v7192_v6  ;;  %v7247_v37 = vld [vmem:[%s10635_s5 + $0x64] ss:$16 sps:$4 sm:$0xff]   ;;  %v7245_v38 = vld [vmem:[%s10635_s5 + $0x60] ss:$16 sps:$4 sm:$0xff]   ;;  %v7236_v59 = vld [vmem:[%s10635_s5 + $0xa8] ss:$16 sps:$4 sm:$0xff]  }
   0xf   :  { %7174 = vmatprep.subr.bf16.mxu0 %v7977_v0  ;;  %v7253_v39 = vld [vmem:[%s10635_s5 + $0x44] ss:$16 sps:$4 sm:$0xff]   ;;  %v7251_v40 = vld [vmem:[%s10635_s5 + $0x40] ss:$16 sps:$4 sm:$0xff]   ;;  %v7244_v60 = vld [vmem:[%s10635_s5 + $0x8c] ss:$16 sps:$4 sm:$0xff]  }
  0x10   :  { %269 = vmatpush1.bf16.msra.mxu1 %v7208_v14  ;;  %v7259_v41 = vld [vmem:[%s10635_s5 + $0x24] ss:$16 sps:$4 sm:$0xff]   ;;  %v7257_v42 = vld [vmem:[%s10635_s5 + $0x20] ss:$16 sps:$4 sm:$0xff]   ;;  %v7242_v61 = vld [vmem:[%s10635_s5 + $0x88] ss:$16 sps:$4 sm:$0xff]  }
  0x11   :  { %270 = vmatprep.subr.bf16.mxu1 %v7209_v15  ;;  %v7265_v43 = vld [vmem:[%s10635_s5 + $0x4] ss:$16 sps:$4 sm:$0xff]   ;;  %v7263_v44 = vld [vmem:[%s10635_s5] ss:$16 sps:$4 sm:$0xff]   ;;  %v7250_v62 = vld [vmem:[%s10635_s5 + $0x6c] ss:$16 sps:$4 sm:$0xff]  }
  0x12   :  { %7175 = vmatpush3.bf16.msra.mxu0 %v7193_v10  ;;  %v7271_v45 = vld [vmem:[%s10635_s5 + $0x1e4] ss:$16 sps:$4 sm:$0xff]   ;;  %v7269_v46 = vld [vmem:[%s10635_s5 + $0x1e0] ss:$16 sps:$4 sm:$0xff]   ;;  %v7248_v63 = vld [vmem:[%s10635_s5 + $0x68] ss:$16 sps:$4 sm:$0xff]  }
  0x13   :  { %7176 = vmatprep.subr.bf16.mxu0 %v7977_v0  ;;  %v6276_v47 = vld [vmem:[%s10636_s2] ss:$0 sm:$0xff]  ;;  %v7254_v1 = vld [vmem:[%s10635_s5 + $0x48] ss:$16 sps:$4 sm:$0xff]   ;;  %v7262_v2 = vld [vmem:[%s10635_s5 + $0x2c] ss:$16 sps:$4 sm:$0xff]  }
  0x14   :  { %271 = vmatpush1.bf16.msra.mxu1 %v7211_v17  ;;  %v7260_v3 = vld [vmem:[%s10635_s5 + $0x28] ss:$16 sps:$4 sm:$0xff]   ;;  %v7268_v4 = vld [vmem:[%s10635_s5 + $0xc] ss:$16 sps:$4 sm:$0xff]   ;;  %v7277_v8 = vld [vmem:[%s10635_s5 + $0x1c4] ss:$16 sps:$4 sm:$0xff]  }
  0x15   :  { %272 = vmatprep.subr.bf16.mxu1 %v7212_v18  ;;  %v7266_v5 = vld [vmem:[%s10635_s5 + $0x8] ss:$16 sps:$4 sm:$0xff]   ;;  %v7274_v6 = vld [vmem:[%s10635_s5 + $0x1ec] ss:$16 sps:$4 sm:$0xff]   ;;  %v7275_v10 = vld [vmem:[%s10635_s5 + $0x1c0] ss:$16 sps:$4 sm:$0xff]  }
  0x16   :  { %7177 = vmatpush3.bf16.msra.mxu0 %v7194_v13  ;;  %v7272_v7 = vld [vmem:[%s10635_s5 + $0x1e8] ss:$16 sps:$4 sm:$0xff]   ;;  %v7280_v9 = vld [vmem:[%s10635_s5 + $0x1cc] ss:$16 sps:$4 sm:$0xff]   ;;  %v7283_v12 = vld [vmem:[%s10635_s5 + $0x1a4] ss:$16 sps:$4 sm:$0xff]  }
  0x17   :  { %7178 = vmatprep.subr.bf16.mxu0 %v7977_v0  ;;  %v7278_v11 = vld [vmem:[%s10635_s5 + $0x1c8] ss:$16 sps:$4 sm:$0xff]   ;;  %v7286_v13 = vld [vmem:[%s10635_s5 + $0x1ac] ss:$16 sps:$4 sm:$0xff]   ;;  %v7281_v14 = vld [vmem:[%s10635_s5 + $0x1a0] ss:$16 sps:$4 sm:$0xff]  }
  0x18   :  { %273 = vmatpush1.bf16.msra.mxu1 %v7214_v21  ;;  %v7284_v15 = vld [vmem:[%s10635_s5 + $0x1a8] ss:$16 sps:$4 sm:$0xff]   ;;  %v7292_v17 = vld [vmem:[%s10635_s5 + $0x18c] ss:$16 sps:$4 sm:$0xff]   ;;  %v7287_v18 = vld [vmem:[%s10635_s5 + $0x180] ss:$16 sps:$4 sm:$0xff]  }
  0x19   :  { %274 = vmatprep.subr.bf16.mxu1 %v7215_v23  ;;  %v7295_v20 = vld [vmem:[%s10635_s5 + $0x164] ss:$16 sps:$4 sm:$0xff]   ;;  %v7298_v21 = vld [vmem:[%s10635_s5 + $0x16c] ss:$16 sps:$4 sm:$0xff]   ;;  %v7296_v23 = vld [vmem:[%s10635_s5 + $0x168] ss:$16 sps:$4 sm:$0xff]  }
  0x1a   :  { %7179 = vmatpush3.bf16.msra.mxu0 %v7195_v16  ;;  %v7289_v16 = vld [vmem:[%s10635_s5 + $0x184] ss:$16 sps:$4 sm:$0xff]   ;;  %v7302_v27 = vld [vmem:[%s10635_s5 + $0x148] ss:$16 sps:$4 sm:$0xff]  }
  0x1b   :  { %7180 = vmatprep.subr.bf16.mxu0 %v7977_v0  ;;  %v7256_v0 = vld [vmem:[%s10635_s5 + $0x4c] ss:$16 sps:$4 sm:$0xff]  }
  0x1c   :  { %275 = vmatpush1.bf16.msra.mxu1 %v7217_v24  ;;  %v7301_v24 = vld [vmem:[%s10635_s5 + $0x144] ss:$16 sps:$4 sm:$0xff]  }
  0x1d   :  { %276 = vmatprep.subr.bf16.mxu1 %v7218_v25  ;;  %v7304_v25 = vld [vmem:[%s10635_s5 + $0x14c] ss:$16 sps:$4 sm:$0xff]  }
  0x1e   :  { %7181 = vmatpush3.bf16.msra.mxu0 %v7196_v19  ;;  %v7290_v19 = vld [vmem:[%s10635_s5 + $0x188] ss:$16 sps:$4 sm:$0xff]  }
  0x1f   :  { %719 = vmatprep.subr.bf16.mxu0 %v7223_v29  ;;  %v7310_v29 = vld [vmem:[%s10635_s5 + $0x12c] ss:$16 sps:$4 sm:$0xff]  }
  0x20   :  { %277 = vmatpush1.bf16.msra.mxu1 %v7220_v26  ;;  %v7299_v26 = vld [vmem:[%s10635_s5 + $0x140] ss:$16 sps:$4 sm:$0xff]  }
  0x21   :  { %7183 = vmatmul.mubr.bf16.vlgmr.msra.gmra.mxu0 %v40_v22  ;;  %760 = vmatprep.subr.bf16.mxu1 %v7226_v30  ;;  %v7293_v22 = vld [vmem:[%s10635_s5 + $0x160] ss:$16 sps:$4 sm:$0xff]  }
  0x22   :  { %720 = vmatpush1.bf16.msra.mxu0 %v7221_v28  ;;  %v7307_v28 = vld [vmem:[%s10635_s5 + $0x124] ss:$16 sps:$4 sm:$0xff]   ;;  %v7305_v30 = vld [vmem:[%s10635_s5 + $0x120] ss:$16 sps:$4 sm:$0xff]  }
  0x23   :  { %721 = vmatprep.subr.bf16.mxu0 %v7229_v31  ;;  %v7308_v31 = vld [vmem:[%s10635_s5 + $0x128] ss:$16 sps:$4 sm:$0xff]  }
  0x26   :  { %722 = vmatpush1.bf16.msra.mxu0 %v7227_v32  ;;  %v7313_v32 = vld [vmem:[%s10635_s5 + $0x104] ss:$16 sps:$4 sm:$0xff]  }
  0x27   :  { %723 = vmatprep.subr.bf16.mxu0 %v7235_v33  ;;  %v7316_v33 = vld [vmem:[%s10635_s5 + $0x10c] ss:$16 sps:$4 sm:$0xff]  }
  0x2a   :  { %724 = vmatpush1.bf16.msra.mxu0 %v7233_v34  ;;  %v7311_v34 = vld [vmem:[%s10635_s5 + $0x100] ss:$16 sps:$4 sm:$0xff]  }
  0x2b   :  { %725 = vmatprep.subr.bf16.mxu0 %v7241_v35  ;;  %v7314_v35 = vld [vmem:[%s10635_s5 + $0x108] ss:$16 sps:$4 sm:$0xff]  }
  0x2e   :  { %726 = vmatpush1.bf16.msra.mxu0 %v7239_v36  ;;  %v865_v36 = vld [vmem:[%s10637_s7 + $0x1c0] sm:$0xff] }
  0x2f   :  { %727 = vmatprep.subr.bf16.mxu0 %v7247_v37  ;;  %v869_v37 = vld [vmem:[%s10637_s7 + $0x1e0] sm:$0xff] }
  0x32   :  { %728 = vmatpush1.bf16.msra.mxu0 %v7245_v38  ;;  %v993_v38 = vld [vmem:[%s10637_s7 + $0x5c0] sm:$0xff] }
  0x33   :  { %729 = vmatprep.subr.bf16.mxu0 %v7253_v39  ;;  %v6421_v39 = vcombine.low %v865_v36, %v869_v37 }
  0x36   :  { %730 = vmatpush1.bf16.msra.mxu0 %v7251_v40  ;;  %v6422_v40 = vcombine.high %v865_v36, %v869_v37  ;;  %v957_v36 = vld [vmem:[%s10637_s7 + $0x4a0] sm:$0xff] }
  0x37   :  { %731 = vmatprep.subr.bf16.mxu0 %v7259_v41  ;;  %v997_v41 = vld [vmem:[%s10637_s7 + $0x5e0] sm:$0xff] }
  0x3a   :  { %732 = vmatpush1.bf16.msra.mxu0 %v7257_v42  ;;  %v6549_v42 = vcombine.low %v993_v38, %v997_v41 }
  0x3b   :  { %733 = vmatprep.subr.bf16.mxu0 %v7265_v43  ;;  %v6550_v43 = vcombine.high %v993_v38, %v997_v41  ;;  %v817_v41 = vld [vmem:[%s10637_s7 + $0x40] sm:$0xff] }
  0x3e   :  { %734 = vmatpush1.bf16.msra.mxu0 %v7263_v44  ;;  %v172_v44 = vlaneseq }
  0x3f   :  { %735 = vmatprep.subr.bf16.mxu0 %v7271_v45 }
  0x40   :  { %v8322_v45 = vshrl.u32 %v172_v44, 7  ;;  %v949_v44 = vld [vmem:[%s10637_s7 + $0x460] sm:$0xff] }
  0x42   :  { %736 = vmatpush2.bf16.msra.mxu0 %v7269_v46  ;;  %v8325_v46 = vsub.s32 0, %v8322_v45 }
  0x43   :  { %737 = vmatprep.subr.bf16.mxu0 %v7277_v8 }
  0x46   :  { %738 = vmatpush2.bf16.msra.mxu0 %v7275_v10  ;;  %v853_v10 = vld [vmem:[%s10637_s7 + $0x160] sm:$0xff] }
  0x47   :  { %739 = vmatprep.subr.bf16.mxu0 %v7283_v12  ;;  %v981_v12 = vld [vmem:[%s10637_s7 + $0x560] sm:$0xff] }
  0x4a   :  { %740 = vmatpush2.bf16.msra.mxu0 %v7281_v14 }
  0x4b   :  { %741 = vmatprep.subr.bf16.mxu0 %v7289_v16 }
  0x4e   :  { %742 = vmatpush2.bf16.msra.mxu0 %v7287_v18  ;;  %v845_v18 = vld [vmem:[%s10637_s7 + $0x120] sm:$0xff] }
  0x4f   :  { %743 = vmatprep.subr.bf16.mxu0 %v7295_v20  ;;  %v973_v20 = vld [vmem:[%s10637_s7 + $0x520] sm:$0xff] }
  0x52   :  { %744 = vmatpush2.bf16.msra.mxu0 %v7293_v22 }
  0x53   :  { %745 = vmatprep.subr.bf16.mxu0 %v7301_v24 }
  0x56   :  { %746 = vmatpush2.bf16.msra.mxu0 %v7299_v26  ;;  %v837_v26 = vld [vmem:[%s10637_s7 + $0xe0] sm:$0xff] }
  0x57   :  { %747 = vmatprep.subr.bf16.mxu0 %v7307_v28  ;;  %v965_v28 = vld [vmem:[%s10637_s7 + $0x4e0] sm:$0xff] }
  0x5a   :  { %748 = vmatpush2.bf16.msra.mxu0 %v7305_v30 }
  0x5b   :  { %749 = vmatprep.subr.bf16.mxu0 %v7313_v32 }
  0x5e   :  { %750 = vmatpush2.bf16.msra.mxu0 %v7311_v34  ;;  %v829_v34 = vld [vmem:[%s10637_s7 + $0xa0] sm:$0xff] }
  0x5f   :  { %2387 = vmatprep.subr.bf16.mxu0 %v6422_v40 }
  0xe1   :  { %v146_v48 = vpop.f32.mrf.mxu0 }
  0xe2   :  { %v147_v49 = vadd.f32 %v6276_v47, %v146_v48  ;;  %v170_v47 = vld [vmem:[%s10638_s4] sm:$0x3]  ;;  %v8331_v48 = vsub.s32 1, %v8322_v45 }
  0xe3   :  { %v7184_v50 = vpop.f32.mrf.mxu0 }
  0xe4   :  { %v152_v51 = vmax.f32 %v147_v49, 0.0  ;;  %v175_v49 = vrot.slane %v170_v47, %v8325_v46  ;;  %v179_v50 = vrot.slane %v170_v47, %v8331_v48 }
  0xe5   :  { %v149_v52 = vpop.f32.mrf.mxu0 }
  0xe6   :  { %v153_v54 = vpack.c.bf16 %v152_v51, %v152_v51 }
  0xe7   :  { %v7185_v56 = vpop.f32.mrf.mxu0 }
  0xe8   :  { %295 = vmatmul.mubr.bf16.vlgmr.msra.gmra.mxu1 %v153_v54 }
  0xe9   :  { %761 = vmatpush1.bf16.msra.mxu1 %v7224_v53 }
  0xea   :  { %762 = vmatprep.subr.bf16.mxu1 %v7232_v55 }
  0xed   :  { %763 = vmatpush1.bf16.msra.mxu1 %v7230_v57 }
  0xee   :  { %764 = vmatprep.subr.bf16.mxu1 %v7238_v58 }
  0xf1   :  { %765 = vmatpush1.bf16.msra.mxu1 %v7236_v59 }
  0xf2   :  { %766 = vmatprep.subr.bf16.mxu1 %v7244_v60 }
  0xf5   :  { %767 = vmatpush1.bf16.msra.mxu1 %v7242_v61 }
  0xf6   :  { %768 = vmatprep.subr.bf16.mxu1 %v7250_v62 }
  0xf9   :  { %769 = vmatpush1.bf16.msra.mxu1 %v7248_v63 }
  0xfa   :  { %770 = vmatprep.subr.bf16.mxu1 %v7256_v0  ;;  %v857_v0 = vld [vmem:[%s10637_s7 + $0x180] sm:$0xff] }
  0xfd   :  { %771 = vmatpush1.bf16.msra.mxu1 %v7254_v1 }
  0xfe   :  { %772 = vmatprep.subr.bf16.mxu1 %v7262_v2  ;;  %v861_v2 = vld [vmem:[%s10637_s7 + $0x1a0] sm:$0xff] }
 0x101   :  { %773 = vmatpush1.bf16.msra.mxu1 %v7260_v3  ;;  %v985_v3 = vld [vmem:[%s10637_s7 + $0x580] sm:$0xff] }
 0x102   :  { %774 = vmatprep.subr.bf16.mxu1 %v7268_v4  ;;  %v989_v4 = vld [vmem:[%s10637_s7 + $0x5a0] sm:$0xff] }
 0x103   :  { %v6542_v8 = vcombine.high %v985_v3, %v989_v4  ;;  %v6541_v14 = vcombine.low %v985_v3, %v989_v4  ;;  %v921_v4 = vld [vmem:[%s10637_s7 + $0x380] sm:$0xff] }
 0x105   :  { %775 = vmatpush1.bf16.msra.mxu1 %v7266_v5 }
 0x106   :  { %776 = vmatprep.subr.bf16.mxu1 %v7274_v6 }
 0x109   :  { %777 = vmatpush2.bf16.msra.mxu1 %v7272_v7  ;;  %v6414_v7 = vcombine.high %v857_v0, %v861_v2 }
 0x10a   :  { %778 = vmatprep.subr.bf16.mxu1 %v7280_v9  ;;  %v849_v9 = vld [vmem:[%s10637_s7 + $0x140] sm:$0xff] }
 0x10d   :  { %779 = vmatpush2.bf16.msra.mxu1 %v7278_v11  ;;  %v977_v11 = vld [vmem:[%s10637_s7 + $0x540] sm:$0xff] }
 0x10e   :  { %780 = vmatprep.subr.bf16.mxu1 %v7286_v13  ;;  %v6413_v13 = vcombine.low %v857_v0, %v861_v2  ;;  %v6534_v16 = vcombine.high %v977_v11, %v981_v12  ;;  %v6533_v22 = vcombine.low %v977_v11, %v981_v12  ;;  %v913_v12 = vld [vmem:[%s10637_s7 + $0x340] sm:$0xff] }
 0x111   :  { %781 = vmatpush2.bf16.msra.mxu1 %v7284_v15  ;;  %v6406_v15 = vcombine.high %v849_v9, %v853_v10 }
 0x112   :  { %782 = vmatprep.subr.bf16.mxu1 %v7292_v17  ;;  %v841_v17 = vld [vmem:[%s10637_s7 + $0x100] sm:$0xff] }
 0x115   :  { %783 = vmatpush2.bf16.msra.mxu1 %v7290_v19  ;;  %v969_v19 = vld [vmem:[%s10637_s7 + $0x500] sm:$0xff] }
 0x116   :  { %784 = vmatprep.subr.bf16.mxu1 %v7298_v21  ;;  %v6405_v21 = vcombine.low %v849_v9, %v853_v10  ;;  %v6526_v24 = vcombine.high %v969_v19, %v973_v20  ;;  %v6525_v30 = vcombine.low %v969_v19, %v973_v20  ;;  %v905_v20 = vld [vmem:[%s10637_s7 + $0x300] sm:$0xff] }
 0x119   :  { %785 = vmatpush2.bf16.msra.mxu1 %v7296_v23  ;;  %v6398_v23 = vcombine.high %v841_v17, %v845_v18 }
 0x11a   :  { %786 = vmatprep.subr.bf16.mxu1 %v7304_v25  ;;  %v833_v25 = vld [vmem:[%s10637_s7 + $0xc0] sm:$0xff] }
 0x11b   :  { %v6389_v37 = vcombine.low %v833_v25, %v837_v26 }
 0x11d   :  { %787 = vmatpush2.bf16.msra.mxu1 %v7302_v27  ;;  %v961_v27 = vld [vmem:[%s10637_s7 + $0x4c0] sm:$0xff] }
 0x11e   :  { %788 = vmatprep.subr.bf16.mxu1 %v7310_v29  ;;  %v6397_v29 = vcombine.low %v841_v17, %v845_v18  ;;  %v6518_v32 = vcombine.high %v961_v27, %v965_v28  ;;  %v6517_v38 = vcombine.low %v961_v27, %v965_v28  ;;  %v897_v28 = vld [vmem:[%s10637_s7 + $0x2c0] sm:$0xff] }
 0x121   :  { %789 = vmatpush2.bf16.msra.mxu1 %v7308_v31  ;;  %v6390_v31 = vcombine.high %v833_v25, %v837_v26 }
 0x122   :  { %790 = vmatprep.subr.bf16.mxu1 %v7316_v33  ;;  %v825_v33 = vld [vmem:[%s10637_s7 + $0x80] sm:$0xff] }
 0x123   :  { %v6381_v47 = vcombine.low %v825_v33, %v829_v34 }
 0x125   :  { %791 = vmatpush2.bf16.msra.mxu1 %v7314_v35  ;;  %v953_v35 = vld [vmem:[%s10637_s7 + $0x480] sm:$0xff] }
 0x126   :  { %2428 = vmatprep.subr.bf16.mxu1 %v6550_v43  ;;  %v6510_v40 = vcombine.high %v953_v35, %v957_v36  ;;  %v945_v43 = vld [vmem:[%s10637_s7 + $0x440] sm:$0xff] }
 0x1a8   :  { %v296_v51 = vpop.f32.mrf.mxu1 }
 0x1a9   :  { %v297_v52 = vadd.f32 %v296_v51, %v175_v49  ;;  %v6509_v49 = vcombine.low %v953_v35, %v957_v36  ;;  %v6502_v51 = vcombine.high %v945_v43, %v949_v44  ;;  %v889_v36 = vld [vmem:[%s10637_s7 + $0x280] sm:$0xff] }
 0x1aa   :  { %v298_v53 = vpop.f32.mrf.mxu1 }
 0x1ab   :  { %v303_v54 = vmul.f32 0.5, %v297_v52  ;;  %v299_v55 = vadd.f32 %v298_v53, %v179_v50  ;;  %v809_v52 = vld [vmem:[%s10637_s7] sm:$0xff] }
 0x1ac   :  { %v300_v56 = vpop.f32.mrf.mxu1  ;;  %v813_v53 = vld [vmem:[%s10637_s7 + $0x20] sm:$0xff] }
 0x1ad   :  { %7957 = vtanh.f32 %v303_v54  ;;  %v304_v57 = vmul.f32 0.5, %v299_v55  ;;  %v937_v54 = vld [vmem:[%s10637_s7 + $0x400] sm:$0xff]  ;;  %v6365_v0 = vcombine.low %v809_v52, %v813_v53 }
 0x1ae   :  { %v301_v58 = vpop.f32.mrf.mxu1  ;;  %v941_v55 = vld [vmem:[%s10637_s7 + $0x420] sm:$0xff] }
 0x1af   :  { %7959 = vtanh.f32 %v304_v57  ;;  %v6501_v57 = vcombine.low %v945_v43, %v949_v44  ;;  %v6366_v58 = vcombine.high %v809_v52, %v813_v53  ;;  %v1013_v53 = vld [vmem:[%s10637_s7 + $0x660] sm:$0xff] }
 0x1ba   :  { %v7958_v59 = vpop.eup %7957 }
 0x1bb   :  { %v307_v60 = vmul.f32 0.5, %v7958_v59  ;;  %v6494_v59 = vcombine.high %v937_v54, %v941_v55 }
 0x1bc   :  { %v7960_v61 = vpop.eup %7959 }
 0x1bd   :  { %v308_v62 = vmul.f32 0.5, %v7960_v61  ;;  %v309_v63 = vadd.f32 0.5, %v307_v60  ;;  %v929_v60 = vld [vmem:[%s10637_s7 + $0x3c0] sm:$0xff] }
 0x1be   :  { %v933_v61 = vld [vmem:[%s10637_s7 + $0x3e0] sm:$0xff] }
 0x1bf   :  { %v310_v1 = vadd.f32 0.5, %v308_v62  ;;  %v311_v6 = vpack.c.bf16 %v309_v63, %v309_v63  ;;  %v1057_v62 = vld [vmem:[%s10637_s7 + $0x7c0] sm:$0xff]  ;;  %v6486_v2 = vcombine.high %v929_v60, %v933_v61 }
 0x1c0   :  { %v1061_v63 = vld [vmem:[%s10637_s7 + $0x7e0] sm:$0xff] }
 0x1c1   :  { %v312_v5 = vpack.c.bf16 %v310_v1, %v310_v1  ;;  %v6493_v1 = vcombine.low %v937_v54, %v941_v55  ;;  %v6614_v3 = vcombine.high %v1057_v62, %v1061_v63  ;;  %v6613_v9 = vcombine.low %v1057_v62, %v1061_v63 }
 0x1c3   :  { %751 = vmatprep.mubr.bf16.mxu0 %v312_v5  ;;  %792 = vmatprep.mubr.bf16.mxu1 %v312_v5  ;;  %v925_v5 = vld [vmem:[%s10637_s7 + $0x3a0] sm:$0xff] }
 0x1c4   :  { %752 = vmatmul.mubr.bf16.vlgmr.msra.gmra.mxu0 %v311_v6  ;;  %793 = vmatmul.mubr.bf16.vlgmr.msra.gmra.mxu1 %v311_v6  ;;  %v1049_v6 = vld [vmem:[%s10637_s7 + $0x780] sm:$0xff]  ;;  %v6478_v10 = vcombine.high %v921_v4, %v925_v5 }
 0x1c5   :  { %2388 = vmatpush1.bf16.msra.mxu0 %v6421_v39  ;;  %2429 = vmatpush1.bf16.msra.mxu1 %v6549_v42  ;;  %v6382_v39 = vcombine.high %v825_v33, %v829_v34  ;;  %v821_v42 = vld [vmem:[%s10637_s7 + $0x60] sm:$0xff] }
 0x1c6   :  { %2389 = vmatprep.subr.bf16.mxu0 %v6414_v7  ;;  %2430 = vmatprep.subr.bf16.mxu1 %v6542_v8  ;;  %v6374_v50 = vcombine.high %v817_v41, %v821_v42  ;;  %v6373_v56 = vcombine.low %v817_v41, %v821_v42  ;;  %v1053_v7 = vld [vmem:[%s10637_s7 + $0x7a0] sm:$0xff]  ;;  %v6485_v8 = vcombine.low %v929_v60, %v933_v61 }
 0x1c7   :  { %v6606_v11 = vcombine.high %v1049_v6, %v1053_v7  ;;  %v6605_v17 = vcombine.low %v1049_v6, %v1053_v7  ;;  %v1005_v61 = vld [vmem:[%s10637_s7 + $0x620] sm:$0xff] }
 0x1c9   :  { %2390 = vmatpush1.bf16.msra.mxu0 %v6413_v13  ;;  %2431 = vmatpush1.bf16.msra.mxu1 %v6541_v14  ;;  %v917_v13 = vld [vmem:[%s10637_s7 + $0x360] sm:$0xff] }
 0x1ca   :  { %2391 = vmatprep.subr.bf16.mxu0 %v6406_v15  ;;  %2432 = vmatprep.subr.bf16.mxu1 %v6534_v16  ;;  %v1041_v14 = vld [vmem:[%s10637_s7 + $0x740] sm:$0xff]  ;;  %v6477_v16 = vcombine.low %v921_v4, %v925_v5  ;;  %v6470_v18 = vcombine.high %v913_v12, %v917_v13  ;;  %v998_v5 = vld [vmem:[%s10637_s7 + $0x5e8] sm:$0xff] }
 0x1cb   :  { %v1045_v15 = vld [vmem:[%s10637_s7 + $0x760] sm:$0xff] }
 0x1cc   :  { %v6598_v19 = vcombine.high %v1041_v14, %v1045_v15  ;;  %v6597_v25 = vcombine.low %v1041_v14, %v1045_v15 }
 0x1cd   :  { %2392 = vmatpush1.bf16.msra.mxu0 %v6405_v21  ;;  %2433 = vmatpush1.bf16.msra.mxu1 %v6533_v22  ;;  %v909_v21 = vld [vmem:[%s10637_s7 + $0x320] sm:$0xff] }
 0x1ce   :  { %2393 = vmatprep.subr.bf16.mxu0 %v6398_v23  ;;  %2434 = vmatprep.subr.bf16.mxu1 %v6526_v24  ;;  %v1033_v22 = vld [vmem:[%s10637_s7 + $0x700] sm:$0xff]  ;;  %v6469_v24 = vcombine.low %v913_v12, %v917_v13  ;;  %v6462_v26 = vcombine.high %v905_v20, %v909_v21 }
 0x1cf   :  { %v1037_v23 = vld [vmem:[%s10637_s7 + $0x720] sm:$0xff] }
 0x1d0   :  { %v6590_v27 = vcombine.high %v1033_v22, %v1037_v23  ;;  %v6589_v33 = vcombine.low %v1033_v22, %v1037_v23 }
 0x1d1   :  { %2394 = vmatpush1.bf16.msra.mxu0 %v6397_v29  ;;  %2435 = vmatpush1.bf16.msra.mxu1 %v6525_v30  ;;  %v901_v29 = vld [vmem:[%s10637_s7 + $0x2e0] sm:$0xff] }
 0x1d2   :  { %2395 = vmatprep.subr.bf16.mxu0 %v6390_v31  ;;  %2436 = vmatprep.subr.bf16.mxu1 %v6518_v32  ;;  %v1025_v30 = vld [vmem:[%s10637_s7 + $0x6c0] sm:$0xff]  ;;  %v6461_v32 = vcombine.low %v905_v20, %v909_v21  ;;  %v6454_v34 = vcombine.high %v897_v28, %v901_v29 }
 0x1d3   :  { %v1029_v31 = vld [vmem:[%s10637_s7 + $0x6e0] sm:$0xff] }
 0x1d4   :  { %v6582_v35 = vcombine.high %v1025_v30, %v1029_v31  ;;  %v6581_v41 = vcombine.low %v1025_v30, %v1029_v31  ;;  %v858_v30 = vld [vmem:[%s10637_s7 + $0x188] sm:$0xff] }
 0x1d5   :  { %2396 = vmatpush1.bf16.msra.mxu0 %v6389_v37  ;;  %2437 = vmatpush1.bf16.msra.mxu1 %v6517_v38  ;;  %v893_v37 = vld [vmem:[%s10637_s7 + $0x2a0] sm:$0xff] }
 0x1d6   :  { %2397 = vmatprep.subr.bf16.mxu0 %v6382_v39  ;;  %2438 = vmatprep.subr.bf16.mxu1 %v6510_v40  ;;  %v1017_v38 = vld [vmem:[%s10637_s7 + $0x680] sm:$0xff]  ;;  %v6453_v40 = vcombine.low %v897_v28, %v901_v29  ;;  %v6446_v42 = vcombine.high %v889_v36, %v893_v37  ;;  %v6445_v44 = vcombine.low %v889_v36, %v893_v37 }
 0x1d7   :  { %v1021_v39 = vld [vmem:[%s10637_s7 + $0x6a0] sm:$0xff] }
 0x1d8   :  { %v6574_v43 = vcombine.high %v1017_v38, %v1021_v39 }
 0x1d9   :  { %2398 = vmatpush1.bf16.msra.mxu0 %v6381_v47  ;;  %2439 = vmatpush1.bf16.msra.mxu1 %v6509_v49  ;;  %v6573_v47 = vcombine.low %v1017_v38, %v1021_v39  ;;  %v881_v49 = vld [vmem:[%s10637_s7 + $0x240] sm:$0xff] }
 0x1da   :  { %2399 = vmatprep.subr.bf16.mxu0 %v6374_v50  ;;  %2440 = vmatprep.subr.bf16.mxu1 %v6502_v51  ;;  %v885_v50 = vld [vmem:[%s10637_s7 + $0x260] sm:$0xff] }
 0x1db   :  { %v1009_v51 = vld [vmem:[%s10637_s7 + $0x640] sm:$0xff]  ;;  %v6438_v52 = vcombine.high %v881_v49, %v885_v50  ;;  %v6437_v54 = vcombine.low %v881_v49, %v885_v50 }
 0x1dc   :  { %v6565_v55 = vcombine.low %v1009_v51, %v1013_v53 }
 0x1dd   :  { %2400 = vmatpush1.bf16.msra.mxu0 %v6373_v56  ;;  %2441 = vmatpush1.bf16.msra.mxu1 %v6501_v57  ;;  %v6566_v56 = vcombine.high %v1009_v51, %v1013_v53  ;;  %v873_v57 = vld [vmem:[%s10637_s7 + $0x200] sm:$0xff]  ;;  %v842_v53 = vld [vmem:[%s10637_s7 + $0x108] sm:$0xff] }
 0x1de   :  { %2401 = vmatprep.subr.bf16.mxu0 %v6366_v58  ;;  %2442 = vmatprep.subr.bf16.mxu1 %v6494_v59  ;;  %v877_v58 = vld [vmem:[%s10637_s7 + $0x220] sm:$0xff] }
 0x1df   :  { %v1001_v59 = vld [vmem:[%s10637_s7 + $0x600] sm:$0xff]  ;;  %v6430_v60 = vcombine.high %v873_v57, %v877_v58  ;;  %v6429_v62 = vcombine.low %v873_v57, %v877_v58 }
 0x1e0   :  { %v6557_v63 = vcombine.low %v1001_v59, %v1005_v61 }
 0x1e1   :  { %2402 = vmatpush1.bf16.msra.mxu0 %v6365_v0  ;;  %2443 = vmatpush1.bf16.msra.mxu1 %v6493_v1  ;;  %v6558_v0 = vcombine.high %v1001_v59, %v1005_v61  ;;  %v866_v1 = vld [vmem:[%s10637_s7 + $0x1c8] sm:$0xff] }
 0x1e2   :  { %2403 = vmatprep.subr.bf16.mxu0 %v6486_v2  ;;  %2444 = vmatprep.subr.bf16.mxu1 %v6614_v3  ;;  %v870_v2 = vld [vmem:[%s10637_s7 + $0x1e8] sm:$0xff] }
 0x1e3   :  { %v994_v3 = vld [vmem:[%s10637_s7 + $0x5c8] sm:$0xff]  ;;  %v6424_v4 = vcombine.high %v866_v1, %v870_v2  ;;  %v6423_v6 = vcombine.low %v866_v1, %v870_v2 }
 0x1e4   :  { %v6551_v7 = vcombine.low %v994_v3, %v998_v5  ;;  %v834_v61 = vld [vmem:[%s10637_s7 + $0xc8] sm:$0xff] }
 0x1e5   :  { %2404 = vmatpush2.bf16.msra.mxu0 %v6485_v8  ;;  %2445 = vmatpush2.bf16.msra.mxu1 %v6613_v9  ;;  %v6552_v8 = vcombine.high %v994_v3, %v998_v5  ;;  %v8528_v9 = vsub.s32 2, %v8322_v45  ;;  %v826_v5 = vld [vmem:[%s10637_s7 + $0x88] sm:$0xff] }
 0x1e6   :  { %2405 = vmatprep.subr.bf16.mxu0 %v6478_v10  ;;  %2446 = vmatprep.subr.bf16.mxu1 %v6606_v11  ;;  %v377_v10 = vld [vmem:[%s10639_s6] sm:$0xf]  ;;  %v8534_v11 = vsub.s32 3, %v8322_v45 }
 0x1e7   :  { %v382_v12 = vrot.slane %v377_v10, %v8325_v46  ;;  %v390_v13 = vrot.slane %v377_v10, %v8528_v9  ;;  %v386_v14 = vrot.slane %v377_v10, %v8331_v48 }
 0x1e8   :  { %v394_v15 = vrot.slane %v377_v10, %v8534_v11 }
 0x1e9   :  { %2406 = vmatpush2.bf16.msra.mxu0 %v6477_v16  ;;  %2447 = vmatpush2.bf16.msra.mxu1 %v6605_v17 }
 0x1ea   :  { %2407 = vmatprep.subr.bf16.mxu0 %v6470_v18  ;;  %2448 = vmatprep.subr.bf16.mxu1 %v6598_v19 }
 0x1ed   :  { %2408 = vmatpush2.bf16.msra.mxu0 %v6469_v24  ;;  %2449 = vmatpush2.bf16.msra.mxu1 %v6597_v25 }
 0x1ee   :  { %2409 = vmatprep.subr.bf16.mxu0 %v6462_v26  ;;  %2450 = vmatprep.subr.bf16.mxu1 %v6590_v27 }
 0x1f1   :  { %2410 = vmatpush2.bf16.msra.mxu0 %v6461_v32  ;;  %2451 = vmatpush2.bf16.msra.mxu1 %v6589_v33  ;;  %v862_v33 = vld [vmem:[%s10637_s7 + $0x1a8] sm:$0xff] }
 0x1f2   :  { %2411 = vmatprep.subr.bf16.mxu0 %v6454_v34  ;;  %2452 = vmatprep.subr.bf16.mxu1 %v6582_v35  ;;  %v986_v34 = vld [vmem:[%s10637_s7 + $0x588] sm:$0xff]  ;;  %v6415_v49 = vcombine.low %v858_v30, %v862_v33 }
 0x1f3   :  { %v990_v35 = vld [vmem:[%s10637_s7 + $0x5a8] sm:$0xff] }
 0x1f4   :  { %v6543_v50 = vcombine.low %v986_v34, %v990_v35 }
 0x1f5   :  { %2412 = vmatpush2.bf16.msra.mxu0 %v6453_v40  ;;  %2453 = vmatpush2.bf16.msra.mxu1 %v6581_v41  ;;  %v850_v40 = vld [vmem:[%s10637_s7 + $0x148] sm:$0xff]  ;;  %v6416_v41 = vcombine.high %v858_v30, %v862_v33 }
 0x1f6   :  { %2413 = vmatprep.subr.bf16.mxu0 %v6446_v42  ;;  %2454 = vmatprep.subr.bf16.mxu1 %v6574_v43  ;;  %v6544_v42 = vcombine.high %v986_v34, %v990_v35  ;;  %v854_v43 = vld [vmem:[%s10637_s7 + $0x168] sm:$0xff] }
 0x1f7   :  { %v6408_v51 = vcombine.high %v850_v40, %v854_v43  ;;  %v6407_v57 = vcombine.low %v850_v40, %v854_v43  ;;  %v1058_v33 = vld [vmem:[%s10637_s7 + $0x7c8] sm:$0xff] }
 0x1f8   :  { %v1062_v34 = vld [vmem:[%s10637_s7 + $0x7e8] sm:$0xff] }
 0x1f9   :  { %2414 = vmatpush2.bf16.msra.mxu0 %v6445_v44  ;;  %2455 = vmatpush2.bf16.msra.mxu1 %v6573_v47  ;;  %v978_v44 = vld [vmem:[%s10637_s7 + $0x548] sm:$0xff] }
 0x1fa   :  { %2415 = vmatprep.subr.bf16.mxu0 %v6438_v52  ;;  %2456 = vmatprep.subr.bf16.mxu1 %v6566_v56  ;;  %v982_v47 = vld [vmem:[%s10637_s7 + $0x568] sm:$0xff] }
 0x1fb   :  { %v6536_v52 = vcombine.high %v978_v44, %v982_v47  ;;  %v974_v56 = vld [vmem:[%s10637_s7 + $0x528] sm:$0xff]  ;;  %v6535_v58 = vcombine.low %v978_v44, %v982_v47 }
 0x1fc   :  { %v922_v43 = vld [vmem:[%s10637_s7 + $0x388] sm:$0xff] }
 0x1fd   :  { %2416 = vmatpush2.bf16.msra.mxu0 %v6437_v54  ;;  %2457 = vmatpush2.bf16.msra.mxu1 %v6565_v55  ;;  %v846_v54 = vld [vmem:[%s10637_s7 + $0x128] sm:$0xff] }
 0x1fe   :  { %2417 = vmatprep.subr.bf16.mxu0 %v6430_v60  ;;  %2458 = vmatprep.subr.bf16.mxu1 %v6558_v0  ;;  %v970_v55 = vld [vmem:[%s10637_s7 + $0x508] sm:$0xff]  ;;  %v6400_v59 = vcombine.high %v842_v53, %v846_v54  ;;  %v6399_v1 = vcombine.low %v842_v53, %v846_v54 }
 0x1ff   :  { %v6528_v60 = vcombine.high %v970_v55, %v974_v56  ;;  %v966_v0 = vld [vmem:[%s10637_s7 + $0x4e8] sm:$0xff]  ;;  %v6527_v2 = vcombine.low %v970_v55, %v974_v56 }
 0x200   :  { %v926_v44 = vld [vmem:[%s10637_s7 + $0x3a8] sm:$0xff] }
 0x201   :  { %2418 = vmatpush2.bf16.msra.mxu0 %v6429_v62  ;;  %2459 = vmatpush2.bf16.msra.mxu1 %v6557_v63  ;;  %v838_v62 = vld [vmem:[%s10637_s7 + $0xe8] sm:$0xff] }
 0x202   :  { %2469 = vmatprep.subr.bf16.mxu0 %v6424_v4  ;;  %2510 = vmatprep.subr.bf16.mxu1 %v6552_v8  ;;  %v962_v63 = vld [vmem:[%s10637_s7 + $0x4c8] sm:$0xff]  ;;  %v6392_v3 = vcombine.high %v834_v61, %v838_v62  ;;  %v6391_v10 = vcombine.low %v834_v61, %v838_v62 }
 0x203   :  { %v6520_v4 = vcombine.high %v962_v63, %v966_v0  ;;  %v958_v8 = vld [vmem:[%s10637_s7 + $0x4a8] sm:$0xff] }
 0x204   :  { %v1050_v47 = vld [vmem:[%s10637_s7 + $0x788] sm:$0xff] }
 0x205   :  { %v914_v54 = vld [vmem:[%s10637_s7 + $0x348] sm:$0xff] }
 0x206   :  { %v918_v55 = vld [vmem:[%s10637_s7 + $0x368] sm:$0xff] }
 0x207   :  { %v1042_v56 = vld [vmem:[%s10637_s7 + $0x748] sm:$0xff] }
 0x208   :  { %v906_v62 = vld [vmem:[%s10637_s7 + $0x308] sm:$0xff] }
 0x284   :  { %v753_v16 = vpop.f32.mrf.mxu0  ;;  %v794_v17 = vpop.f32.mrf.mxu1 }
 0x285   :  { %v754_v18 = vadd.f32 %v753_v16, %v382_v12  ;;  %v795_v19 = vadd.f32 %v794_v17, %v390_v13  ;;  %v6519_v12 = vcombine.low %v962_v63, %v966_v0  ;;  %v822_v16 = vld [vmem:[%s10637_s7 + $0x68] sm:$0xff] }
 0x286   :  { %v755_v20 = vpop.f32.mrf.mxu0  ;;  %v796_v21 = vpop.f32.mrf.mxu1  ;;  %v946_v17 = vld [vmem:[%s10637_s7 + $0x448] sm:$0xff] }
 0x287   :  { %v756_v22 = vadd.f32 %v755_v20, %v386_v14  ;;  %v797_v23 = vadd.f32 %v796_v21, %v394_v15  ;;  %v801_v24 = vmax.f32 %v754_v18, 0.0  ;;  %v803_v25 = vmax.f32 %v795_v19, 0.0  ;;  %v818_v15 = vld [vmem:[%s10637_s7 + $0x48] sm:$0xff] }
 0x288   :  { %v757_v26 = vpop.f32.mrf.mxu0  ;;  %v798_v27 = vpop.f32.mrf.mxu1  ;;  %v950_v18 = vld [vmem:[%s10637_s7 + $0x468] sm:$0xff]  ;;  %v6376_v21 = vcombine.high %v818_v15, %v822_v16 }
 0x289   :  { %v802_v28 = vmax.f32 %v756_v22, 0.0  ;;  %v804_v29 = vmax.f32 %v797_v23, 0.0  ;;  %v8556_v38 = vpack.c.bf16 %v801_v24, %v801_v24  ;;  %v8558_v39 = vpack.c.bf16 %v803_v25, %v803_v25  ;;  %v810_v23 = vld [vmem:[%s10637_s7 + $0x8] sm:$0xff] }
 0x28a   :  { %v758_v31 = vpop.f32.mrf.mxu0  ;;  %v799_v32 = vpop.f32.mrf.mxu1  ;;  %v6504_v22 = vcombine.high %v946_v17, %v950_v18  ;;  %v814_v24 = vld [vmem:[%s10637_s7 + $0x28] sm:$0xff]  ;;  %v6375_v27 = vcombine.low %v818_v15, %v822_v16 }
 0x28b   :  { %v8552_v36 = vpack.c.bf16 %v802_v28, %v802_v28  ;;  %v8554_v37 = vpack.c.bf16 %v804_v29, %v804_v29  ;;  %v938_v25 = vld [vmem:[%s10637_s7 + $0x408] sm:$0xff]  ;;  %v6503_v28 = vcombine.low %v946_v17, %v950_v18  ;;  %v6368_v29 = vcombine.high %v810_v23, %v814_v24 }
 0x28c   :  { %v942_v26 = vld [vmem:[%s10637_s7 + $0x428] sm:$0xff]  ;;  %v6367_v35 = vcombine.low %v810_v23, %v814_v24 }
 0x28d   :  { %2419 = vmatprep.mubr.bf16.mxu0 %v8552_v36  ;;  %2460 = vmatprep.mubr.bf16.mxu1 %v8554_v37  ;;  %v6496_v30 = vcombine.high %v938_v25, %v942_v26  ;;  %v930_v31 = vld [vmem:[%s10637_s7 + $0x3c8] sm:$0xff]  ;;  %v6495_v40 = vcombine.low %v938_v25, %v942_v26 }
 0x28e   :  { %2420 = vmatmul.mubr.bf16.vlgmr.msra.gmra.mxu0 %v8556_v38  ;;  %2461 = vmatmul.mubr.bf16.vlgmr.msra.gmra.mxu1 %v8558_v39  ;;  %v934_v32 = vld [vmem:[%s10637_s7 + $0x3e8] sm:$0xff] }
 0x28f   :  { %2470 = vmatpush1.bf16.msra.mxu0 %v6423_v6  ;;  %2511 = vmatpush1.bf16.msra.mxu1 %v6551_v7  ;;  %v830_v6 = vld [vmem:[%s10637_s7 + $0xa8] sm:$0xff] }
 0x290   :  { %2501 = vmatprep.mubr.bf16.mxu0 %v8552_v36  ;;  %2542 = vmatprep.mubr.bf16.mxu1 %v8554_v37  ;;  %v954_v7 = vld [vmem:[%s10637_s7 + $0x488] sm:$0xff]  ;;  %v6384_v13 = vcombine.high %v826_v5, %v830_v6  ;;  %v6383_v19 = vcombine.low %v826_v5, %v830_v6 }
 0x291   :  { %2471 = vmatprep.subr.bf16.mxu0 %v6416_v41  ;;  %2512 = vmatprep.subr.bf16.mxu1 %v6544_v42  ;;  %v6512_v14 = vcombine.high %v954_v7, %v958_v8  ;;  %v6511_v20 = vcombine.low %v954_v7, %v958_v8  ;;  %v6488_v41 = vcombine.high %v930_v31, %v934_v32  ;;  %v910_v63 = vld [vmem:[%s10637_s7 + $0x328] sm:$0xff] }
 0x292   :  { %v6616_v42 = vcombine.high %v1058_v33, %v1062_v34  ;;  %v1034_v0 = vld [vmem:[%s10637_s7 + $0x708] sm:$0xff] }
 0x293   :  { %2472 = vmatpush1.bf16.msra.mxu0 %v6415_v49  ;;  %2513 = vmatpush1.bf16.msra.mxu1 %v6543_v50  ;;  %v1054_v49 = vld [vmem:[%s10637_s7 + $0x7a8] sm:$0xff]  ;;  %v6487_v50 = vcombine.low %v930_v31, %v934_v32 }
 0x294   :  { %2473 = vmatprep.subr.bf16.mxu0 %v6408_v51  ;;  %2514 = vmatprep.subr.bf16.mxu1 %v6536_v52  ;;  %v6615_v51 = vcombine.low %v1058_v33, %v1062_v34  ;;  %v6480_v52 = vcombine.high %v922_v43, %v926_v44  ;;  %v6608_v53 = vcombine.high %v1050_v47, %v1054_v49  ;;  %v898_v6 = vld [vmem:[%s10637_s7 + $0x2c8] sm:$0xff] }
 0x295   :  { %v902_v7 = vld [vmem:[%s10637_s7 + $0x2e8] sm:$0xff] }
 0x296   :  { %v1026_v8 = vld [vmem:[%s10637_s7 + $0x6c8] sm:$0xff] }
 0x297   :  { %2474 = vmatpush1.bf16.msra.mxu0 %v6407_v57  ;;  %2515 = vmatpush1.bf16.msra.mxu1 %v6535_v58  ;;  %v1046_v57 = vld [vmem:[%s10637_s7 + $0x768] sm:$0xff]  ;;  %v6479_v58 = vcombine.low %v922_v43, %v926_v44  ;;  %v867_v44 = vld [vmem:[%s10637_s7 + $0x1d0] sm:$0xff] }
 0x298   :  { %2475 = vmatprep.subr.bf16.mxu0 %v6400_v59  ;;  %2516 = vmatprep.subr.bf16.mxu1 %v6528_v60  ;;  %v6607_v59 = vcombine.low %v1050_v47, %v1054_v49  ;;  %v6472_v60 = vcombine.high %v914_v54, %v918_v55  ;;  %v6600_v61 = vcombine.high %v1042_v56, %v1046_v57  ;;  %v890_v16 = vld [vmem:[%s10637_s7 + $0x288] sm:$0xff]  ;;  %v871_v47 = vld [vmem:[%s10637_s7 + $0x1f0] sm:$0xff] }
 0x299   :  { %v894_v17 = vld [vmem:[%s10637_s7 + $0x2a8] sm:$0xff]  ;;  %v995_v49 = vld [vmem:[%s10637_s7 + $0x5d0] sm:$0xff] }
 0x29a   :  { %v1018_v18 = vld [vmem:[%s10637_s7 + $0x688] sm:$0xff] }
 0x29b   :  { %2476 = vmatpush1.bf16.msra.mxu0 %v6399_v1  ;;  %2517 = vmatpush1.bf16.msra.mxu1 %v6527_v2  ;;  %v1038_v1 = vld [vmem:[%s10637_s7 + $0x728] sm:$0xff]  ;;  %v6471_v2 = vcombine.low %v914_v54, %v918_v55  ;;  %v859_v55 = vld [vmem:[%s10637_s7 + $0x190] sm:$0xff] }
 0x29c   :  { %2477 = vmatprep.subr.bf16.mxu0 %v6392_v3  ;;  %2518 = vmatprep.subr.bf16.mxu1 %v6520_v4  ;;  %v6599_v3 = vcombine.low %v1042_v56, %v1046_v57  ;;  %v6464_v4 = vcombine.high %v906_v62, %v910_v63  ;;  %v6592_v5 = vcombine.high %v1034_v0, %v1038_v1  ;;  %v882_v24 = vld [vmem:[%s10637_s7 + $0x248] sm:$0xff]  ;;  %v863_v56 = vld [vmem:[%s10637_s7 + $0x1b0] sm:$0xff] }
 0x29d   :  { %v886_v25 = vld [vmem:[%s10637_s7 + $0x268] sm:$0xff]  ;;  %v987_v57 = vld [vmem:[%s10637_s7 + $0x590] sm:$0xff] }
 0x29e   :  { %v1010_v26 = vld [vmem:[%s10637_s7 + $0x648] sm:$0xff] }
 0x29f   :  { %2478 = vmatpush1.bf16.msra.mxu0 %v6391_v10  ;;  %2519 = vmatpush1.bf16.msra.mxu1 %v6519_v12  ;;  %v1030_v10 = vld [vmem:[%s10637_s7 + $0x6e8] sm:$0xff]  ;;  %v6463_v12 = vcombine.low %v906_v62, %v910_v63  ;;  %v851_v63 = vld [vmem:[%s10637_s7 + $0x150] sm:$0xff] }
 0x2a0   :  { %2479 = vmatprep.subr.bf16.mxu0 %v6384_v13  ;;  %2520 = vmatprep.subr.bf16.mxu1 %v6512_v14  ;;  %v6591_v13 = vcombine.low %v1034_v0, %v1038_v1  ;;  %v6456_v14 = vcombine.high %v898_v6, %v902_v7  ;;  %v6584_v15 = vcombine.high %v1026_v8, %v1030_v10  ;;  %v874_v32 = vld [vmem:[%s10637_s7 + $0x208] sm:$0xff]  ;;  %v855_v0 = vld [vmem:[%s10637_s7 + $0x170] sm:$0xff] }
 0x2a1   :  { %v878_v33 = vld [vmem:[%s10637_s7 + $0x228] sm:$0xff]  ;;  %v979_v1 = vld [vmem:[%s10637_s7 + $0x550] sm:$0xff] }
 0x2a2   :  { %v1002_v34 = vld [vmem:[%s10637_s7 + $0x608] sm:$0xff] }
 0x2a3   :  { %2480 = vmatpush1.bf16.msra.mxu0 %v6383_v19  ;;  %2521 = vmatpush1.bf16.msra.mxu1 %v6511_v20  ;;  %v1022_v19 = vld [vmem:[%s10637_s7 + $0x6a8] sm:$0xff]  ;;  %v6455_v20 = vcombine.low %v898_v6, %v902_v7  ;;  %v6410_v7 = vcombine.high %v851_v63, %v855_v0 }
 0x2a4   :  { %2481 = vmatprep.subr.bf16.mxu0 %v6376_v21  ;;  %2522 = vmatprep.subr.bf16.mxu1 %v6504_v22  ;;  %v6583_v21 = vcombine.low %v1026_v8, %v1030_v10  ;;  %v6448_v22 = vcombine.high %v890_v16, %v894_v17  ;;  %v6576_v23 = vcombine.high %v1018_v18, %v1022_v19  ;;  %v971_v8 = vld [vmem:[%s10637_s7 + $0x510] sm:$0xff] }
 0x2a7   :  { %2482 = vmatpush1.bf16.msra.mxu0 %v6375_v27  ;;  %2523 = vmatpush1.bf16.msra.mxu1 %v6503_v28  ;;  %v1014_v27 = vld [vmem:[%s10637_s7 + $0x668] sm:$0xff]  ;;  %v6447_v28 = vcombine.low %v890_v16, %v894_v17 }
 0x2a8   :  { %2483 = vmatprep.subr.bf16.mxu0 %v6368_v29  ;;  %2524 = vmatprep.subr.bf16.mxu1 %v6496_v30  ;;  %v6575_v29 = vcombine.low %v1018_v18, %v1022_v19  ;;  %v6440_v30 = vcombine.high %v882_v24, %v886_v25  ;;  %v6568_v31 = vcombine.high %v1010_v26, %v1014_v27  ;;  %v963_v18 = vld [vmem:[%s10637_s7 + $0x4d0] sm:$0xff] }
 0x2ab   :  { %2484 = vmatpush1.bf16.msra.mxu0 %v6367_v35  ;;  %2525 = vmatpush1.bf16.msra.mxu1 %v6495_v40  ;;  %v1006_v35 = vld [vmem:[%s10637_s7 + $0x628] sm:$0xff]  ;;  %v6439_v40 = vcombine.low %v882_v24, %v886_v25 }
 0x2ac   :  { %2485 = vmatprep.subr.bf16.mxu0 %v6488_v41  ;;  %2526 = vmatprep.subr.bf16.mxu1 %v6616_v42  ;;  %v6567_v41 = vcombine.low %v1010_v26, %v1014_v27  ;;  %v6432_v42 = vcombine.high %v874_v32, %v878_v33  ;;  %v6560_v43 = vcombine.high %v1002_v34, %v1006_v35  ;;  %v955_v27 = vld [vmem:[%s10637_s7 + $0x490] sm:$0xff] }
 0x2af   :  { %2486 = vmatpush2.bf16.msra.mxu0 %v6487_v50  ;;  %2527 = vmatpush2.bf16.msra.mxu1 %v6615_v51  ;;  %v999_v50 = vld [vmem:[%s10637_s7 + $0x5f0] sm:$0xff]  ;;  %v6431_v51 = vcombine.low %v874_v32, %v878_v33 }
 0x2b0   :  { %2487 = vmatprep.subr.bf16.mxu0 %v6480_v52  ;;  %2528 = vmatprep.subr.bf16.mxu1 %v6608_v53  ;;  %v6559_v52 = vcombine.low %v1002_v34, %v1006_v35  ;;  %v6426_v53 = vcombine.high %v867_v44, %v871_v47  ;;  %v6554_v54 = vcombine.high %v995_v49, %v999_v50  ;;  %v947_v34 = vld [vmem:[%s10637_s7 + $0x450] sm:$0xff] }
 0x2b1   :  { %v951_v35 = vld [vmem:[%s10637_s7 + $0x470] sm:$0xff] }
 0x2b3   :  { %2488 = vmatpush2.bf16.msra.mxu0 %v6479_v58  ;;  %2529 = vmatpush2.bf16.msra.mxu1 %v6607_v59  ;;  %v991_v58 = vld [vmem:[%s10637_s7 + $0x5b0] sm:$0xff]  ;;  %v6425_v59 = vcombine.low %v867_v44, %v871_v47 }
 0x2b4   :  { %2489 = vmatprep.subr.bf16.mxu0 %v6472_v60  ;;  %2530 = vmatprep.subr.bf16.mxu1 %v6600_v61  ;;  %v6553_v60 = vcombine.low %v995_v49, %v999_v50  ;;  %v6418_v61 = vcombine.high %v859_v55, %v863_v56  ;;  %v6546_v62 = vcombine.high %v987_v57, %v991_v58  ;;  %v939_v49 = vld [vmem:[%s10637_s7 + $0x410] sm:$0xff] }
 0x2b5   :  { %v6545_v6 = vcombine.low %v987_v57, %v991_v58  ;;  %v943_v50 = vld [vmem:[%s10637_s7 + $0x430] sm:$0xff] }
 0x2b6   :  { %v1059_v57 = vld [vmem:[%s10637_s7 + $0x7d0] sm:$0xff] }
 0x2b7   :  { %2490 = vmatpush2.bf16.msra.mxu0 %v6471_v2  ;;  %2531 = vmatpush2.bf16.msra.mxu1 %v6599_v3  ;;  %v983_v2 = vld [vmem:[%s10637_s7 + $0x570] sm:$0xff]  ;;  %v6417_v3 = vcombine.low %v859_v55, %v863_v56  ;;  %v6505_v55 = vcombine.low %v947_v34, %v951_v35 }
 0x2b8   :  { %2491 = vmatprep.subr.bf16.mxu0 %v6464_v4  ;;  %2532 = vmatprep.subr.bf16.mxu1 %v6592_v5  ;;  %v843_v4 = vld [vmem:[%s10637_s7 + $0x110] sm:$0xff]  ;;  %v6538_v10 = vcombine.high %v979_v1, %v983_v2  ;;  %v6537_v16 = vcombine.low %v979_v1, %v983_v2 }
 0x2b9   :  { %v847_v5 = vld [vmem:[%s10637_s7 + $0x130] sm:$0xff] }
 0x2ba   :  { %v6402_v17 = vcombine.high %v843_v4, %v847_v5  ;;  %v1063_v58 = vld [vmem:[%s10637_s7 + $0x7f0] sm:$0xff] }
 0x2bb   :  { %2492 = vmatpush2.bf16.msra.mxu0 %v6463_v12  ;;  %2533 = vmatpush2.bf16.msra.mxu1 %v6591_v13  ;;  %v975_v12 = vld [vmem:[%s10637_s7 + $0x530] sm:$0xff]  ;;  %v6409_v13 = vcombine.low %v851_v63, %v855_v0  ;;  %v6497_v63 = vcombine.low %v939_v49, %v943_v50 }
 0x2bc   :  { %2493 = vmatprep.subr.bf16.mxu0 %v6456_v14  ;;  %2534 = vmatprep.subr.bf16.mxu1 %v6584_v15  ;;  %v835_v14 = vld [vmem:[%s10637_s7 + $0xd0] sm:$0xff]  ;;  %v6530_v19 = vcombine.high %v971_v8, %v975_v12  ;;  %v6529_v24 = vcombine.low %v971_v8, %v975_v12 }
 0x2bd   :  { %v839_v15 = vld [vmem:[%s10637_s7 + $0xf0] sm:$0xff] }
 0x2be   :  { %v6394_v25 = vcombine.high %v835_v14, %v839_v15  ;;  %v1051_v1 = vld [vmem:[%s10637_s7 + $0x790] sm:$0xff] }
 0x2bf   :  { %2494 = vmatpush2.bf16.msra.mxu0 %v6455_v20  ;;  %2535 = vmatpush2.bf16.msra.mxu1 %v6583_v21  ;;  %v967_v20 = vld [vmem:[%s10637_s7 + $0x4f0] sm:$0xff]  ;;  %v6401_v21 = vcombine.low %v843_v4, %v847_v5 }
 0x2c0   :  { %2495 = vmatprep.subr.bf16.mxu0 %v6448_v22  ;;  %2536 = vmatprep.subr.bf16.mxu1 %v6576_v23  ;;  %v827_v22 = vld [vmem:[%s10637_s7 + $0x90] sm:$0xff]  ;;  %v6522_v26 = vcombine.high %v963_v18, %v967_v20  ;;  %v6521_v32 = vcombine.low %v963_v18, %v967_v20 }
 0x2c1   :  { %v831_v23 = vld [vmem:[%s10637_s7 + $0xb0] sm:$0xff] }
 0x2c2   :  { %v6386_v33 = vcombine.high %v827_v22, %v831_v23  ;;  %v1055_v2 = vld [vmem:[%s10637_s7 + $0x7b0] sm:$0xff] }
 0x2c3   :  { %2496 = vmatpush2.bf16.msra.mxu0 %v6447_v28  ;;  %2537 = vmatpush2.bf16.msra.mxu1 %v6575_v29  ;;  %v959_v28 = vld [vmem:[%s10637_s7 + $0x4b0] sm:$0xff]  ;;  %v6393_v29 = vcombine.low %v835_v14, %v839_v15 }
 0x2c4   :  { %2497 = vmatprep.subr.bf16.mxu0 %v6440_v30  ;;  %2538 = vmatprep.subr.bf16.mxu1 %v6568_v31  ;;  %v819_v30 = vld [vmem:[%s10637_s7 + $0x50] sm:$0xff]  ;;  %v6513_v44 = vcombine.low %v955_v27, %v959_v28 }
 0x2c5   :  { %v823_v31 = vld [vmem:[%s10637_s7 + $0x70] sm:$0xff] }
 0x2c6   :  { %v6378_v47 = vcombine.high %v819_v30, %v823_v31  ;;  %v915_v5 = vld [vmem:[%s10637_s7 + $0x350] sm:$0xff] }
 0x2c7   :  { %2498 = vmatpush2.bf16.msra.mxu0 %v6439_v40  ;;  %2539 = vmatpush2.bf16.msra.mxu1 %v6567_v41  ;;  %v6514_v40 = vcombine.high %v955_v27, %v959_v28  ;;  %v6385_v41 = vcombine.low %v827_v22, %v831_v23  ;;  %v1047_v12 = vld [vmem:[%s10637_s7 + $0x770] sm:$0xff] }
 0x2c8   :  { %2499 = vmatprep.subr.bf16.mxu0 %v6432_v42  ;;  %2540 = vmatprep.subr.bf16.mxu1 %v6560_v43  ;;  %v811_v42 = vld [vmem:[%s10637_s7 + $0x10] sm:$0xff] }
 0x2c9   :  { %v815_v43 = vld [vmem:[%s10637_s7 + $0x30] sm:$0xff] }
 0x2ca   :  { %v6370_v56 = vcombine.high %v811_v42, %v815_v43  ;;  %v907_v15 = vld [vmem:[%s10637_s7 + $0x310] sm:$0xff] }
 0x2cb   :  { %2500 = vmatpush2.bf16.msra.mxu0 %v6431_v51  ;;  %2541 = vmatpush2.bf16.msra.mxu1 %v6559_v52  ;;  %v6506_v51 = vcombine.high %v947_v34, %v951_v35  ;;  %v6377_v52 = vcombine.low %v819_v30, %v823_v31  ;;  %v1039_v20 = vld [vmem:[%s10637_s7 + $0x730] sm:$0xff] }
 0x2cc   :  { %2551 = vmatprep.subr.bf16.mxu0 %v6426_v53  ;;  %2592 = vmatprep.subr.bf16.mxu1 %v6554_v54  ;;  %v931_v53 = vld [vmem:[%s10637_s7 + $0x3d0] sm:$0xff] }
 0x2cd   :  { %v935_v54 = vld [vmem:[%s10637_s7 + $0x3f0] sm:$0xff] }
 0x2ce   :  { %2502 = vmatmul.mubr.bf16.vlgmr.msra.gmra.mxu0 %v8556_v38  ;;  %2543 = vmatmul.mubr.bf16.vlgmr.msra.gmra.mxu1 %v8558_v39  ;;  %v6490_v0 = vcombine.high %v931_v53, %v935_v54  ;;  %v6489_v4 = vcombine.low %v931_v53, %v935_v54  ;;  %v899_v23 = vld [vmem:[%s10637_s7 + $0x2d0] sm:$0xff] }
 0x2cf   :  { %2552 = vmatpush1.bf16.msra.mxu0 %v6425_v59  ;;  %2583 = vmatprep.mubr.bf16.mxu0 %v8552_v36  ;;  %v6498_v59 = vcombine.high %v939_v49, %v943_v50  ;;  %v1027_v27 = vld [vmem:[%s10637_s7 + $0x6d0] sm:$0xff] }
 0x2d0   :  { %2593 = vmatpush1.bf16.msra.mxu1 %v6553_v60  ;;  %2624 = vmatprep.mubr.bf16.mxu1 %v8554_v37  ;;  %v6369_v60 = vcombine.low %v811_v42, %v815_v43  ;;  %v1031_v28 = vld [vmem:[%s10637_s7 + $0x6f0] sm:$0xff] }
 0x2d1   :  { %2553 = vmatprep.subr.bf16.mxu0 %v6418_v61  ;;  %2594 = vmatprep.subr.bf16.mxu1 %v6546_v62  ;;  %v923_v61 = vld [vmem:[%s10637_s7 + $0x390] sm:$0xff] }
 0x2d2   :  { %v927_v62 = vld [vmem:[%s10637_s7 + $0x3b0] sm:$0xff] }
 0x2d3   :  { %2554 = vmatpush1.bf16.msra.mxu0 %v6417_v3  ;;  %v6618_v3 = vcombine.high %v1059_v57, %v1063_v58  ;;  %v6482_v8 = vcombine.high %v923_v61, %v927_v62  ;;  %v6481_v14 = vcombine.low %v923_v61, %v927_v62  ;;  %v891_v31 = vld [vmem:[%s10637_s7 + $0x290] sm:$0xff]  ;;  %v868_v62 = vld [vmem:[%s10637_s7 + $0x1d8] sm:$0xff] }
 0x2d4   :  { %2595 = vmatpush1.bf16.msra.mxu1 %v6545_v6  ;;  %2555 = vmatprep.subr.bf16.mxu0 %v6410_v7  ;;  %v919_v6 = vld [vmem:[%s10637_s7 + $0x370] sm:$0xff]  ;;  %v6617_v7 = vcombine.low %v1059_v57, %v1063_v58 }
 0x2d5   :  { %2596 = vmatprep.subr.bf16.mxu1 %v6538_v10  ;;  %v1043_v10 = vld [vmem:[%s10637_s7 + $0x750] sm:$0xff]  ;;  %v6474_v18 = vcombine.high %v915_v5, %v919_v6  ;;  %v6473_v22 = vcombine.low %v915_v5, %v919_v6 }
 0x2d6   :  { %v1019_v35 = vld [vmem:[%s10637_s7 + $0x690] sm:$0xff] }
 0x2d7   :  { %2556 = vmatpush1.bf16.msra.mxu0 %v6409_v13  ;;  %v6610_v13 = vcombine.high %v1051_v1, %v1055_v2  ;;  %v883_v43 = vld [vmem:[%s10637_s7 + $0x250] sm:$0xff] }
 0x2d8   :  { %2597 = vmatpush1.bf16.msra.mxu1 %v6537_v16  ;;  %2557 = vmatprep.subr.bf16.mxu0 %v6402_v17  ;;  %v911_v16 = vld [vmem:[%s10637_s7 + $0x330] sm:$0xff]  ;;  %v6609_v17 = vcombine.low %v1051_v1, %v1055_v2  ;;  %v996_v2 = vld [vmem:[%s10637_s7 + $0x5d8] sm:$0xff] }
 0x2d9   :  { %2598 = vmatprep.subr.bf16.mxu1 %v6530_v19  ;;  %v1035_v19 = vld [vmem:[%s10637_s7 + $0x710] sm:$0xff]  ;;  %v6465_v30 = vcombine.low %v907_v15, %v911_v16 }
 0x2da   :  { %v1011_v50 = vld [vmem:[%s10637_s7 + $0x650] sm:$0xff] }
 0x2db   :  { %2558 = vmatpush1.bf16.msra.mxu0 %v6401_v21  ;;  %v6602_v21 = vcombine.high %v1043_v10, %v1047_v12  ;;  %v875_v54 = vld [vmem:[%s10637_s7 + $0x210] sm:$0xff] }
 0x2dc   :  { %2599 = vmatpush1.bf16.msra.mxu1 %v6529_v24  ;;  %2559 = vmatprep.subr.bf16.mxu0 %v6394_v25  ;;  %v903_v24 = vld [vmem:[%s10637_s7 + $0x2f0] sm:$0xff]  ;;  %v6601_v25 = vcombine.low %v1043_v10, %v1047_v12  ;;  %v864_v10 = vld [vmem:[%s10637_s7 + $0x1b8] sm:$0xff] }
 0x2dd   :  { %2600 = vmatprep.subr.bf16.mxu1 %v6522_v26  ;;  %v6466_v26 = vcombine.high %v907_v15, %v911_v16  ;;  %v6458_v34 = vcombine.high %v899_v23, %v903_v24  ;;  %v6457_v42 = vcombine.low %v899_v23, %v903_v24  ;;  %v1003_v58 = vld [vmem:[%s10637_s7 + $0x610] sm:$0xff]  ;;  %v852_v16 = vld [vmem:[%s10637_s7 + $0x158] sm:$0xff] }
 0x2de   :  { %v844_v24 = vld [vmem:[%s10637_s7 + $0x118] sm:$0xff] }
 0x2df   :  { %2560 = vmatpush1.bf16.msra.mxu0 %v6393_v29  ;;  %v6594_v29 = vcombine.high %v1035_v19, %v1039_v20 }
 0x2e0   :  { %2601 = vmatpush1.bf16.msra.mxu1 %v6521_v32  ;;  %2561 = vmatprep.subr.bf16.mxu0 %v6386_v33  ;;  %v895_v32 = vld [vmem:[%s10637_s7 + $0x2b0] sm:$0xff]  ;;  %v6593_v33 = vcombine.low %v1035_v19, %v1039_v20  ;;  %v980_v19 = vld [vmem:[%s10637_s7 + $0x558] sm:$0xff] }
 0x2e1   :  { %2602 = vmatprep.subr.bf16.mxu1 %v6514_v40  ;;  %v1023_v40 = vld [vmem:[%s10637_s7 + $0x6b0] sm:$0xff]  ;;  %v6450_v49 = vcombine.high %v891_v31, %v895_v32  ;;  %v6449_v53 = vcombine.low %v891_v31, %v895_v32  ;;  %v840_v32 = vld [vmem:[%s10637_s7 + $0xf8] sm:$0xff] }
 0x2e3   :  { %2562 = vmatpush1.bf16.msra.mxu0 %v6385_v41  ;;  %v6586_v41 = vcombine.high %v1027_v27, %v1031_v28 }
 0x2e4   :  { %2603 = vmatpush1.bf16.msra.mxu1 %v6513_v44  ;;  %2563 = vmatprep.subr.bf16.mxu0 %v6378_v47  ;;  %v887_v44 = vld [vmem:[%s10637_s7 + $0x270] sm:$0xff]  ;;  %v6585_v47 = vcombine.low %v1027_v27, %v1031_v28  ;;  %v972_v28 = vld [vmem:[%s10637_s7 + $0x518] sm:$0xff] }
 0x2e5   :  { %2604 = vmatprep.subr.bf16.mxu1 %v6506_v51  ;;  %v1015_v51 = vld [vmem:[%s10637_s7 + $0x670] sm:$0xff]  ;;  %v6442_v57 = vcombine.high %v883_v43, %v887_v44  ;;  %v6441_v61 = vcombine.low %v883_v43, %v887_v44 }
 0x2e7   :  { %2564 = vmatpush1.bf16.msra.mxu0 %v6377_v52  ;;  %v6578_v52 = vcombine.high %v1019_v35, %v1023_v40 }
 0x2e8   :  { %2605 = vmatpush1.bf16.msra.mxu1 %v6505_v55  ;;  %2565 = vmatprep.subr.bf16.mxu0 %v6370_v56  ;;  %v879_v55 = vld [vmem:[%s10637_s7 + $0x230] sm:$0xff]  ;;  %v6577_v56 = vcombine.low %v1019_v35, %v1023_v40  ;;  %v968_v40 = vld [vmem:[%s10637_s7 + $0x4f8] sm:$0xff] }
 0x2e9   :  { %2606 = vmatprep.subr.bf16.mxu1 %v6498_v59  ;;  %v1007_v59 = vld [vmem:[%s10637_s7 + $0x630] sm:$0xff]  ;;  %v6434_v1 = vcombine.high %v875_v54, %v879_v55  ;;  %v6433_v5 = vcombine.low %v875_v54, %v879_v55  ;;  %v824_v54 = vld [vmem:[%s10637_s7 + $0x78] sm:$0xff] }
 0x2ea   :  { %v6561_v6 = vcombine.low %v1003_v58, %v1007_v59 }
 0x2eb   :  { %2566 = vmatpush1.bf16.msra.mxu0 %v6369_v60  ;;  %v6570_v60 = vcombine.high %v1011_v50, %v1015_v51 }
 0x2ec   :  { %2607 = vmatpush1.bf16.msra.mxu1 %v6497_v63  ;;  %2567 = vmatprep.subr.bf16.mxu0 %v6490_v0  ;;  %v872_v63 = vld [vmem:[%s10637_s7 + $0x1f8] sm:$0xff]  ;;  %v6569_v0 = vcombine.low %v1011_v50, %v1015_v51 }
 0x2ed   :  { %2608 = vmatprep.subr.bf16.mxu1 %v6618_v3  ;;  %v1000_v3 = vld [vmem:[%s10637_s7 + $0x5f8] sm:$0xff]  ;;  %v6427_v15 = vcombine.low %v868_v62, %v872_v63 }
 0x2ee   :  { %v6556_v12 = vcombine.high %v996_v2, %v1000_v3  ;;  %v956_v50 = vld [vmem:[%s10637_s7 + $0x498] sm:$0xff] }
 0x2ef   :  { %2568 = vmatpush2.bf16.msra.mxu0 %v6489_v4  ;;  %v6562_v4 = vcombine.high %v1003_v58, %v1007_v59  ;;  %v960_v51 = vld [vmem:[%s10637_s7 + $0x4b8] sm:$0xff] }
 0x2f0   :  { %2609 = vmatpush2.bf16.msra.mxu1 %v6617_v7  ;;  %2569 = vmatprep.subr.bf16.mxu0 %v6482_v8  ;;  %v6428_v7 = vcombine.high %v868_v62, %v872_v63  ;;  %v860_v8 = vld [vmem:[%s10637_s7 + $0x198] sm:$0xff]  ;;  %v6516_v59 = vcombine.high %v956_v50, %v960_v51  ;;  %v6515_v63 = vcombine.low %v956_v50, %v960_v51 }
 0x2f1   :  { %2610 = vmatprep.subr.bf16.mxu1 %v6610_v13  ;;  %v988_v13 = vld [vmem:[%s10637_s7 + $0x598] sm:$0xff]  ;;  %v6420_v20 = vcombine.high %v860_v8, %v864_v10  ;;  %v6419_v23 = vcombine.low %v860_v8, %v864_v10 }
 0x2f2   :  { %v952_v58 = vld [vmem:[%s10637_s7 + $0x478] sm:$0xff] }
 0x2f3   :  { %2570 = vmatpush2.bf16.msra.mxu0 %v6481_v14  ;;  %v992_v14 = vld [vmem:[%s10637_s7 + $0x5b8] sm:$0xff] }
 0x2f4   :  { %2611 = vmatpush2.bf16.msra.mxu1 %v6609_v17  ;;  %2571 = vmatprep.subr.bf16.mxu0 %v6474_v18  ;;  %v856_v17 = vld [vmem:[%s10637_s7 + $0x178] sm:$0xff]  ;;  %v6555_v18 = vcombine.low %v996_v2, %v1000_v3 }
 0x2f5   :  { %2612 = vmatprep.subr.bf16.mxu1 %v6602_v21  ;;  %v6548_v21 = vcombine.high %v988_v13, %v992_v14  ;;  %v6412_v27 = vcombine.high %v852_v16, %v856_v17  ;;  %v6411_v31 = vcombine.low %v852_v16, %v856_v17  ;;  %v816_v62 = vld [vmem:[%s10637_s7 + $0x38] sm:$0xff] }
 0x2f6   :  { %v944_v2 = vld [vmem:[%s10637_s7 + $0x438] sm:$0xff] }
 0x2f7   :  { %2572 = vmatpush2.bf16.msra.mxu0 %v6473_v22  ;;  %v984_v22 = vld [vmem:[%s10637_s7 + $0x578] sm:$0xff] }
 0x2f8   :  { %2613 = vmatpush2.bf16.msra.mxu1 %v6601_v25  ;;  %2573 = vmatprep.subr.bf16.mxu0 %v6466_v26  ;;  %v848_v25 = vld [vmem:[%s10637_s7 + $0x138] sm:$0xff]  ;;  %v6547_v26 = vcombine.low %v988_v13, %v992_v14 }
 0x2f9   :  { %2614 = vmatprep.subr.bf16.mxu1 %v6594_v29  ;;  %v6540_v29 = vcombine.high %v980_v19, %v984_v22  ;;  %v1060_v10 = vld [vmem:[%s10637_s7 + $0x7d8] sm:$0xff] }
 0x2fa   :  { %v928_v16 = vld [vmem:[%s10637_s7 + $0x3b8] sm:$0xff] }
 0x2fb   :  { %2574 = vmatpush2.bf16.msra.mxu0 %v6465_v30  ;;  %v976_v30 = vld [vmem:[%s10637_s7 + $0x538] sm:$0xff] }
 0x2fc   :  { %2615 = vmatpush2.bf16.msra.mxu1 %v6593_v33  ;;  %2575 = vmatprep.subr.bf16.mxu0 %v6458_v34  ;;  %v6404_v33 = vcombine.high %v844_v24, %v848_v25  ;;  %v964_v34 = vld [vmem:[%s10637_s7 + $0x4d8] sm:$0xff]  ;;  %v6532_v35 = vcombine.high %v972_v28, %v976_v30 }
 0x2fd   :  { %2616 = vmatprep.subr.bf16.mxu1 %v6586_v41  ;;  %v6403_v41 = vcombine.low %v844_v24, %v848_v25  ;;  %v6524_v44 = vcombine.high %v964_v34, %v968_v40  ;;  %v6523_v55 = vcombine.low %v964_v34, %v968_v40  ;;  %v920_v24 = vld [vmem:[%s10637_s7 + $0x378] sm:$0xff] }
 0x2fe   :  { %v1040_v34 = vld [vmem:[%s10637_s7 + $0x738] sm:$0xff] }
 0x2ff   :  { %2576 = vmatpush2.bf16.msra.mxu0 %v6457_v42  ;;  %v6531_v42 = vcombine.low %v972_v28, %v976_v30  ;;  %v1048_v28 = vld [vmem:[%s10637_s7 + $0x778] sm:$0xff] }
 0x300   :  { %2617 = vmatpush2.bf16.msra.mxu1 %v6585_v47  ;;  %2577 = vmatprep.subr.bf16.mxu0 %v6450_v49  ;;  %v828_v47 = vld [vmem:[%s10637_s7 + $0x98] sm:$0xff] }
 0x301   :  { %2618 = vmatprep.subr.bf16.mxu1 %v6578_v52  ;;  %v832_v49 = vld [vmem:[%s10637_s7 + $0xb8] sm:$0xff] }
 0x303   :  { %2578 = vmatpush2.bf16.msra.mxu0 %v6449_v53  ;;  %v820_v53 = vld [vmem:[%s10637_s7 + $0x58] sm:$0xff] }
 0x304   :  { %2619 = vmatpush2.bf16.msra.mxu1 %v6577_v56  ;;  %2579 = vmatprep.subr.bf16.mxu0 %v6442_v57  ;;  %v6388_v56 = vcombine.high %v828_v47, %v832_v49  ;;  %v948_v57 = vld [vmem:[%s10637_s7 + $0x458] sm:$0xff] }
 0x305   :  { %2620 = vmatprep.subr.bf16.mxu1 %v6570_v60  ;;  %v6387_v60 = vcombine.low %v828_v47, %v832_v49  ;;  %v6508_v3 = vcombine.high %v948_v57, %v952_v58  ;;  %v1028_v47 = vld [vmem:[%s10637_s7 + $0x6d8] sm:$0xff] }
 0x306   :  { %v1032_v49 = vld [vmem:[%s10637_s7 + $0x6f8] sm:$0xff] }
 0x307   :  { %2580 = vmatpush2.bf16.msra.mxu0 %v6441_v61  ;;  %v812_v61 = vld [vmem:[%s10637_s7 + $0x18] sm:$0xff] }
 0x308   :  { %2621 = vmatpush2.bf16.msra.mxu1 %v6569_v0  ;;  %2581 = vmatprep.subr.bf16.mxu0 %v6434_v1  ;;  %v6380_v0 = vcombine.high %v820_v53, %v824_v54  ;;  %v940_v1 = vld [vmem:[%s10637_s7 + $0x418] sm:$0xff]  ;;  %v6372_v8 = vcombine.high %v812_v61, %v816_v62  ;;  %v6371_v14 = vcombine.low %v812_v61, %v816_v62 }
 0x309   :  { %2622 = vmatprep.subr.bf16.mxu1 %v6562_v4  ;;  %v6379_v4 = vcombine.low %v820_v53, %v824_v54  ;;  %v6500_v13 = vcombine.high %v940_v1, %v944_v2  ;;  %v6499_v17 = vcombine.low %v940_v1, %v944_v2  ;;  %v896_v53 = vld [vmem:[%s10637_s7 + $0x2b8] sm:$0xff]  ;;  %v6587_v62 = vcombine.low %v1028_v47, %v1032_v49 }
 0x30a   :  { %v888_v61 = vld [vmem:[%s10637_s7 + $0x278] sm:$0xff] }
 0x30b   :  { %2582 = vmatpush2.bf16.msra.mxu0 %v6433_v5  ;;  %v932_v5 = vld [vmem:[%s10637_s7 + $0x3d8] sm:$0xff] }
 0x30c   :  { %2623 = vmatpush2.bf16.msra.mxu1 %v6561_v6  ;;  %2633 = vmatprep.subr.bf16.mxu0 %v6428_v7  ;;  %v936_v6 = vld [vmem:[%s10637_s7 + $0x3f8] sm:$0xff]  ;;  %v6507_v7 = vcombine.low %v948_v57, %v952_v58  ;;  %v6588_v58 = vcombine.high %v1028_v47, %v1032_v49  ;;  %v7349_v49 = vld [vmem:[%s10640_s9 + $0x464] ss:$28 sps:$4 sm:$0xff]  }
 0x30d   :  { %2674 = vmatprep.subr.bf16.mxu1 %v6556_v12  ;;  %v1064_v12 = vld [vmem:[%s10637_s7 + $0x7f8] sm:$0xff] }
 0x30e   :  { %2584 = vmatmul.mubr.bf16.vlgmr.msra.gmra.mxu0 %v8556_v38  ;;  %v6619_v25 = vcombine.low %v1060_v10, %v1064_v12  ;;  %v1024_v57 = vld [vmem:[%s10637_s7 + $0x6b8] sm:$0xff] }
 0x30f   :  { %2625 = vmatmul.mubr.bf16.vlgmr.msra.gmra.mxu1 %v8558_v39  ;;  %2634 = vmatpush1.bf16.msra.mxu0 %v6427_v15  ;;  %v924_v15 = vld [vmem:[%s10637_s7 + $0x398] sm:$0xff] }
 0x310   :  { %2665 = vmatprep.mubr.bf16.mxu0 %v8552_v36  ;;  %2675 = vmatpush1.bf16.msra.mxu1 %v6555_v18  ;;  %v836_v36 = vld [vmem:[%s10637_s7 + $0xd8] sm:$0xff]  ;;  %v6492_v18 = vcombine.high %v932_v5, %v936_v6  ;;  %v6483_v30 = vcombine.low %v924_v15, %v928_v16 }
 0x311   :  { %2706 = vmatprep.mubr.bf16.mxu1 %v8554_v37  ;;  %2635 = vmatprep.subr.bf16.mxu0 %v6420_v20  ;;  %v6539_v37 = vcombine.low %v980_v19, %v984_v22  ;;  %v6396_v43 = vcombine.high %v836_v36, %v840_v32  ;;  %v6395_v52 = vcombine.low %v836_v36, %v840_v32  ;;  %v1052_v19 = vld [vmem:[%s10637_s7 + $0x798] sm:$0xff] }
 0x312   :  { %2676 = vmatprep.subr.bf16.mxu1 %v6548_v21  ;;  %v1056_v20 = vld [vmem:[%s10637_s7 + $0x7b8] sm:$0xff]  ;;  %v6620_v21 = vcombine.high %v1060_v10, %v1064_v12  ;;  %v6491_v22 = vcombine.low %v932_v5, %v936_v6 }
 0x313   :  { %2636 = vmatpush1.bf16.msra.mxu0 %v6419_v23  ;;  %v916_v23 = vld [vmem:[%s10637_s7 + $0x358] sm:$0xff]  ;;  %v6611_v32 = vcombine.low %v1052_v19, %v1056_v20 }
 0x314   :  { %2677 = vmatpush1.bf16.msra.mxu1 %v6547_v26  ;;  %2637 = vmatprep.subr.bf16.mxu0 %v6412_v27  ;;  %v6484_v26 = vcombine.high %v924_v15, %v928_v16  ;;  %v1044_v27 = vld [vmem:[%s10637_s7 + $0x758] sm:$0xff]  ;;  %v6475_v40 = vcombine.low %v916_v23, %v920_v24 }
 0x315   :  { %2678 = vmatprep.subr.bf16.mxu1 %v6540_v29  ;;  %v6612_v29 = vcombine.high %v1052_v19, %v1056_v20  ;;  %v912_v36 = vld [vmem:[%s10637_s7 + $0x338] sm:$0xff]  ;;  %v7331_v19 = vld [vmem:[%s10640_s9 + $0x50c] ss:$28 sps:$4 sm:$0xff]  }
 0x316   :  { %v1016_v1 = vld [vmem:[%s10637_s7 + $0x678] sm:$0xff] }
 0x317   :  { %2638 = vmatpush1.bf16.msra.mxu0 %v6411_v31  ;;  %v908_v31 = vld [vmem:[%s10637_s7 + $0x318] sm:$0xff] }
 0x318   :  { %2679 = vmatpush1.bf16.msra.mxu1 %v6539_v37  ;;  %2639 = vmatprep.subr.bf16.mxu0 %v6404_v33  ;;  %v6476_v37 = vcombine.high %v916_v23, %v920_v24  ;;  %v1036_v33 = vld [vmem:[%s10637_s7 + $0x718] sm:$0xff]  ;;  %v6467_v51 = vcombine.low %v908_v31, %v912_v36  ;;  %v7322_v23 = vld [vmem:[%s10640_s9 + $0x154] ss:$28 sps:$4 sm:$0xff]   ;;  %v7329_v24 = vld [vmem:[%s10640_s9 + $0x508] ss:$28 sps:$4 sm:$0xff]  }
 0x319   :  { %2680 = vmatprep.subr.bf16.mxu1 %v6532_v35  ;;  %v6604_v35 = vcombine.high %v1044_v27, %v1048_v28  ;;  %v6596_v50 = vcombine.high %v1036_v33, %v1040_v34  ;;  %v6595_v54 = vcombine.low %v1036_v33, %v1040_v34  ;;  %v880_v5 = vld [vmem:[%s10637_s7 + $0x238] sm:$0xff] }
 0x31a   :  { %v1008_v10 = vld [vmem:[%s10637_s7 + $0x638] sm:$0xff] }
 0x31b   :  { %2640 = vmatpush1.bf16.msra.mxu0 %v6403_v41  ;;  %v900_v41 = vld [vmem:[%s10637_s7 + $0x2d8] sm:$0xff] }
 0x31c   :  { %2681 = vmatpush1.bf16.msra.mxu1 %v6531_v42  ;;  %2641 = vmatprep.subr.bf16.mxu0 %v6396_v43  ;;  %v904_v42 = vld [vmem:[%s10637_s7 + $0x2f8] sm:$0xff]  ;;  %v6603_v43 = vcombine.low %v1044_v27, %v1048_v28  ;;  %v7320_v27 = vld [vmem:[%s10640_s9 + $0x150] ss:$28 sps:$4 sm:$0xff]  }
 0x31d   :  { %2682 = vmatprep.subr.bf16.mxu1 %v6524_v44  ;;  %v6468_v44 = vcombine.high %v908_v31, %v912_v36  ;;  %v7335_v31 = vld [vmem:[%s10640_s9 + $0x4d0] ss:$28 sps:$4 sm:$0xff]   ;;  %v7343_v33 = vld [vmem:[%s10640_s9 + $0x49c] ss:$28 sps:$4 sm:$0xff]  }
 0x31e   :  { %v7326_v47 = vld [vmem:[%s10640_s9 + $0xe0] ss:$28 sps:$4 sm:$0xff]  }
 0x31f   :  { %2642 = vmatpush1.bf16.msra.mxu0 %v6395_v52  ;;  %v892_v52 = vld [vmem:[%s10637_s7 + $0x298] sm:$0xff] }
 0x320   :  { %2683 = vmatpush1.bf16.msra.mxu1 %v6523_v55  ;;  %2643 = vmatprep.subr.bf16.mxu0 %v6388_v56  ;;  %v6460_v55 = vcombine.high %v900_v41, %v904_v42  ;;  %v1020_v56 = vld [vmem:[%s10637_s7 + $0x698] sm:$0xff] }
 0x321   :  { %2684 = vmatprep.subr.bf16.mxu1 %v6516_v59  ;;  %v6459_v59 = vcombine.low %v900_v41, %v904_v42  ;;  %v6580_v2 = vcombine.high %v1020_v56, %v1024_v57  ;;  %v6579_v6 = vcombine.low %v1020_v56, %v1024_v57  ;;  %v7353_v56 = vld [vmem:[%s10640_s9 + $0x428] ss:$28 sps:$4 sm:$0xff]   ;;  %v7361_v57 = vld [vmem:[%s10640_s9 + $0x3f4] ss:$28 sps:$4 sm:$0xff]  }
 0x323   :  { %2644 = vmatpush1.bf16.msra.mxu0 %v6387_v60  ;;  %v884_v60 = vld [vmem:[%s10637_s7 + $0x258] sm:$0xff] }
 0x324   :  { %2685 = vmatpush1.bf16.msra.mxu1 %v6515_v63  ;;  %2645 = vmatprep.subr.bf16.mxu0 %v6380_v0  ;;  %v6452_v63 = vcombine.high %v892_v52, %v896_v53  ;;  %v1012_v0 = vld [vmem:[%s10637_s7 + $0x658] sm:$0xff] }
 0x325   :  { %2686 = vmatprep.subr.bf16.mxu1 %v6508_v3  ;;  %v6451_v3 = vcombine.low %v892_v52, %v896_v53  ;;  %v6572_v12 = vcombine.high %v1012_v0, %v1016_v1  ;;  %v7355_v53 = vld [vmem:[%s10640_s9 + $0x42c] ss:$28 sps:$4 sm:$0xff]  }
 0x327   :  { %2646 = vmatpush1.bf16.msra.mxu0 %v6379_v4  ;;  %v876_v4 = vld [vmem:[%s10637_s7 + $0x218] sm:$0xff] }
 0x328   :  { %2687 = vmatpush1.bf16.msra.mxu1 %v6507_v7  ;;  %2647 = vmatprep.subr.bf16.mxu0 %v6372_v8  ;;  %v6444_v7 = vcombine.high %v884_v60, %v888_v61  ;;  %v1004_v8 = vld [vmem:[%s10637_s7 + $0x618] sm:$0xff]  ;;  %v6436_v15 = vcombine.high %v876_v4, %v880_v5 }
 0x329   :  { %2688 = vmatprep.subr.bf16.mxu1 %v6500_v13  ;;  %v6443_v13 = vcombine.low %v884_v60, %v888_v61  ;;  %v6564_v16 = vcombine.high %v1004_v8, %v1008_v10  ;;  %v6563_v20 = vcombine.low %v1004_v8, %v1008_v10  ;;  %v7359_v60 = vld [vmem:[%s10640_s9 + $0x3f0] ss:$28 sps:$4 sm:$0xff]   ;;  %v7367_v61 = vld [vmem:[%s10640_s9 + $0x3bc] ss:$28 sps:$4 sm:$0xff]   ;;  %v7377_v8 = vld [vmem:[%s10640_s9 + $0x6c8] ss:$28 sps:$4 sm:$0xff]  }
 0x32a   :  { %v7385_v10 = vld [vmem:[%s10640_s9 + $0x694] ss:$28 sps:$4 sm:$0xff]  }
 0x32b   :  { %2648 = vmatpush1.bf16.msra.mxu0 %v6371_v14  ;;  %v6571_v14 = vcombine.low %v1012_v0, %v1016_v1  ;;  %v7365_v0 = vld [vmem:[%s10640_s9 + $0x3b8] ss:$28 sps:$4 sm:$0xff]   ;;  %v7373_v1 = vld [vmem:[%s10640_s9 + $0x384] ss:$28 sps:$4 sm:$0xff]  }
 0x32c   :  { %2689 = vmatpush1.bf16.msra.mxu1 %v6499_v17  ;;  %2649 = vmatprep.subr.bf16.mxu0 %v6492_v18  ;;  %v7319_v17 = vld [vmem:[%s10640_s9 + $0x18c] ss:$28 sps:$4 sm:$0xff]   ;;  %v6435_v18 = vcombine.low %v876_v4, %v880_v5  ;;  %v7371_v4 = vld [vmem:[%s10640_s9 + $0x380] ss:$28 sps:$4 sm:$0xff]  }
 0x32d   :  { %2690 = vmatprep.subr.bf16.mxu1 %v6620_v21  ;;  %v7317_v21 = vld [vmem:[%s10640_s9 + $0x188] ss:$28 sps:$4 sm:$0xff]  }
 0x32e   :  { %v7379_v5 = vld [vmem:[%s10640_s9 + $0x6cc] ss:$28 sps:$4 sm:$0xff]  }
 0x32f   :  { %2650 = vmatpush2.bf16.msra.mxu0 %v6491_v22  ;;  %v9138_v22 = vld [vmem:[%s10641_s8] sm:$0xff] }
 0x330   :  { %2691 = vmatpush2.bf16.msra.mxu1 %v6619_v25  ;;  %2651 = vmatprep.subr.bf16.mxu0 %v6484_v26  ;;  %v7337_v25 = vld [vmem:[%s10640_s9 + $0x4d4] ss:$28 sps:$4 sm:$0xff]   ;;  %v1074_v26 = vrot.slane %v9138_v22, %v8331_v48 }
 0x331   :  { %2692 = vmatprep.subr.bf16.mxu1 %v6612_v29 }
 0x333   :  { %2652 = vmatpush2.bf16.msra.mxu0 %v6483_v30  ;;  %v7325_v30 = vld [vmem:[%s10640_s9 + $0x11c] ss:$28 sps:$4 sm:$0xff]  }
 0x334   :  { %2693 = vmatpush2.bf16.msra.mxu1 %v6611_v32  ;;  %2653 = vmatprep.subr.bf16.mxu0 %v6476_v37  ;;  %v7323_v37 = vld [vmem:[%s10640_s9 + $0x118] ss:$28 sps:$4 sm:$0xff]  }
 0x335   :  { %2694 = vmatprep.subr.bf16.mxu1 %v6604_v35 }
 0x337   :  { %2654 = vmatpush2.bf16.msra.mxu0 %v6475_v40  ;;  %v7341_v40 = vld [vmem:[%s10640_s9 + $0x498] ss:$28 sps:$4 sm:$0xff]  }
 0x338   :  { %2695 = vmatpush2.bf16.msra.mxu1 %v6603_v43  ;;  %2655 = vmatprep.subr.bf16.mxu0 %v6468_v44 }
 0x339   :  { %2696 = vmatprep.subr.bf16.mxu1 %v6596_v50  ;;  %v7334_v50 = vld [vmem:[%s10640_s9 + $0xac] ss:$28 sps:$4 sm:$0xff]  }
 0x33b   :  { %2656 = vmatpush2.bf16.msra.mxu0 %v6467_v51  ;;  %v7347_v51 = vld [vmem:[%s10640_s9 + $0x460] ss:$28 sps:$4 sm:$0xff]  }
 0x33c   :  { %2697 = vmatpush2.bf16.msra.mxu1 %v6595_v54  ;;  %2657 = vmatprep.subr.bf16.mxu0 %v6460_v55  ;;  %v7332_v54 = vld [vmem:[%s10640_s9 + $0xa8] ss:$28 sps:$4 sm:$0xff]   ;;  %v7340_v55 = vld [vmem:[%s10640_s9 + $0x74] ss:$28 sps:$4 sm:$0xff]  }
 0x33d   :  { %2698 = vmatprep.subr.bf16.mxu1 %v6588_v58  ;;  %v7338_v58 = vld [vmem:[%s10640_s9 + $0x70] ss:$28 sps:$4 sm:$0xff]  }
 0x33f   :  { %2658 = vmatpush2.bf16.msra.mxu0 %v6459_v59  ;;  %v7346_v59 = vld [vmem:[%s10640_s9 + $0x3c] ss:$28 sps:$4 sm:$0xff]  }
 0x340   :  { %2699 = vmatpush2.bf16.msra.mxu1 %v6587_v62  ;;  %2659 = vmatprep.subr.bf16.mxu0 %v6452_v63  ;;  %v7344_v62 = vld [vmem:[%s10640_s9 + $0x38] ss:$28 sps:$4 sm:$0xff]   ;;  %v7352_v63 = vld [vmem:[%s10640_s9 + $0x4] ss:$28 sps:$4 sm:$0xff]  }
 0x341   :  { %2700 = vmatprep.subr.bf16.mxu1 %v6580_v2  ;;  %v7350_v2 = vld [vmem:[%s10640_s9] ss:$28 sps:$4 sm:$0xff]  }
 0x343   :  { %2660 = vmatpush2.bf16.msra.mxu0 %v6451_v3  ;;  %v7358_v3 = vld [vmem:[%s10640_s9 + $0x34c] ss:$28 sps:$4 sm:$0xff]  }
 0x344   :  { %2701 = vmatpush2.bf16.msra.mxu1 %v6579_v6  ;;  %2661 = vmatprep.subr.bf16.mxu0 %v6444_v7  ;;  %v7356_v6 = vld [vmem:[%s10640_s9 + $0x348] ss:$28 sps:$4 sm:$0xff]   ;;  %v7364_v7 = vld [vmem:[%s10640_s9 + $0x314] ss:$28 sps:$4 sm:$0xff]  }
 0x345   :  { %2702 = vmatprep.subr.bf16.mxu1 %v6572_v12  ;;  %v7362_v12 = vld [vmem:[%s10640_s9 + $0x310] ss:$28 sps:$4 sm:$0xff]  }
 0x347   :  { %2662 = vmatpush2.bf16.msra.mxu0 %v6443_v13  ;;  %v7370_v13 = vld [vmem:[%s10640_s9 + $0x2dc] ss:$28 sps:$4 sm:$0xff]  }
 0x348   :  { %2703 = vmatpush2.bf16.msra.mxu1 %v6571_v14  ;;  %2663 = vmatprep.subr.bf16.mxu0 %v6436_v15  ;;  %v7383_v14 = vld [vmem:[%s10640_s9 + $0x690] ss:$28 sps:$4 sm:$0xff]   ;;  %v7391_v15 = vld [vmem:[%s10640_s9 + $0x65c] ss:$28 sps:$4 sm:$0xff]  }
 0x349   :  { %2704 = vmatprep.subr.bf16.mxu1 %v6564_v16  ;;  %v7368_v16 = vld [vmem:[%s10640_s9 + $0x2d8] ss:$28 sps:$4 sm:$0xff]  }
 0x34b   :  { %2664 = vmatpush2.bf16.msra.mxu0 %v6435_v18  ;;  %v7389_v18 = vld [vmem:[%s10640_s9 + $0x658] ss:$28 sps:$4 sm:$0xff]  }
 0x34c   :  { %2705 = vmatpush2.bf16.msra.mxu1 %v6563_v20  ;;  %5584 = vmatprep.subr.bf16.mxu0 %v7319_v17  ;;  %v7376_v17 = vld [vmem:[%s10640_s9 + $0x2a4] ss:$28 sps:$4 sm:$0xff]  }
 0x34d   :  { %5625 = vmatprep.subr.bf16.mxu1 %v7331_v19  ;;  %v7397_v19 = vld [vmem:[%s10640_s9 + $0x624] ss:$28 sps:$4 sm:$0xff]  }
 0x34e   :  { %2666 = vmatmul.mubr.bf16.vlgmr.msra.gmra.mxu0 %v8556_v38  ;;  %v9155_v28 = vpop.f32.mrf.mxu0  ;;  %v9157_v29 = vpop.f32.mrf.mxu1  ;;  %v7374_v20 = vld [vmem:[%s10640_s9 + $0x2a0] ss:$28 sps:$4 sm:$0xff]  }
 0x34f   :  { %2707 = vmatmul.mubr.bf16.vlgmr.msra.gmra.mxu1 %v8558_v39  ;;  %5585 = vmatpush1.bf16.msra.mxu0 %v7317_v21  ;;  %v7328_v39 = vld [vmem:[%s10640_s9 + $0xe4] ss:$28 sps:$4 sm:$0xff]   ;;  %v7382_v21 = vld [vmem:[%s10640_s9 + $0x26c] ss:$28 sps:$4 sm:$0xff]  }
 0x350   :  { %v2423_v36 = vpop.f32.mrf.mxu0  ;;  %v2464_v32 = vpop.f32.mrf.mxu1  ;;  %5586 = vmatprep.subr.bf16.mxu0 %v7322_v23  ;;  %5626 = vmatpush1.bf16.msra.mxu1 %v7329_v24  ;;  %v7395_v23 = vld [vmem:[%s10640_s9 + $0x620] ss:$28 sps:$4 sm:$0xff]   ;;  %v7403_v24 = vld [vmem:[%s10640_s9 + $0x5ec] ss:$28 sps:$4 sm:$0xff]  }
 0x351   :  { %v2424_v38 = vadd.f32 %v2423_v36, %v1074_v26  ;;  %5627 = vmatprep.subr.bf16.mxu1 %v7337_v25  ;;  %v1070_v25 = vrot.slane %v9138_v22, %v8325_v46  ;;  %v7380_v26 = vld [vmem:[%s10640_s9 + $0x268] ss:$28 sps:$4 sm:$0xff]  }
 0x352   :  { %v2425_v34 = vpop.f32.mrf.mxu0  ;;  %v2466_v35 = vpop.f32.mrf.mxu1 }
 0x353   :  { %v2465_v41 = vadd.f32 %v2464_v32, %v2424_v38  ;;  %5587 = vmatpush1.bf16.msra.mxu0 %v7320_v27  ;;  %v7388_v27 = vld [vmem:[%s10640_s9 + $0x234] ss:$28 sps:$4 sm:$0xff]   ;;  %v2422_v36 = vadd.f32 %v9155_v28, %v1070_v25  ;;  %v7394_v38 = vld [vmem:[%s10640_s9 + $0x1fc] ss:$28 sps:$4 sm:$0xff]   ;;  %v7400_v35 = vld [vmem:[%s10640_s9 + $0x1c4] ss:$28 sps:$4 sm:$0xff]  }
 0x354   :  { %v2426_v42 = vpop.f32.mrf.mxu0  ;;  %v2467_v43 = vpop.f32.mrf.mxu1  ;;  %5588 = vmatprep.subr.bf16.mxu0 %v7325_v30  ;;  %5628 = vmatpush1.bf16.msra.mxu1 %v7335_v31  ;;  %v7401_v30 = vld [vmem:[%s10640_s9 + $0x5e8] ss:$28 sps:$4 sm:$0xff]   ;;  %v7406_v31 = vld [vmem:[%s10640_s9 + $0x5b4] ss:$28 sps:$4 sm:$0xff]   ;;  %v7479_v25 = vld [vmem:[%s10640_s9 + $0xb60] ss:$28 sps:$4 sm:$0xff]  }
 0x355   :  { %v2716_v44 = vmax.f32 %v2465_v41, 0.0  ;;  %5629 = vmatprep.subr.bf16.mxu1 %v7343_v33  ;;  %v7386_v32 = vld [vmem:[%s10640_s9 + $0x230] ss:$28 sps:$4 sm:$0xff]   ;;  %v7409_v33 = vld [vmem:[%s10640_s9 + $0x57c] ss:$28 sps:$4 sm:$0xff]   ;;  %v2463_v28 = vadd.f32 %v9157_v29, %v2422_v36 }
 0x356   :  { %v7392_v34 = vld [vmem:[%s10640_s9 + $0x1f8] ss:$28 sps:$4 sm:$0xff]   ;;  %v7398_v29 = vld [vmem:[%s10640_s9 + $0x1c0] ss:$28 sps:$4 sm:$0xff]   ;;  %v7415_v43 = vld [vmem:[%s10640_s9 + $0x88c] ss:$28 sps:$4 sm:$0xff]  }
 0x357   :  { %v9190_v52 = vpack.c.bf16 %v2716_v44, %v2716_v44  ;;  %5589 = vmatpush1.bf16.msra.mxu0 %v7323_v37  ;;  %v7404_v37 = vld [vmem:[%s10640_s9 + $0x5b0] ss:$28 sps:$4 sm:$0xff]   ;;  %v2715_v41 = vmax.f32 %v2463_v28, 0.0  ;;  %v7410_v42 = vld [vmem:[%s10640_s9 + $0x540] ss:$28 sps:$4 sm:$0xff]  }
 0x358   :  { %5590 = vmatprep.subr.bf16.mxu0 %v7328_v39  ;;  %5630 = vmatpush1.bf16.msra.mxu1 %v7341_v40  ;;  %v7407_v39 = vld [vmem:[%s10640_s9 + $0x578] ss:$28 sps:$4 sm:$0xff]   ;;  %v7412_v40 = vld [vmem:[%s10640_s9 + $0x544] ss:$28 sps:$4 sm:$0xff]   ;;  %v7463_v44 = vld [vmem:[%s10640_s9 + $0xc0c] ss:$28 sps:$4 sm:$0xff]  }
 0x359   :  { %5616 = vmatprep.mubr.bf16.mxu0 %v9190_v52  ;;  %5631 = vmatprep.subr.bf16.mxu1 %v7349_v49  ;;  %v7413_v49 = vld [vmem:[%s10640_s9 + $0x888] ss:$28 sps:$4 sm:$0xff]   ;;  %v7499_v28 = vld [vmem:[%s10640_s9 + $0xabc] ss:$28 sps:$4 sm:$0xff]  }
 0x35a   :  { %v7439_v36 = vld [vmem:[%s10640_s9 + $0xa4c] ss:$28 sps:$4 sm:$0xff]  }
 0x35b   :  { %5591 = vmatpush1.bf16.msra.mxu0 %v7326_v47  ;;  %v1078_v47 = vrot.slane %v9138_v22, %v8528_v9 }
 0x35c   :  { %5592 = vmatprep.subr.bf16.mxu0 %v7334_v50  ;;  %5632 = vmatpush1.bf16.msra.mxu1 %v7347_v51  ;;  %v9349_v50 = vpack.c.bf16 %v2715_v41, %v2715_v41  ;;  %v7418_v51 = vld [vmem:[%s10640_s9 + $0x854] ss:$28 sps:$4 sm:$0xff]   ;;  %v7503_v41 = vld [vmem:[%s10640_s9 + $0xa80] ss:$28 sps:$4 sm:$0xff]  }
 0x35d   :  { %5633 = vmatprep.subr.bf16.mxu1 %v7355_v53  ;;  %v1082_v53 = vrot.slane %v9138_v22, %v8534_v11 }
 0x35f   :  { %5593 = vmatpush1.bf16.msra.mxu0 %v7332_v54  ;;  %v7416_v54 = vld [vmem:[%s10640_s9 + $0x850] ss:$28 sps:$4 sm:$0xff]  }
 0x360   :  { %5594 = vmatprep.subr.bf16.mxu0 %v7340_v55  ;;  %5634 = vmatpush1.bf16.msra.mxu1 %v7353_v56 }
 0x361   :  { %5635 = vmatprep.subr.bf16.mxu1 %v7361_v57  ;;  %v7421_v57 = vld [vmem:[%s10640_s9 + $0x81c] ss:$28 sps:$4 sm:$0xff]  }
 0x363   :  { %5595 = vmatpush1.bf16.msra.mxu0 %v7338_v58 }
 0x364   :  { %5596 = vmatprep.subr.bf16.mxu0 %v7346_v59  ;;  %5636 = vmatpush1.bf16.msra.mxu1 %v7359_v60 }
 0x365   :  { %5637 = vmatprep.subr.bf16.mxu1 %v7367_v61 }
 0x367   :  { %5597 = vmatpush1.bf16.msra.mxu0 %v7344_v62 }
 0x368   :  { %5598 = vmatprep.subr.bf16.mxu0 %v7352_v63  ;;  %5638 = vmatpush1.bf16.msra.mxu1 %v7365_v0  ;;  %v7419_v0 = vld [vmem:[%s10640_s9 + $0x818] ss:$28 sps:$4 sm:$0xff]  }
 0x369   :  { %5639 = vmatprep.subr.bf16.mxu1 %v7373_v1  ;;  %v7424_v1 = vld [vmem:[%s10640_s9 + $0x7e4] ss:$28 sps:$4 sm:$0xff]  }
 0x36b   :  { %5599 = vmatpush1.bf16.msra.mxu0 %v7350_v2 }
 0x36c   :  { %5600 = vmatprep.subr.bf16.mxu0 %v7358_v3  ;;  %5640 = vmatpush1.bf16.msra.mxu1 %v7371_v4 }
 0x36d   :  { %5641 = vmatprep.subr.bf16.mxu1 %v7379_v5 }
 0x36f   :  { %5601 = vmatpush2.bf16.msra.mxu0 %v7356_v6 }
 0x370   :  { %5602 = vmatprep.subr.bf16.mxu0 %v7364_v7  ;;  %5642 = vmatpush2.bf16.msra.mxu1 %v7377_v8  ;;  %v7422_v7 = vld [vmem:[%s10640_s9 + $0x7e0] ss:$28 sps:$4 sm:$0xff]   ;;  %v7427_v8 = vld [vmem:[%s10640_s9 + $0x7ac] ss:$28 sps:$4 sm:$0xff]  }
 0x371   :  { %5643 = vmatprep.subr.bf16.mxu1 %v7385_v10  ;;  %v7461_v10 = vld [vmem:[%s10640_s9 + $0xc08] ss:$28 sps:$4 sm:$0xff]  }
 0x373   :  { %5603 = vmatpush2.bf16.msra.mxu0 %v7362_v12  ;;  %v7469_v12 = vld [vmem:[%s10640_s9 + $0xbd4] ss:$28 sps:$4 sm:$0xff]  }
 0x374   :  { %5604 = vmatprep.subr.bf16.mxu0 %v7370_v13  ;;  %5644 = vmatpush2.bf16.msra.mxu1 %v7383_v14 }
 0x375   :  { %5645 = vmatprep.subr.bf16.mxu1 %v7391_v15  ;;  %v7425_v15 = vld [vmem:[%s10640_s9 + $0x7a8] ss:$28 sps:$4 sm:$0xff]  }
 0x377   :  { %5605 = vmatpush2.bf16.msra.mxu0 %v7368_v16  ;;  %v7467_v16 = vld [vmem:[%s10640_s9 + $0xbd0] ss:$28 sps:$4 sm:$0xff]  }
 0x378   :  { %5606 = vmatprep.subr.bf16.mxu0 %v7376_v17  ;;  %5646 = vmatpush2.bf16.msra.mxu1 %v7389_v18  ;;  %v7430_v17 = vld [vmem:[%s10640_s9 + $0x774] ss:$28 sps:$4 sm:$0xff]   ;;  %v7475_v18 = vld [vmem:[%s10640_s9 + $0xb9c] ss:$28 sps:$4 sm:$0xff]  }
 0x379   :  { %5647 = vmatprep.subr.bf16.mxu1 %v7397_v19  ;;  %v7428_v19 = vld [vmem:[%s10640_s9 + $0x770] ss:$28 sps:$4 sm:$0xff]  }
 0x37b   :  { %5607 = vmatpush2.bf16.msra.mxu0 %v7374_v20  ;;  %v7473_v20 = vld [vmem:[%s10640_s9 + $0xb98] ss:$28 sps:$4 sm:$0xff]  }
 0x37c   :  { %5608 = vmatprep.subr.bf16.mxu0 %v7382_v21  ;;  %5648 = vmatpush2.bf16.msra.mxu1 %v7395_v23  ;;  %v7433_v21 = vld [vmem:[%s10640_s9 + $0x73c] ss:$28 sps:$4 sm:$0xff]   ;;  %v7481_v23 = vld [vmem:[%s10640_s9 + $0xb64] ss:$28 sps:$4 sm:$0xff]  }
 0x37d   :  { %5649 = vmatprep.subr.bf16.mxu1 %v7403_v24  ;;  %v7431_v24 = vld [vmem:[%s10640_s9 + $0x738] ss:$28 sps:$4 sm:$0xff]  }
 0x37f   :  { %5609 = vmatpush2.bf16.msra.mxu0 %v7380_v26  ;;  %v7436_v26 = vld [vmem:[%s10640_s9 + $0x704] ss:$28 sps:$4 sm:$0xff]  }
 0x380   :  { %5610 = vmatprep.subr.bf16.mxu0 %v7388_v27  ;;  %5650 = vmatpush2.bf16.msra.mxu1 %v7401_v30  ;;  %v7487_v27 = vld [vmem:[%s10640_s9 + $0xb2c] ss:$28 sps:$4 sm:$0xff]   ;;  %v7434_v30 = vld [vmem:[%s10640_s9 + $0x700] ss:$28 sps:$4 sm:$0xff]  }
 0x381   :  { %5651 = vmatprep.subr.bf16.mxu1 %v7406_v31  ;;  %v7485_v31 = vld [vmem:[%s10640_s9 + $0xb28] ss:$28 sps:$4 sm:$0xff]  }
 0x383   :  { %5611 = vmatpush2.bf16.msra.mxu0 %v7386_v32  ;;  %v7493_v32 = vld [vmem:[%s10640_s9 + $0xaf4] ss:$28 sps:$4 sm:$0xff]  }
 0x384   :  { %5612 = vmatprep.subr.bf16.mxu0 %v7394_v38  ;;  %5652 = vmatpush2.bf16.msra.mxu1 %v7404_v37  ;;  %v7437_v38 = vld [vmem:[%s10640_s9 + $0xa48] ss:$28 sps:$4 sm:$0xff]   ;;  %v7491_v37 = vld [vmem:[%s10640_s9 + $0xaf0] ss:$28 sps:$4 sm:$0xff]  }
 0x385   :  { %5653 = vmatprep.subr.bf16.mxu1 %v7409_v33  ;;  %v7442_v33 = vld [vmem:[%s10640_s9 + $0xa14] ss:$28 sps:$4 sm:$0xff]  }
 0x387   :  { %5613 = vmatpush2.bf16.msra.mxu0 %v7392_v34  ;;  %v7440_v34 = vld [vmem:[%s10640_s9 + $0xa10] ss:$28 sps:$4 sm:$0xff]  }
 0x388   :  { %5614 = vmatprep.subr.bf16.mxu0 %v7400_v35  ;;  %5654 = vmatpush2.bf16.msra.mxu1 %v7407_v39  ;;  %v7497_v35 = vld [vmem:[%s10640_s9 + $0xab8] ss:$28 sps:$4 sm:$0xff]  }
 0x389   :  { %5655 = vmatprep.subr.bf16.mxu1 %v7412_v40  ;;  %v7445_v39 = vld [vmem:[%s10640_s9 + $0x9dc] ss:$28 sps:$4 sm:$0xff]   ;;  %v7505_v40 = vld [vmem:[%s10640_s9 + $0xa84] ss:$28 sps:$4 sm:$0xff]  }
 0x38b   :  { %5615 = vmatpush2.bf16.msra.mxu0 %v7398_v29  ;;  %v7443_v29 = vld [vmem:[%s10640_s9 + $0x9d8] ss:$28 sps:$4 sm:$0xff]  }
 0x38c   :  { %5656 = vmatpush2.bf16.msra.mxu1 %v7410_v42  ;;  %5666 = vmatprep.subr.bf16.mxu0 %v7415_v43  ;;  %v7448_v42 = vld [vmem:[%s10640_s9 + $0x9a4] ss:$28 sps:$4 sm:$0xff]   ;;  %v7511_v43 = vld [vmem:[%s10640_s9 + $0xdcc] ss:$28 sps:$4 sm:$0xff]  }
 0x38d   :  { %5707 = vmatprep.subr.bf16.mxu1 %v7463_v44  ;;  %v7446_v44 = vld [vmem:[%s10640_s9 + $0x9a0] ss:$28 sps:$4 sm:$0xff]  }
 0x38e   :  { %v2503_v55 = vpop.f32.mrf.mxu0  ;;  %v2544_v56 = vpop.f32.mrf.mxu1  ;;  %5617 = vmatmul.mubr.bf16.vlgmr.msra.gmra.mxu0 %v9349_v50 }
 0x38f   :  { %v2504_v58 = vadd.f32 %v2503_v55, %v1078_v47  ;;  %5667 = vmatpush1.bf16.msra.mxu0 %v7413_v49  ;;  %v7509_v47 = vld [vmem:[%s10640_s9 + $0xdc8] ss:$28 sps:$4 sm:$0xff]   ;;  %v7454_v55 = vld [vmem:[%s10640_s9 + $0x934] ss:$28 sps:$4 sm:$0xff]  }
 0x390   :  { %v2505_v59 = vpop.f32.mrf.mxu0  ;;  %v2546_v60 = vpop.f32.mrf.mxu1  ;;  %5668 = vmatprep.subr.bf16.mxu0 %v7418_v51  ;;  %v7451_v49 = vld [vmem:[%s10640_s9 + $0x96c] ss:$28 sps:$4 sm:$0xff]   ;;  %v7517_v51 = vld [vmem:[%s10640_s9 + $0xd94] ss:$28 sps:$4 sm:$0xff]  }
 0x391   :  { %v2545_v61 = vadd.f32 %v2544_v56, %v2504_v58  ;;  %v2506_v22 = vadd.f32 %v2505_v59, %v1082_v53  ;;  %v7449_v53 = vld [vmem:[%s10640_s9 + $0x968] ss:$28 sps:$4 sm:$0xff]   ;;  %v7523_v56 = vld [vmem:[%s10640_s9 + $0xd5c] ss:$28 sps:$4 sm:$0xff]  }
 0x392   :  { %v2507_v62 = vpop.f32.mrf.mxu0  ;;  %v2548_v63 = vpop.f32.mrf.mxu1  ;;  %v7521_v58 = vld [vmem:[%s10640_s9 + $0xd58] ss:$28 sps:$4 sm:$0xff]  }
 0x393   :  { %v2547_v2 = vadd.f32 %v2546_v60, %v2506_v22  ;;  %5669 = vmatpush1.bf16.msra.mxu0 %v7416_v54  ;;  %v2717_v3 = vmax.f32 %v2545_v61, 0.0  ;;  %v7515_v54 = vld [vmem:[%s10640_s9 + $0xd90] ss:$28 sps:$4 sm:$0xff]   ;;  %v7457_v59 = vld [vmem:[%s10640_s9 + $0x8fc] ss:$28 sps:$4 sm:$0xff]  }
 0x394   :  { %v2508_v4 = vpop.f32.mrf.mxu0  ;;  %v2549_v5 = vpop.f32.mrf.mxu1  ;;  %5670 = vmatprep.subr.bf16.mxu0 %v7421_v57  ;;  %v7452_v57 = vld [vmem:[%s10640_s9 + $0x930] ss:$28 sps:$4 sm:$0xff]   ;;  %v7529_v60 = vld [vmem:[%s10640_s9 + $0xd24] ss:$28 sps:$4 sm:$0xff]   ;;  %v7455_v61 = vld [vmem:[%s10640_s9 + $0x8f8] ss:$28 sps:$4 sm:$0xff]  }
 0x395   :  { %v2718_v6 = vmax.f32 %v2547_v2, 0.0  ;;  %v9383_v14 = vpack.c.bf16 %v2717_v3, %v2717_v3  ;;  %v7527_v22 = vld [vmem:[%s10640_s9 + $0xd20] ss:$28 sps:$4 sm:$0xff]   ;;  %v7535_v63 = vld [vmem:[%s10640_s9 + $0xcec] ss:$28 sps:$4 sm:$0xff]   ;;  %v1089_v5 = vsub.s32 5, %v8322_v45 }
 0x396   :  { %v7460_v62 = vld [vmem:[%s10640_s9 + $0x8c4] ss:$28 sps:$4 sm:$0xff]   ;;  %v7466_v3 = vld [vmem:[%s10640_s9 + $0x194] ss:$28 sps:$4 sm:$0xff]  }
 0x397   :  { %v9381_v13 = vpack.c.bf16 %v2718_v6, %v2718_v6  ;;  %5671 = vmatpush1.bf16.msra.mxu0 %v7419_v0  ;;  %v1085_v0 = vsub.s32 4, %v8322_v45  ;;  %v7533_v2 = vld [vmem:[%s10640_s9 + $0xce8] ss:$28 sps:$4 sm:$0xff]   ;;  %v7541_v4 = vld [vmem:[%s10640_s9 + $0xcb4] ss:$28 sps:$4 sm:$0xff]  }
 0x398   :  { %5672 = vmatprep.subr.bf16.mxu0 %v7424_v1  ;;  %v7458_v1 = vld [vmem:[%s10640_s9 + $0x8c0] ss:$28 sps:$4 sm:$0xff]  }
 0x399   :  { %5657 = vmatprep.mubr.bf16.mxu1 %v9381_v13  ;;  %v9536_v6 = vld [vmem:[%s10641_s8] sm:$0xff] }
 0x39a   :  { %5658 = vmatmul.mubr.bf16.vlgmr.msra.gmra.mxu1 %v9383_v14 }
 0x39b   :  { %5673 = vmatpush1.bf16.msra.mxu0 %v7422_v7  ;;  %5708 = vmatpush1.bf16.msra.mxu1 %v7461_v10  ;;  %v1086_v7 = vrot.slane %v9536_v6, %v1085_v0  ;;  %v7547_v10 = vld [vmem:[%s10640_s9 + $0xc7c] ss:$28 sps:$4 sm:$0xff]  }
 0x39c   :  { %5674 = vmatprep.subr.bf16.mxu0 %v7427_v8  ;;  %5709 = vmatprep.subr.bf16.mxu1 %v7469_v12  ;;  %v7539_v8 = vld [vmem:[%s10640_s9 + $0xcb0] ss:$28 sps:$4 sm:$0xff]   ;;  %v1090_v12 = vrot.slane %v9536_v6, %v1089_v5 }
 0x39f   :  { %5675 = vmatpush1.bf16.msra.mxu0 %v7425_v15  ;;  %5710 = vmatpush1.bf16.msra.mxu1 %v7467_v16 }
 0x3a0   :  { %5676 = vmatprep.subr.bf16.mxu0 %v7430_v17  ;;  %5711 = vmatprep.subr.bf16.mxu1 %v7475_v18  ;;  %v7545_v18 = vld [vmem:[%s10640_s9 + $0xc78] ss:$28 sps:$4 sm:$0xff]  }
 0x3a3   :  { %5677 = vmatpush1.bf16.msra.mxu0 %v7428_v19  ;;  %5712 = vmatpush1.bf16.msra.mxu1 %v7473_v20  ;;  %v7553_v20 = vld [vmem:[%s10640_s9 + $0xc44] ss:$28 sps:$4 sm:$0xff]  }
 0x3a4   :  { %5678 = vmatprep.subr.bf16.mxu0 %v7433_v21  ;;  %5713 = vmatprep.subr.bf16.mxu1 %v7481_v23 }
 0x3a7   :  { %5679 = vmatpush1.bf16.msra.mxu0 %v7431_v24  ;;  %5714 = vmatpush1.bf16.msra.mxu1 %v7479_v25 }
 0x3a8   :  { %5680 = vmatprep.subr.bf16.mxu0 %v7436_v26  ;;  %5715 = vmatprep.subr.bf16.mxu1 %v7487_v27 }
 0x3ab   :  { %5681 = vmatpush1.bf16.msra.mxu0 %v7434_v30  ;;  %5716 = vmatpush1.bf16.msra.mxu1 %v7485_v31  ;;  %v7551_v30 = vld [vmem:[%s10640_s9 + $0xc40] ss:$28 sps:$4 sm:$0xff]  }
 0x3ac   :  { %5682 = vmatprep.subr.bf16.mxu0 %v7439_v36  ;;  %5717 = vmatprep.subr.bf16.mxu1 %v7493_v32  ;;  %v7559_v32 = vld [vmem:[%s10640_s9 + $0x514] ss:$28 sps:$4 sm:$0xff]  }
 0x3af   :  { %5683 = vmatpush2.bf16.msra.mxu0 %v7437_v38  ;;  %5718 = vmatpush1.bf16.msra.mxu1 %v7491_v37 }
 0x3b0   :  { %5684 = vmatprep.subr.bf16.mxu0 %v7442_v33  ;;  %5719 = vmatprep.subr.bf16.mxu1 %v7499_v28  ;;  %v7464_v28 = vld [vmem:[%s10640_s9 + $0x190] ss:$28 sps:$4 sm:$0xff]  }
 0x3b3   :  { %5685 = vmatpush2.bf16.msra.mxu0 %v7440_v34  ;;  %5720 = vmatpush1.bf16.msra.mxu1 %v7497_v35  ;;  %v7472_v35 = vld [vmem:[%s10640_s9 + $0x15c] ss:$28 sps:$4 sm:$0xff]  }
 0x3b4   :  { %5686 = vmatprep.subr.bf16.mxu0 %v7445_v39  ;;  %5721 = vmatprep.subr.bf16.mxu1 %v7505_v40  ;;  %v7470_v39 = vld [vmem:[%s10640_s9 + $0x158] ss:$28 sps:$4 sm:$0xff]   ;;  %v7478_v40 = vld [vmem:[%s10640_s9 + $0x124] ss:$28 sps:$4 sm:$0xff]  }
 0x3b7   :  { %5687 = vmatpush2.bf16.msra.mxu0 %v7443_v29  ;;  %5722 = vmatpush1.bf16.msra.mxu1 %v7503_v41  ;;  %v7476_v29 = vld [vmem:[%s10640_s9 + $0x120] ss:$28 sps:$4 sm:$0xff]   ;;  %v7484_v41 = vld [vmem:[%s10640_s9 + $0xec] ss:$28 sps:$4 sm:$0xff]  }
 0x3b8   :  { %5688 = vmatprep.subr.bf16.mxu0 %v7448_v42  ;;  %5723 = vmatprep.subr.bf16.mxu1 %v7511_v43  ;;  %v7482_v42 = vld [vmem:[%s10640_s9 + $0xe8] ss:$28 sps:$4 sm:$0xff]   ;;  %v7490_v43 = vld [vmem:[%s10640_s9 + $0xb4] ss:$28 sps:$4 sm:$0xff]  }
 0x3bb   :  { %5689 = vmatpush2.bf16.msra.mxu0 %v7446_v44  ;;  %5724 = vmatpush2.bf16.msra.mxu1 %v7509_v47  ;;  %v7488_v44 = vld [vmem:[%s10640_s9 + $0xb0] ss:$28 sps:$4 sm:$0xff]   ;;  %v7496_v47 = vld [vmem:[%s10640_s9 + $0x7c] ss:$28 sps:$4 sm:$0xff]  }
 0x3bc   :  { %5690 = vmatprep.subr.bf16.mxu0 %v7451_v49  ;;  %5725 = vmatprep.subr.bf16.mxu1 %v7517_v51  ;;  %v7494_v49 = vld [vmem:[%s10640_s9 + $0x78] ss:$28 sps:$4 sm:$0xff]   ;;  %v7502_v51 = vld [vmem:[%s10640_s9 + $0x44] ss:$28 sps:$4 sm:$0xff]  }
 0x3bf   :  { %5691 = vmatpush2.bf16.msra.mxu0 %v7449_v53  ;;  %5726 = vmatpush2.bf16.msra.mxu1 %v7515_v54  ;;  %v7500_v53 = vld [vmem:[%s10640_s9 + $0x40] ss:$28 sps:$4 sm:$0xff]   ;;  %v7508_v54 = vld [vmem:[%s10640_s9 + $0xc] ss:$28 sps:$4 sm:$0xff]  }
 0x3c0   :  { %5692 = vmatprep.subr.bf16.mxu0 %v7454_v55  ;;  %5727 = vmatprep.subr.bf16.mxu1 %v7523_v56  ;;  %v7506_v55 = vld [vmem:[%s10640_s9 + $0x8] ss:$28 sps:$4 sm:$0xff]   ;;  %v7514_v56 = vld [vmem:[%s10640_s9 + $0x354] ss:$28 sps:$4 sm:$0xff]  }
 0x3c3   :  { %5693 = vmatpush2.bf16.msra.mxu0 %v7452_v57  ;;  %5728 = vmatpush2.bf16.msra.mxu1 %v7521_v58  ;;  %v7512_v57 = vld [vmem:[%s10640_s9 + $0x350] ss:$28 sps:$4 sm:$0xff]   ;;  %v7520_v58 = vld [vmem:[%s10640_s9 + $0x31c] ss:$28 sps:$4 sm:$0xff]  }
 0x3c4   :  { %5694 = vmatprep.subr.bf16.mxu0 %v7457_v59  ;;  %5729 = vmatprep.subr.bf16.mxu1 %v7529_v60  ;;  %v7518_v59 = vld [vmem:[%s10640_s9 + $0x318] ss:$28 sps:$4 sm:$0xff]   ;;  %v7526_v60 = vld [vmem:[%s10640_s9 + $0x2e4] ss:$28 sps:$4 sm:$0xff]  }
 0x3c7   :  { %5695 = vmatpush2.bf16.msra.mxu0 %v7455_v61  ;;  %5730 = vmatpush2.bf16.msra.mxu1 %v7527_v22  ;;  %v7524_v61 = vld [vmem:[%s10640_s9 + $0x2e0] ss:$28 sps:$4 sm:$0xff]   ;;  %v7532_v22 = vld [vmem:[%s10640_s9 + $0x2ac] ss:$28 sps:$4 sm:$0xff]  }
 0x3c8   :  { %5696 = vmatprep.subr.bf16.mxu0 %v7460_v62  ;;  %5731 = vmatprep.subr.bf16.mxu1 %v7535_v63  ;;  %v7530_v62 = vld [vmem:[%s10640_s9 + $0x2a8] ss:$28 sps:$4 sm:$0xff]   ;;  %v7538_v63 = vld [vmem:[%s10640_s9 + $0x274] ss:$28 sps:$4 sm:$0xff]  }
 0x3cb   :  { %5697 = vmatpush2.bf16.msra.mxu0 %v7458_v1  ;;  %5732 = vmatpush2.bf16.msra.mxu1 %v7533_v2  ;;  %v7536_v1 = vld [vmem:[%s10640_s9 + $0x270] ss:$28 sps:$4 sm:$0xff]   ;;  %v1093_v2 = vsub.s32 6, %v8322_v45 }
 0x3cc   :  { %5748 = vmatprep.subr.bf16.mxu0 %v7466_v3  ;;  %5733 = vmatprep.subr.bf16.mxu1 %v7541_v4  ;;  %v7544_v3 = vld [vmem:[%s10640_s9 + $0x23c] ss:$28 sps:$4 sm:$0xff]   ;;  %v1097_v4 = vsub.s32 7, %v8322_v45 }
 0x3ce   :  { %v2585_v15 = vpop.f32.mrf.mxu0 }
 0x3cf   :  { %v2586_v16 = vadd.f32 %v2585_v15, %v1086_v7  ;;  %v2626_v17 = vpop.f32.mrf.mxu1  ;;  %5734 = vmatpush2.bf16.msra.mxu1 %v7539_v8  ;;  %v7542_v7 = vld [vmem:[%s10640_s9 + $0x238] ss:$28 sps:$4 sm:$0xff]   ;;  %v1094_v8 = vrot.slane %v9536_v6, %v1093_v2 }
 0x3d0   :  { %v2587_v19 = vpop.f32.mrf.mxu0  ;;  %5735 = vmatprep.subr.bf16.mxu1 %v7547_v10  ;;  %v7550_v10 = vld [vmem:[%s10640_s9 + $0x204] ss:$28 sps:$4 sm:$0xff]  }
 0x3d1   :  { %v2627_v21 = vadd.f32 %v2626_v17, %v2586_v16  ;;  %v2588_v23 = vadd.f32 %v2587_v19, %v1090_v12  ;;  %v2628_v24 = vpop.f32.mrf.mxu1  ;;  %v1098_v12 = vrot.slane %v9536_v6, %v1097_v4  ;;  %v7596_v4 = vld [vmem:[%s10640_s9 + $0x740] ss:$28 sps:$4 sm:$0xff]  }
 0x3d2   :  { %v2589_v25 = vpop.f32.mrf.mxu0 }
 0x3d3   :  { %v2629_v26 = vadd.f32 %v2628_v24, %v2588_v23  ;;  %v2630_v27 = vpop.f32.mrf.mxu1  ;;  %5736 = vmatpush2.bf16.msra.mxu1 %v7545_v18  ;;  %v2719_v31 = vmax.f32 %v2627_v21, 0.0  ;;  %v7548_v18 = vld [vmem:[%s10640_s9 + $0x200] ss:$28 sps:$4 sm:$0xff]  }
 0x3d4   :  { %v2590_v36 = vpop.f32.mrf.mxu0  ;;  %5737 = vmatprep.subr.bf16.mxu1 %v7553_v20  ;;  %v7556_v20 = vld [vmem:[%s10640_s9 + $0x1cc] ss:$28 sps:$4 sm:$0xff]  }
 0x3d5   :  { %v2720_v38 = vmax.f32 %v2629_v26, 0.0  ;;  %v2631_v37 = vpop.f32.mrf.mxu1  ;;  %v9567_v34 = vpack.c.bf16 %v2719_v31, %v2719_v31  ;;  %v7554_v27 = vld [vmem:[%s10640_s9 + $0x1c8] ss:$28 sps:$4 sm:$0xff]   ;;  %v7562_v36 = vld [vmem:[%s10640_s9 + $0x894] ss:$28 sps:$4 sm:$0xff]  }
 0x3d7   :  { %v9562_v33 = vpack.c.bf16 %v2720_v38, %v2720_v38  ;;  %5738 = vmatpush2.bf16.msra.mxu1 %v7551_v30 }
 0x3d8   :  { %5789 = vmatprep.subr.bf16.mxu1 %v7559_v32 }
 0x3d9   :  { %5698 = vmatprep.mubr.bf16.mxu0 %v9562_v33 }
 0x3da   :  { %5699 = vmatmul.mubr.bf16.vlgmr.msra.gmra.mxu0 %v9567_v34 }
 0x3db   :  { %5749 = vmatpush1.bf16.msra.mxu0 %v7464_v28  ;;  %5780 = vmatprep.mubr.bf16.mxu0 %v9190_v52  ;;  %v7557_v28 = vld [vmem:[%s10640_s9 + $0x510] ss:$28 sps:$4 sm:$0xff]  }
 0x3dc   :  { %5750 = vmatprep.subr.bf16.mxu0 %v7472_v35  ;;  %v7560_v35 = vld [vmem:[%s10640_s9 + $0x890] ss:$28 sps:$4 sm:$0xff]  }
 0x3df   :  { %5751 = vmatpush1.bf16.msra.mxu0 %v7470_v39 }
 0x3e0   :  { %5752 = vmatprep.subr.bf16.mxu0 %v7478_v40  ;;  %v7565_v40 = vld [vmem:[%s10640_s9 + $0x4dc] ss:$28 sps:$4 sm:$0xff]  }
 0x3e3   :  { %5753 = vmatpush1.bf16.msra.mxu0 %v7476_v29  ;;  %v7568_v29 = vld [vmem:[%s10640_s9 + $0x85c] ss:$28 sps:$4 sm:$0xff]  }
 0x3e4   :  { %5754 = vmatprep.subr.bf16.mxu0 %v7484_v41  ;;  %v7563_v41 = vld [vmem:[%s10640_s9 + $0x4d8] ss:$28 sps:$4 sm:$0xff]  }
 0x3e7   :  { %5755 = vmatpush1.bf16.msra.mxu0 %v7482_v42  ;;  %v7566_v42 = vld [vmem:[%s10640_s9 + $0x858] ss:$28 sps:$4 sm:$0xff]  }
 0x3e8   :  { %5756 = vmatprep.subr.bf16.mxu0 %v7490_v43  ;;  %v7571_v43 = vld [vmem:[%s10640_s9 + $0x4a4] ss:$28 sps:$4 sm:$0xff]  }
 0x3eb   :  { %5757 = vmatpush1.bf16.msra.mxu0 %v7488_v44  ;;  %v7574_v44 = vld [vmem:[%s10640_s9 + $0x824] ss:$28 sps:$4 sm:$0xff]  }
 0x3ec   :  { %5758 = vmatprep.subr.bf16.mxu0 %v7496_v47  ;;  %v7569_v47 = vld [vmem:[%s10640_s9 + $0x4a0] ss:$28 sps:$4 sm:$0xff]  }
 0x3ef   :  { %5759 = vmatpush1.bf16.msra.mxu0 %v7494_v49  ;;  %v7572_v49 = vld [vmem:[%s10640_s9 + $0x820] ss:$28 sps:$4 sm:$0xff]  }
 0x3f0   :  { %5760 = vmatprep.subr.bf16.mxu0 %v7502_v51  ;;  %v7577_v51 = vld [vmem:[%s10640_s9 + $0x46c] ss:$28 sps:$4 sm:$0xff]  }
 0x3f3   :  { %5761 = vmatpush1.bf16.msra.mxu0 %v7500_v53  ;;  %v7580_v53 = vld [vmem:[%s10640_s9 + $0x7ec] ss:$28 sps:$4 sm:$0xff]  }
 0x3f4   :  { %5762 = vmatprep.subr.bf16.mxu0 %v7508_v54  ;;  %v7575_v54 = vld [vmem:[%s10640_s9 + $0x468] ss:$28 sps:$4 sm:$0xff]  }
 0x3f7   :  { %5763 = vmatpush1.bf16.msra.mxu0 %v7506_v55  ;;  %v7578_v55 = vld [vmem:[%s10640_s9 + $0x7e8] ss:$28 sps:$4 sm:$0xff]  }
 0x3f8   :  { %5764 = vmatprep.subr.bf16.mxu0 %v7514_v56  ;;  %v7583_v56 = vld [vmem:[%s10640_s9 + $0x434] ss:$28 sps:$4 sm:$0xff]  }
 0x3fb   :  { %5765 = vmatpush2.bf16.msra.mxu0 %v7512_v57  ;;  %v7586_v57 = vld [vmem:[%s10640_s9 + $0x7b4] ss:$28 sps:$4 sm:$0xff]  }
 0x3fc   :  { %5766 = vmatprep.subr.bf16.mxu0 %v7520_v58  ;;  %v7581_v58 = vld [vmem:[%s10640_s9 + $0x430] ss:$28 sps:$4 sm:$0xff]  }
 0x3ff   :  { %5767 = vmatpush2.bf16.msra.mxu0 %v7518_v59  ;;  %v7584_v59 = vld [vmem:[%s10640_s9 + $0x7b0] ss:$28 sps:$4 sm:$0xff]  }
 0x400   :  { %5768 = vmatprep.subr.bf16.mxu0 %v7526_v60  ;;  %v7589_v60 = vld [vmem:[%s10640_s9 + $0x3fc] ss:$28 sps:$4 sm:$0xff]  }
 0x403   :  { %5769 = vmatpush2.bf16.msra.mxu0 %v7524_v61  ;;  %v7592_v61 = vld [vmem:[%s10640_s9 + $0x77c] ss:$28 sps:$4 sm:$0xff]  }
 0x404   :  { %5770 = vmatprep.subr.bf16.mxu0 %v7532_v22  ;;  %v7587_v22 = vld [vmem:[%s10640_s9 + $0x3f8] ss:$28 sps:$4 sm:$0xff]  }
 0x407   :  { %5771 = vmatpush2.bf16.msra.mxu0 %v7530_v62  ;;  %v7590_v62 = vld [vmem:[%s10640_s9 + $0x778] ss:$28 sps:$4 sm:$0xff]  }
 0x408   :  { %5772 = vmatprep.subr.bf16.mxu0 %v7538_v63  ;;  %v7595_v63 = vld [vmem:[%s10640_s9 + $0x3c4] ss:$28 sps:$4 sm:$0xff]  }
 0x40b   :  { %5773 = vmatpush2.bf16.msra.mxu0 %v7536_v1  ;;  %v7598_v1 = vld [vmem:[%s10640_s9 + $0x744] ss:$28 sps:$4 sm:$0xff]  }
 0x40c   :  { %5774 = vmatprep.subr.bf16.mxu0 %v7544_v3  ;;  %v7593_v3 = vld [vmem:[%s10640_s9 + $0x3c0] ss:$28 sps:$4 sm:$0xff]  }
 0x40e   :  { %v2667_v15 = vpop.f32.mrf.mxu0 }
 0x40f   :  { %v2668_v16 = vadd.f32 %v2667_v15, %v1094_v8  ;;  %v2708_v17 = vpop.f32.mrf.mxu1  ;;  %5775 = vmatpush2.bf16.msra.mxu0 %v7542_v7  ;;  %v7601_v7 = vld [vmem:[%s10640_s9 + $0x38c] ss:$28 sps:$4 sm:$0xff]   ;;  %v7607_v15 = vld [vmem:[%s10640_s9 + $0x6d4] ss:$28 sps:$4 sm:$0xff]  }
 0x410   :  { %v2669_v19 = vpop.f32.mrf.mxu0  ;;  %5776 = vmatprep.subr.bf16.mxu0 %v7550_v10  ;;  %v7604_v8 = vld [vmem:[%s10640_s9 + $0x70c] ss:$28 sps:$4 sm:$0xff]  }
 0x411   :  { %v2709_v21 = vadd.f32 %v2708_v17, %v2668_v16  ;;  %v2670_v23 = vadd.f32 %v2669_v19, %v1098_v12  ;;  %v2710_v24 = vpop.f32.mrf.mxu1  ;;  %v7599_v10 = vld [vmem:[%s10640_s9 + $0x388] ss:$28 sps:$4 sm:$0xff]   ;;  %v7610_v16 = vld [vmem:[%s10640_s9 + $0xa54] ss:$28 sps:$4 sm:$0xff]   ;;  %v7613_v19 = vld [vmem:[%s10640_s9 + $0x69c] ss:$28 sps:$4 sm:$0xff]  }
 0x412   :  { %v2671_v25 = vpop.f32.mrf.mxu0  ;;  %v7602_v12 = vld [vmem:[%s10640_s9 + $0x708] ss:$28 sps:$4 sm:$0xff]   ;;  %v7605_v17 = vld [vmem:[%s10640_s9 + $0x6d0] ss:$28 sps:$4 sm:$0xff]  }
 0x413   :  { %v2711_v26 = vadd.f32 %v2710_v24, %v2670_v23  ;;  %v2712_v6 = vpop.f32.mrf.mxu1  ;;  %5777 = vmatpush2.bf16.msra.mxu0 %v7548_v18  ;;  %v2721_v30 = vmax.f32 %v2709_v21, 0.0  ;;  %v7608_v18 = vld [vmem:[%s10640_s9 + $0xa50] ss:$28 sps:$4 sm:$0xff]   ;;  %v7611_v21 = vld [vmem:[%s10640_s9 + $0x698] ss:$28 sps:$4 sm:$0xff]  }
 0x414   :  { %v2672_v31 = vpop.f32.mrf.mxu0  ;;  %5778 = vmatprep.subr.bf16.mxu0 %v7556_v20  ;;  %v7616_v20 = vld [vmem:[%s10640_s9 + $0xa1c] ss:$28 sps:$4 sm:$0xff]   ;;  %v7619_v24 = vld [vmem:[%s10640_s9 + $0x664] ss:$28 sps:$4 sm:$0xff]  }
 0x415   :  { %v2722_v32 = vmax.f32 %v2711_v26, 0.0  ;;  %v2713_v38 = vpop.f32.mrf.mxu1  ;;  %v9679_v39 = vpack.c.bf16 %v2721_v30, %v2721_v30  ;;  %v7614_v23 = vld [vmem:[%s10640_s9 + $0xa18] ss:$28 sps:$4 sm:$0xff]   ;;  %v7622_v25 = vld [vmem:[%s10640_s9 + $0x9e4] ss:$28 sps:$4 sm:$0xff]  }
 0x416   :  { %v7617_v26 = vld [vmem:[%s10640_s9 + $0x660] ss:$28 sps:$4 sm:$0xff]   ;;  %v7628_v30 = vld [vmem:[%s10640_s9 + $0x9ac] ss:$28 sps:$4 sm:$0xff]   ;;  %v7634_v38 = vld [vmem:[%s10640_s9 + $0x974] ss:$28 sps:$4 sm:$0xff]  }
 0x417   :  { %v9671_v37 = vpack.c.bf16 %v2722_v32, %v2722_v32  ;;  %5779 = vmatpush2.bf16.msra.mxu0 %v7554_v27  ;;  %v7620_v6 = vld [vmem:[%s10640_s9 + $0x9e0] ss:$28 sps:$4 sm:$0xff]   ;;  %v7625_v27 = vld [vmem:[%s10640_s9 + $0x62c] ss:$28 sps:$4 sm:$0xff]   ;;  %v7631_v32 = vld [vmem:[%s10640_s9 + $0x5f4] ss:$28 sps:$4 sm:$0xff]  }
 0x418   :  { %5830 = vmatprep.subr.bf16.mxu0 %v7562_v36  ;;  %v7623_v31 = vld [vmem:[%s10640_s9 + $0x628] ss:$28 sps:$4 sm:$0xff]  }
 0x419   :  { %5739 = vmatprep.mubr.bf16.mxu1 %v9671_v37  ;;  %v7626_v36 = vld [vmem:[%s10640_s9 + $0x9a8] ss:$28 sps:$4 sm:$0xff]  }
 0x41a   :  { %5781 = vmatmul.mubr.bf16.vlgmr.msra.gmra.mxu0 %v9349_v50  ;;  %5740 = vmatmul.mubr.bf16.vlgmr.msra.gmra.mxu1 %v9679_v39 }
 0x41b   :  { %5790 = vmatpush1.bf16.msra.mxu1 %v7557_v28  ;;  %5831 = vmatpush1.bf16.msra.mxu0 %v7560_v35  ;;  %v7629_v28 = vld [vmem:[%s10640_s9 + $0x5f0] ss:$28 sps:$4 sm:$0xff]  }
 0x41c   :  { %5862 = vmatprep.mubr.bf16.mxu0 %v9562_v33  ;;  %5821 = vmatprep.mubr.bf16.mxu1 %v9381_v13  ;;  %v7632_v35 = vld [vmem:[%s10640_s9 + $0x970] ss:$28 sps:$4 sm:$0xff]  }
 0x41d   :  { %5791 = vmatprep.subr.bf16.mxu1 %v7565_v40  ;;  %5832 = vmatprep.subr.bf16.mxu0 %v7568_v29  ;;  %v7637_v40 = vld [vmem:[%s10640_s9 + $0x5bc] ss:$28 sps:$4 sm:$0xff]  }
 0x41e   :  { %v7640_v29 = vld [vmem:[%s10640_s9 + $0x93c] ss:$28 sps:$4 sm:$0xff]  }
 0x41f   :  { %5792 = vmatpush1.bf16.msra.mxu1 %v7563_v41  ;;  %5833 = vmatpush1.bf16.msra.mxu0 %v7566_v42  ;;  %v7635_v41 = vld [vmem:[%s10640_s9 + $0x5b8] ss:$28 sps:$4 sm:$0xff]  }
 0x420   :  { %5793 = vmatprep.subr.bf16.mxu1 %v7571_v43  ;;  %5834 = vmatprep.subr.bf16.mxu0 %v7574_v44  ;;  %v7638_v42 = vld [vmem:[%s10640_s9 + $0x938] ss:$28 sps:$4 sm:$0xff]   ;;  %v7643_v43 = vld [vmem:[%s10640_s9 + $0x584] ss:$28 sps:$4 sm:$0xff]  }
 0x421   :  { %v7646_v44 = vld [vmem:[%s10640_s9 + $0x904] ss:$28 sps:$4 sm:$0xff]  }
 0x423   :  { %5794 = vmatpush1.bf16.msra.mxu1 %v7569_v47  ;;  %5835 = vmatpush1.bf16.msra.mxu0 %v7572_v49  ;;  %v7641_v49 = vld [vmem:[%s10640_s9 + $0x580] ss:$28 sps:$4 sm:$0xff]  }
 0x424   :  { %5795 = vmatprep.subr.bf16.mxu1 %v7577_v51  ;;  %5836 = vmatprep.subr.bf16.mxu0 %v7580_v53  ;;  %v7644_v51 = vld [vmem:[%s10640_s9 + $0x900] ss:$28 sps:$4 sm:$0xff]  }
 0x427   :  { %5796 = vmatpush1.bf16.msra.mxu1 %v7575_v54  ;;  %5837 = vmatpush1.bf16.msra.mxu0 %v7578_v55  ;;  %v7649_v54 = vld [vmem:[%s10640_s9 + $0x54c] ss:$28 sps:$4 sm:$0xff]  }
 0x428   :  { %5797 = vmatprep.subr.bf16.mxu1 %v7583_v56  ;;  %5838 = vmatprep.subr.bf16.mxu0 %v7586_v57  ;;  %v7652_v55 = vld [vmem:[%s10640_s9 + $0x8cc] ss:$28 sps:$4 sm:$0xff]   ;;  %v3243_v56 = vld [vmem:[%s10642_s10] sm:$0x7f] }
 0x42b   :  { %5798 = vmatpush1.bf16.msra.mxu1 %v7581_v58  ;;  %5839 = vmatpush1.bf16.msra.mxu0 %v7584_v59  ;;  %v7647_v58 = vld [vmem:[%s10640_s9 + $0x548] ss:$28 sps:$4 sm:$0xff]  }
 0x42c   :  { %5799 = vmatprep.subr.bf16.mxu1 %v7589_v60  ;;  %5840 = vmatprep.subr.bf16.mxu0 %v7592_v61  ;;  %v7650_v59 = vld [vmem:[%s10640_s9 + $0x8c8] ss:$28 sps:$4 sm:$0xff]   ;;  %v7655_v61 = vld [vmem:[%s10640_s9 + $0xc14] ss:$28 sps:$4 sm:$0xff]  }
 0x42f   :  { %5800 = vmatpush1.bf16.msra.mxu1 %v7587_v22  ;;  %5841 = vmatpush1.bf16.msra.mxu0 %v7590_v62  ;;  %v7658_v22 = vld [vmem:[%s10640_s9 + $0x19c] ss:$28 sps:$4 sm:$0xff]   ;;  %v3248_v62 = vrot.slane %v3243_v56, %v8325_v46  ;;  %v7664_v46 = vld [vmem:[%s10640_s9 + $0x164] ss:$28 sps:$4 sm:$0xff]  }
 0x430   :  { %5801 = vmatprep.subr.bf16.mxu1 %v7595_v63  ;;  %5842 = vmatprep.subr.bf16.mxu0 %v7598_v1  ;;  %v3252_v63 = vrot.slane %v3243_v56, %v8331_v48  ;;  %v7653_v1 = vld [vmem:[%s10640_s9 + $0xc10] ss:$28 sps:$4 sm:$0xff]   ;;  %v7704_v56 = vld [vmem:[%s10640_s9 + $0x358] ss:$28 sps:$4 sm:$0xff]  }
 0x433   :  { %5802 = vmatpush1.bf16.msra.mxu1 %v7593_v3  ;;  %5843 = vmatpush1.bf16.msra.mxu0 %v7596_v4  ;;  %v7656_v3 = vld [vmem:[%s10640_s9 + $0x198] ss:$28 sps:$4 sm:$0xff]  }
 0x434   :  { %5803 = vmatprep.subr.bf16.mxu1 %v7601_v7  ;;  %5844 = vmatprep.subr.bf16.mxu0 %v7604_v8  ;;  %v7661_v7 = vld [vmem:[%s10640_s9 + $0xbdc] ss:$28 sps:$4 sm:$0xff]  }
 0x437   :  { %5804 = vmatpush1.bf16.msra.mxu1 %v7599_v10  ;;  %5845 = vmatpush1.bf16.msra.mxu0 %v7602_v12  ;;  %v7659_v12 = vld [vmem:[%s10640_s9 + $0xbd8] ss:$28 sps:$4 sm:$0xff]  }
 0x438   :  { %5805 = vmatprep.subr.bf16.mxu1 %v7607_v15  ;;  %5846 = vmatprep.subr.bf16.mxu0 %v7610_v16  ;;  %v7662_v16 = vld [vmem:[%s10640_s9 + $0x160] ss:$28 sps:$4 sm:$0xff]  }
 0x43b   :  { %5806 = vmatpush2.bf16.msra.mxu1 %v7605_v17  ;;  %5847 = vmatpush2.bf16.msra.mxu0 %v7608_v18  ;;  %v7667_v17 = vld [vmem:[%s10640_s9 + $0xba4] ss:$28 sps:$4 sm:$0xff]  }
 0x43c   :  { %5807 = vmatprep.subr.bf16.mxu1 %v7613_v19  ;;  %5848 = vmatprep.subr.bf16.mxu0 %v7616_v20  ;;  %v7670_v19 = vld [vmem:[%s10640_s9 + $0x12c] ss:$28 sps:$4 sm:$0xff]  }
 0x43f   :  { %5808 = vmatpush2.bf16.msra.mxu1 %v7611_v21  ;;  %5849 = vmatpush2.bf16.msra.mxu0 %v7614_v23  ;;  %v7665_v21 = vld [vmem:[%s10640_s9 + $0xba0] ss:$28 sps:$4 sm:$0xff]  }
 0x440   :  { %5809 = vmatprep.subr.bf16.mxu1 %v7619_v24  ;;  %5850 = vmatprep.subr.bf16.mxu0 %v7622_v25  ;;  %v7668_v24 = vld [vmem:[%s10640_s9 + $0x128] ss:$28 sps:$4 sm:$0xff]  }
 0x441   :  { %v7673_v25 = vld [vmem:[%s10640_s9 + $0xb6c] ss:$28 sps:$4 sm:$0xff]  }
 0x443   :  { %5810 = vmatpush2.bf16.msra.mxu1 %v7617_v26  ;;  %5851 = vmatpush2.bf16.msra.mxu0 %v7620_v6  ;;  %v7676_v26 = vld [vmem:[%s10640_s9 + $0xf4] ss:$28 sps:$4 sm:$0xff]   ;;  %v7671_v6 = vld [vmem:[%s10640_s9 + $0xb68] ss:$28 sps:$4 sm:$0xff]  }
 0x444   :  { %5811 = vmatprep.subr.bf16.mxu1 %v7625_v27  ;;  %5852 = vmatprep.subr.bf16.mxu0 %v7628_v30  ;;  %v7674_v27 = vld [vmem:[%s10640_s9 + $0xf0] ss:$28 sps:$4 sm:$0xff]  }
 0x445   :  { %v7679_v30 = vld [vmem:[%s10640_s9 + $0xb34] ss:$28 sps:$4 sm:$0xff]  }
 0x447   :  { %5812 = vmatpush2.bf16.msra.mxu1 %v7623_v31  ;;  %5853 = vmatpush2.bf16.msra.mxu0 %v7626_v36  ;;  %v7682_v31 = vld [vmem:[%s10640_s9 + $0xbc] ss:$28 sps:$4 sm:$0xff]   ;;  %v7677_v36 = vld [vmem:[%s10640_s9 + $0xb30] ss:$28 sps:$4 sm:$0xff]  }
 0x448   :  { %5813 = vmatprep.subr.bf16.mxu1 %v7631_v32  ;;  %5854 = vmatprep.subr.bf16.mxu0 %v7634_v38  ;;  %v7680_v32 = vld [vmem:[%s10640_s9 + $0xb8] ss:$28 sps:$4 sm:$0xff]  }
 0x449   :  { %v7685_v38 = vld [vmem:[%s10640_s9 + $0xafc] ss:$28 sps:$4 sm:$0xff]  }
 0x44b   :  { %5814 = vmatpush2.bf16.msra.mxu1 %v7629_v28  ;;  %5855 = vmatpush2.bf16.msra.mxu0 %v7632_v35  ;;  %v7688_v28 = vld [vmem:[%s10640_s9 + $0x84] ss:$28 sps:$4 sm:$0xff]   ;;  %v7683_v35 = vld [vmem:[%s10640_s9 + $0xaf8] ss:$28 sps:$4 sm:$0xff]  }
 0x44c   :  { %5815 = vmatprep.subr.bf16.mxu1 %v7637_v40  ;;  %5856 = vmatprep.subr.bf16.mxu0 %v7640_v29  ;;  %v7686_v40 = vld [vmem:[%s10640_s9 + $0x80] ss:$28 sps:$4 sm:$0xff]  }
 0x44d   :  { %v7691_v29 = vld [vmem:[%s10640_s9 + $0xac4] ss:$28 sps:$4 sm:$0xff]  }
 0x44e   :  { %v5618_v47 = vpop.f32.mrf.mxu0 }
 0x44f   :  { %5816 = vmatpush2.bf16.msra.mxu1 %v7635_v41  ;;  %5857 = vmatpush2.bf16.msra.mxu0 %v7638_v42  ;;  %v5619_v4 = vadd.f32 %v5618_v47, %v3248_v62  ;;  %v7694_v41 = vld [vmem:[%s10640_s9 + $0x4c] ss:$28 sps:$4 sm:$0xff]   ;;  %v7689_v42 = vld [vmem:[%s10640_s9 + $0xac0] ss:$28 sps:$4 sm:$0xff]   ;;  %v7700_v47 = vld [vmem:[%s10640_s9 + $0x14] ss:$28 sps:$4 sm:$0xff]  }
 0x450   :  { %v5620_v53 = vpop.f32.mrf.mxu0  ;;  %5817 = vmatprep.subr.bf16.mxu1 %v7643_v43  ;;  %5858 = vmatprep.subr.bf16.mxu0 %v7646_v44  ;;  %v7692_v43 = vld [vmem:[%s10640_s9 + $0x48] ss:$28 sps:$4 sm:$0xff]   ;;  %v7713_v62 = vld [vmem:[%s10640_s9 + $0xd60] ss:$28 sps:$4 sm:$0xff]  }
 0x451   :  { %v5621_v8 = vadd.f32 %v5620_v53, %v3252_v63  ;;  %v7697_v44 = vld [vmem:[%s10640_s9 + $0xa8c] ss:$28 sps:$4 sm:$0xff]   ;;  %v7703_v53 = vld [vmem:[%s10640_s9 + $0xdd4] ss:$28 sps:$4 sm:$0xff]  }
 0x452   :  { %v5622_v57 = vpop.f32.mrf.mxu0  ;;  %v7716_v63 = vld [vmem:[%s10640_s9 + $0x2e8] ss:$28 sps:$4 sm:$0xff]  }
 0x453   :  { %5818 = vmatpush2.bf16.msra.mxu1 %v7641_v49  ;;  %5859 = vmatpush2.bf16.msra.mxu0 %v7644_v51  ;;  %v7695_v49 = vld [vmem:[%s10640_s9 + $0xa88] ss:$28 sps:$4 sm:$0xff]   ;;  %v7698_v51 = vld [vmem:[%s10640_s9 + $0x10] ss:$28 sps:$4 sm:$0xff]   ;;  %v7709_v57 = vld [vmem:[%s10640_s9 + $0xd9c] ss:$28 sps:$4 sm:$0xff]  }
 0x454   :  { %v5623_v60 = vpop.f32.mrf.mxu0  ;;  %5819 = vmatprep.subr.bf16.mxu1 %v7649_v54  ;;  %5860 = vmatprep.subr.bf16.mxu0 %v7652_v55  ;;  %v7706_v54 = vld [vmem:[%s10640_s9 + $0x35c] ss:$28 sps:$4 sm:$0xff]   ;;  %v7701_v55 = vld [vmem:[%s10640_s9 + $0xdd0] ss:$28 sps:$4 sm:$0xff]  }
 0x455   :  { %v7710_v60 = vld [vmem:[%s10640_s9 + $0x320] ss:$28 sps:$4 sm:$0xff]  }
 0x457   :  { %5820 = vmatpush2.bf16.msra.mxu1 %v7647_v58  ;;  %5861 = vmatpush2.bf16.msra.mxu0 %v7650_v59  ;;  %v7712_v58 = vld [vmem:[%s10640_s9 + $0x324] ss:$28 sps:$4 sm:$0xff]   ;;  %v7707_v59 = vld [vmem:[%s10640_s9 + $0xd98] ss:$28 sps:$4 sm:$0xff]  }
 0x458   :  { %5871 = vmatprep.subr.bf16.mxu1 %v7655_v61  ;;  %5912 = vmatprep.subr.bf16.mxu0 %v7658_v22  ;;  %v7715_v61 = vld [vmem:[%s10640_s9 + $0xd64] ss:$28 sps:$4 sm:$0xff]   ;;  %v7718_v22 = vld [vmem:[%s10640_s9 + $0x2ec] ss:$28 sps:$4 sm:$0xff]  }
 0x45a   :  { %5822 = vmatmul.mubr.bf16.vlgmr.msra.gmra.mxu1 %v9383_v14  ;;  %5863 = vmatmul.mubr.bf16.vlgmr.msra.gmra.mxu0 %v9567_v34  ;;  %v5659_v48 = vpop.f32.mrf.mxu1 }
 0x45b   :  { %v9891_v10 = vadd.f32 %v5659_v48, %v5619_v4  ;;  %5872 = vmatpush1.bf16.msra.mxu1 %v7653_v1  ;;  %5903 = vmatprep.mubr.bf16.mxu1 %v9671_v37  ;;  %v7721_v1 = vld [vmem:[%s10640_s9 + $0xd2c] ss:$28 sps:$4 sm:$0xff]   ;;  %v7730_v48 = vld [vmem:[%s10640_s9 + $0x27c] ss:$28 sps:$4 sm:$0xff]  }
 0x45c   :  { %5913 = vmatpush1.bf16.msra.mxu0 %v7656_v3  ;;  %5944 = vmatprep.mubr.bf16.mxu0 %v9190_v52  ;;  %v5661_v15 = vpop.f32.mrf.mxu1  ;;  %v7724_v3 = vld [vmem:[%s10640_s9 + $0x2b4] ss:$28 sps:$4 sm:$0xff]   ;;  %v7719_v4 = vld [vmem:[%s10640_s9 + $0xd28] ss:$28 sps:$4 sm:$0xff]  }
 0x45d   :  { %v9904_v18 = vadd.f32 %v5661_v15, %v5621_v8  ;;  %5873 = vmatprep.subr.bf16.mxu1 %v7661_v7  ;;  %5914 = vmatprep.subr.bf16.mxu0 %v7664_v46  ;;  %v7722_v7 = vld [vmem:[%s10640_s9 + $0x2b0] ss:$28 sps:$4 sm:$0xff]   ;;  %v7733_v15 = vld [vmem:[%s10640_s9 + $0xcbc] ss:$28 sps:$4 sm:$0xff]  }
 0x45e   :  { %v5663_v20 = vpop.f32.mrf.mxu1  ;;  %v7727_v46 = vld [vmem:[%s10640_s9 + $0xcf4] ss:$28 sps:$4 sm:$0xff]  }
 0x45f   :  { %5874 = vmatpush1.bf16.msra.mxu1 %v7659_v12  ;;  %v7725_v8 = vld [vmem:[%s10640_s9 + $0xcf0] ss:$28 sps:$4 sm:$0xff]   ;;  %v7728_v12 = vld [vmem:[%s10640_s9 + $0x278] ss:$28 sps:$4 sm:$0xff]   ;;  %v7739_v20 = vld [vmem:[%s10640_s9 + $0xc84] ss:$28 sps:$4 sm:$0xff]  }
 0x460   :  { %5915 = vmatpush1.bf16.msra.mxu0 %v7662_v16  ;;  %v5664_v23 = vpop.f32.mrf.mxu1  ;;  %5875 = vmatprep.subr.bf16.mxu1 %v7667_v17  ;;  %v7736_v16 = vld [vmem:[%s10640_s9 + $0x244] ss:$28 sps:$4 sm:$0xff]   ;;  %v7731_v17 = vld [vmem:[%s10640_s9 + $0xcb8] ss:$28 sps:$4 sm:$0xff]  }
 0x461   :  { %5916 = vmatprep.subr.bf16.mxu0 %v7670_v19  ;;  %v7734_v19 = vld [vmem:[%s10640_s9 + $0x240] ss:$28 sps:$4 sm:$0xff]  }
 0x462   :  { %v7737_v23 = vld [vmem:[%s10640_s9 + $0xc80] ss:$28 sps:$4 sm:$0xff]  }
 0x463   :  { %5876 = vmatpush1.bf16.msra.mxu1 %v7665_v21  ;;  %v7742_v21 = vld [vmem:[%s10640_s9 + $0x20c] ss:$28 sps:$4 sm:$0xff]  }
 0x464   :  { %5917 = vmatpush1.bf16.msra.mxu0 %v7668_v24  ;;  %5877 = vmatprep.subr.bf16.mxu1 %v7673_v25  ;;  %v7740_v24 = vld [vmem:[%s10640_s9 + $0x208] ss:$28 sps:$4 sm:$0xff]  }
 0x465   :  { %5918 = vmatprep.subr.bf16.mxu0 %v7676_v26  ;;  %v7745_v25 = vld [vmem:[%s10640_s9 + $0xc4c] ss:$28 sps:$4 sm:$0xff]   ;;  %v7748_v26 = vld [vmem:[%s10640_s9 + $0x1d4] ss:$28 sps:$4 sm:$0xff]  }
 0x467   :  { %5878 = vmatpush1.bf16.msra.mxu1 %v7671_v6  ;;  %v7743_v6 = vld [vmem:[%s10640_s9 + $0xc48] ss:$28 sps:$4 sm:$0xff]  }
 0x468   :  { %5919 = vmatpush1.bf16.msra.mxu0 %v7674_v27  ;;  %5879 = vmatprep.subr.bf16.mxu1 %v7679_v30  ;;  %v7746_v27 = vld [vmem:[%s10640_s9 + $0x1d0] ss:$28 sps:$4 sm:$0xff]   ;;  %v7751_v30 = vld [vmem:[%s10640_s9 + $0x51c] ss:$28 sps:$4 sm:$0xff]  }
 0x469   :  { %5920 = vmatprep.subr.bf16.mxu0 %v7682_v31  ;;  %v7754_v31 = vld [vmem:[%s10640_s9 + $0x89c] ss:$28 sps:$4 sm:$0xff]  }
 0x46b   :  { %5880 = vmatpush1.bf16.msra.mxu1 %v7677_v36  ;;  %v7749_v36 = vld [vmem:[%s10640_s9 + $0x518] ss:$28 sps:$4 sm:$0xff]  }
 0x46c   :  { %5921 = vmatpush1.bf16.msra.mxu0 %v7680_v32  ;;  %5881 = vmatprep.subr.bf16.mxu1 %v7685_v38  ;;  %v7752_v32 = vld [vmem:[%s10640_s9 + $0x898] ss:$28 sps:$4 sm:$0xff]   ;;  %v7757_v38 = vld [vmem:[%s10640_s9 + $0x4e4] ss:$28 sps:$4 sm:$0xff]  }
 0x46d   :  { %5922 = vmatprep.subr.bf16.mxu0 %v7688_v28 }
 0x46f   :  { %5882 = vmatpush1.bf16.msra.mxu1 %v7683_v35  ;;  %v7760_v35 = vld [vmem:[%s10640_s9 + $0x864] ss:$28 sps:$4 sm:$0xff]  }
 0x470   :  { %5923 = vmatpush1.bf16.msra.mxu0 %v7686_v40  ;;  %5883 = vmatprep.subr.bf16.mxu1 %v7691_v29  ;;  %v7755_v40 = vld [vmem:[%s10640_s9 + $0x4e0] ss:$28 sps:$4 sm:$0xff]  }
 0x471   :  { %5924 = vmatprep.subr.bf16.mxu0 %v7694_v41  ;;  %v7758_v41 = vld [vmem:[%s10640_s9 + $0x860] ss:$28 sps:$4 sm:$0xff]  }
 0x473   :  { %5884 = vmatpush1.bf16.msra.mxu1 %v7689_v42  ;;  %v7763_v42 = vld [vmem:[%s10640_s9 + $0x4ac] ss:$28 sps:$4 sm:$0xff]  }
 0x474   :  { %5925 = vmatpush1.bf16.msra.mxu0 %v7692_v43  ;;  %5885 = vmatprep.subr.bf16.mxu1 %v7697_v44  ;;  %v7766_v43 = vld [vmem:[%s10640_s9 + $0x82c] ss:$28 sps:$4 sm:$0xff]  }
 0x475   :  { %5926 = vmatprep.subr.bf16.mxu0 %v7700_v47  ;;  %v7761_v47 = vld [vmem:[%s10640_s9 + $0x4a8] ss:$28 sps:$4 sm:$0xff]  }
 0x477   :  { %5886 = vmatpush1.bf16.msra.mxu1 %v7695_v49 }
 0x478   :  { %5927 = vmatpush1.bf16.msra.mxu0 %v7698_v51  ;;  %5887 = vmatprep.subr.bf16.mxu1 %v7703_v53  ;;  %v7764_v51 = vld [vmem:[%s10640_s9 + $0x828] ss:$28 sps:$4 sm:$0xff]   ;;  %v7769_v53 = vld [vmem:[%s10640_s9 + $0x474] ss:$28 sps:$4 sm:$0xff]  }
 0x479   :  { %5928 = vmatprep.subr.bf16.mxu0 %v7706_v54  ;;  %v7772_v54 = vld [vmem:[%s10640_s9 + $0x7f4] ss:$28 sps:$4 sm:$0xff]  }
 0x47b   :  { %5888 = vmatpush2.bf16.msra.mxu1 %v7701_v55  ;;  %v7767_v55 = vld [vmem:[%s10640_s9 + $0x470] ss:$28 sps:$4 sm:$0xff]  }
 0x47c   :  { %5929 = vmatpush2.bf16.msra.mxu0 %v7704_v56  ;;  %5889 = vmatprep.subr.bf16.mxu1 %v7709_v57  ;;  %v7770_v56 = vld [vmem:[%s10640_s9 + $0x7f0] ss:$28 sps:$4 sm:$0xff]   ;;  %v7775_v57 = vld [vmem:[%s10640_s9 + $0x43c] ss:$28 sps:$4 sm:$0xff]  }
 0x47d   :  { %5930 = vmatprep.subr.bf16.mxu0 %v7712_v58  ;;  %v7778_v58 = vld [vmem:[%s10640_s9 + $0x7bc] ss:$28 sps:$4 sm:$0xff]  }
 0x47f   :  { %5890 = vmatpush2.bf16.msra.mxu1 %v7707_v59  ;;  %v7773_v59 = vld [vmem:[%s10640_s9 + $0x438] ss:$28 sps:$4 sm:$0xff]  }
 0x480   :  { %5931 = vmatpush2.bf16.msra.mxu0 %v7710_v60  ;;  %5891 = vmatprep.subr.bf16.mxu1 %v7715_v61  ;;  %v7776_v60 = vld [vmem:[%s10640_s9 + $0x7b8] ss:$28 sps:$4 sm:$0xff]   ;;  %v7781_v61 = vld [vmem:[%s10640_s9 + $0x404] ss:$28 sps:$4 sm:$0xff]  }
 0x481   :  { %5932 = vmatprep.subr.bf16.mxu0 %v7718_v22  ;;  %v7784_v22 = vld [vmem:[%s10640_s9 + $0x784] ss:$28 sps:$4 sm:$0xff]  }
 0x483   :  { %5892 = vmatpush2.bf16.msra.mxu1 %v7713_v62  ;;  %v7779_v62 = vld [vmem:[%s10640_s9 + $0x400] ss:$28 sps:$4 sm:$0xff]  }
 0x484   :  { %5933 = vmatpush2.bf16.msra.mxu0 %v7716_v63  ;;  %5893 = vmatprep.subr.bf16.mxu1 %v7721_v1  ;;  %v7782_v63 = vld [vmem:[%s10640_s9 + $0x780] ss:$28 sps:$4 sm:$0xff]   ;;  %v7787_v1 = vld [vmem:[%s10640_s9 + $0x3cc] ss:$28 sps:$4 sm:$0xff]  }
 0x485   :  { %5934 = vmatprep.subr.bf16.mxu0 %v7724_v3  ;;  %v7790_v3 = vld [vmem:[%s10640_s9 + $0x74c] ss:$28 sps:$4 sm:$0xff]  }
 0x487   :  { %5894 = vmatpush2.bf16.msra.mxu1 %v7719_v4  ;;  %v7785_v4 = vld [vmem:[%s10640_s9 + $0x3c8] ss:$28 sps:$4 sm:$0xff]  }
 0x488   :  { %5935 = vmatpush2.bf16.msra.mxu0 %v7722_v7  ;;  %5895 = vmatprep.subr.bf16.mxu1 %v7727_v46  ;;  %v7788_v7 = vld [vmem:[%s10640_s9 + $0x748] ss:$28 sps:$4 sm:$0xff]   ;;  %v7793_v46 = vld [vmem:[%s10640_s9 + $0x394] ss:$28 sps:$4 sm:$0xff]  }
 0x489   :  { %5936 = vmatprep.subr.bf16.mxu0 %v7730_v48  ;;  %v7796_v48 = vld [vmem:[%s10640_s9 + $0x714] ss:$28 sps:$4 sm:$0xff]  }
 0x48b   :  { %5896 = vmatpush2.bf16.msra.mxu1 %v7725_v8  ;;  %v7791_v8 = vld [vmem:[%s10640_s9 + $0x390] ss:$28 sps:$4 sm:$0xff]  }
 0x48c   :  { %5937 = vmatpush2.bf16.msra.mxu0 %v7728_v12  ;;  %5897 = vmatprep.subr.bf16.mxu1 %v7733_v15  ;;  %v7794_v12 = vld [vmem:[%s10640_s9 + $0x710] ss:$28 sps:$4 sm:$0xff]   ;;  %v7799_v15 = vld [vmem:[%s10640_s9 + $0x6dc] ss:$28 sps:$4 sm:$0xff]  }
 0x48d   :  { %5938 = vmatprep.subr.bf16.mxu0 %v7736_v16  ;;  %v7802_v16 = vld [vmem:[%s10640_s9 + $0xa5c] ss:$28 sps:$4 sm:$0xff]  }
 0x48f   :  { %5898 = vmatpush2.bf16.msra.mxu1 %v7731_v17  ;;  %v7797_v17 = vld [vmem:[%s10640_s9 + $0x6d8] ss:$28 sps:$4 sm:$0xff]  }
 0x490   :  { %5939 = vmatpush2.bf16.msra.mxu0 %v7734_v19  ;;  %5899 = vmatprep.subr.bf16.mxu1 %v7739_v20  ;;  %v7800_v19 = vld [vmem:[%s10640_s9 + $0xa58] ss:$28 sps:$4 sm:$0xff]   ;;  %v7805_v20 = vld [vmem:[%s10640_s9 + $0x6a4] ss:$28 sps:$4 sm:$0xff]  }
 0x491   :  { %5940 = vmatprep.subr.bf16.mxu0 %v7742_v21  ;;  %v7808_v21 = vld [vmem:[%s10640_s9 + $0xa24] ss:$28 sps:$4 sm:$0xff]  }
 0x493   :  { %5900 = vmatpush2.bf16.msra.mxu1 %v7737_v23  ;;  %v7803_v23 = vld [vmem:[%s10640_s9 + $0x6a0] ss:$28 sps:$4 sm:$0xff]  }
 0x494   :  { %5941 = vmatpush2.bf16.msra.mxu0 %v7740_v24  ;;  %5901 = vmatprep.subr.bf16.mxu1 %v7745_v25  ;;  %v7806_v24 = vld [vmem:[%s10640_s9 + $0xa20] ss:$28 sps:$4 sm:$0xff]   ;;  %v7811_v25 = vld [vmem:[%s10640_s9 + $0x66c] ss:$28 sps:$4 sm:$0xff]  }
 0x495   :  { %5942 = vmatprep.subr.bf16.mxu0 %v7748_v26  ;;  %v7814_v26 = vld [vmem:[%s10640_s9 + $0x9ec] ss:$28 sps:$4 sm:$0xff]  }
 0x497   :  { %5902 = vmatpush2.bf16.msra.mxu1 %v7743_v6  ;;  %v7809_v6 = vld [vmem:[%s10640_s9 + $0x668] ss:$28 sps:$4 sm:$0xff]  }
 0x498   :  { %5943 = vmatpush2.bf16.msra.mxu0 %v7746_v27  ;;  %5953 = vmatprep.subr.bf16.mxu1 %v7751_v30  ;;  %v7812_v27 = vld [vmem:[%s10640_s9 + $0x9e8] ss:$28 sps:$4 sm:$0xff]   ;;  %v7817_v30 = vld [vmem:[%s10640_s9 + $0x634] ss:$28 sps:$4 sm:$0xff]  }
 0x499   :  { %5994 = vmatprep.subr.bf16.mxu0 %v7754_v31  ;;  %v7820_v31 = vld [vmem:[%s10640_s9 + $0x9b4] ss:$28 sps:$4 sm:$0xff]  }
 0x49a   :  { %5904 = vmatmul.mubr.bf16.vlgmr.msra.gmra.mxu1 %v9679_v39  ;;  %v10087_v28 = vpop.f32.mrf.mxu0 }
 0x49b   :  { %5945 = vmatmul.mubr.bf16.vlgmr.msra.gmra.mxu0 %v9349_v50  ;;  %5954 = vmatpush1.bf16.msra.mxu1 %v7749_v36  ;;  %v7815_v36 = vld [vmem:[%s10640_s9 + $0x630] ss:$28 sps:$4 sm:$0xff]  }
 0x49c   :  { %5985 = vmatprep.mubr.bf16.mxu1 %v9381_v13  ;;  %5995 = vmatpush1.bf16.msra.mxu0 %v7752_v32  ;;  %v10097_v29 = vpop.f32.mrf.mxu0  ;;  %v7818_v32 = vld [vmem:[%s10640_s9 + $0x9b0] ss:$28 sps:$4 sm:$0xff]  }
 0x49d   :  { %6026 = vmatprep.mubr.bf16.mxu0 %v9562_v33  ;;  %5955 = vmatprep.subr.bf16.mxu1 %v7757_v38  ;;  %v7823_v38 = vld [vmem:[%s10640_s9 + $0x5fc] ss:$28 sps:$4 sm:$0xff]  }
 0x49e   :  { %5996 = vmatprep.subr.bf16.mxu0 %v7760_v35  ;;  %v5704_v44 = vpop.f32.mrf.mxu0  ;;  %v7826_v35 = vld [vmem:[%s10640_s9 + $0x97c] ss:$28 sps:$4 sm:$0xff]  }
 0x49f   :  { %5956 = vmatpush1.bf16.msra.mxu1 %v7755_v40  ;;  %v7821_v40 = vld [vmem:[%s10640_s9 + $0x5f8] ss:$28 sps:$4 sm:$0xff]   ;;  %v7827_v44 = vld [vmem:[%s10640_s9 + $0x5c0] ss:$28 sps:$4 sm:$0xff]  }
 0x4a0   :  { %5997 = vmatpush1.bf16.msra.mxu0 %v7758_v41  ;;  %v5705_v49 = vpop.f32.mrf.mxu0  ;;  %5957 = vmatprep.subr.bf16.mxu1 %v7763_v42  ;;  %v7824_v41 = vld [vmem:[%s10640_s9 + $0x978] ss:$28 sps:$4 sm:$0xff]   ;;  %v7829_v42 = vld [vmem:[%s10640_s9 + $0x5c4] ss:$28 sps:$4 sm:$0xff]  }
 0x4a1   :  { %5998 = vmatprep.subr.bf16.mxu0 %v7766_v43  ;;  %v7832_v43 = vld [vmem:[%s10640_s9 + $0x944] ss:$28 sps:$4 sm:$0xff]   ;;  %v7835_v49 = vld [vmem:[%s10640_s9 + $0x58c] ss:$28 sps:$4 sm:$0xff]  }
 0x4a3   :  { %5958 = vmatpush1.bf16.msra.mxu1 %v7761_v47  ;;  %v7830_v47 = vld [vmem:[%s10640_s9 + $0x940] ss:$28 sps:$4 sm:$0xff]  }
 0x4a4   :  { %5999 = vmatpush1.bf16.msra.mxu0 %v7764_v51  ;;  %5959 = vmatprep.subr.bf16.mxu1 %v7769_v53  ;;  %v7838_v51 = vld [vmem:[%s10640_s9 + $0x90c] ss:$28 sps:$4 sm:$0xff]  }
 0x4a5   :  { %6000 = vmatprep.subr.bf16.mxu0 %v7772_v54  ;;  %v7833_v53 = vld [vmem:[%s10640_s9 + $0x588] ss:$28 sps:$4 sm:$0xff]  }
 0x4a6   :  { %v7836_v54 = vld [vmem:[%s10640_s9 + $0x908] ss:$28 sps:$4 sm:$0xff]  }
 0x4a7   :  { %5960 = vmatpush1.bf16.msra.mxu1 %v7767_v55  ;;  %v7841_v55 = vld [vmem:[%s10640_s9 + $0x554] ss:$28 sps:$4 sm:$0xff]  }
 0x4a8   :  { %6001 = vmatpush1.bf16.msra.mxu0 %v7770_v56  ;;  %5961 = vmatprep.subr.bf16.mxu1 %v7775_v57  ;;  %v7844_v56 = vld [vmem:[%s10640_s9 + $0x8d4] ss:$28 sps:$4 sm:$0xff]  }
 0x4a9   :  { %6002 = vmatprep.subr.bf16.mxu0 %v7778_v58  ;;  %v7839_v57 = vld [vmem:[%s10640_s9 + $0x550] ss:$28 sps:$4 sm:$0xff]  }
 0x4aa   :  { %v7842_v58 = vld [vmem:[%s10640_s9 + $0x8d0] ss:$28 sps:$4 sm:$0xff]  }
 0x4ab   :  { %5962 = vmatpush1.bf16.msra.mxu1 %v7773_v59  ;;  %v7847_v59 = vld [vmem:[%s10640_s9 + $0xc1c] ss:$28 sps:$4 sm:$0xff]  }
 0x4ac   :  { %6003 = vmatpush1.bf16.msra.mxu0 %v7776_v60  ;;  %5963 = vmatprep.subr.bf16.mxu1 %v7781_v61  ;;  %v7848_v60 = vld [vmem:[%s10640_s9 + $0x360] ss:$28 sps:$4 sm:$0xff]   ;;  %v7845_v61 = vld [vmem:[%s10640_s9 + $0xc18] ss:$28 sps:$4 sm:$0xff]  }
 0x4ad   :  { %6004 = vmatprep.subr.bf16.mxu0 %v7784_v22  ;;  %v7849_v22 = vld [vmem:[%s10640_s9 + $0x1a0] ss:$28 sps:$4 sm:$0xff]  }
 0x4af   :  { %5964 = vmatpush1.bf16.msra.mxu1 %v7779_v62  ;;  %v5701_v62 = vadd.f32 %v10087_v28, %v9891_v10  ;;  %v7850_v28 = vld [vmem:[%s10640_s9 + $0xbe0] ss:$28 sps:$4 sm:$0xff]  }
 0x4b0   :  { %6005 = vmatpush1.bf16.msra.mxu0 %v7782_v63  ;;  %5965 = vmatprep.subr.bf16.mxu1 %v7787_v1  ;;  %v7852_v63 = vld [vmem:[%s10640_s9 + $0xbe4] ss:$28 sps:$4 sm:$0xff]  }
 0x4b1   :  { %6006 = vmatprep.subr.bf16.mxu0 %v7790_v3 }
 0x4b3   :  { %5966 = vmatpush1.bf16.msra.mxu1 %v7785_v4  ;;  %v7853_v4 = vld [vmem:[%s10640_s9 + $0x328] ss:$28 sps:$4 sm:$0xff]  }
 0x4b4   :  { %6007 = vmatpush1.bf16.msra.mxu0 %v7788_v7  ;;  %5967 = vmatprep.subr.bf16.mxu1 %v7793_v46  ;;  %v5703_v7 = vadd.f32 %v10097_v29, %v9904_v18  ;;  %v7857_v18 = vld [vmem:[%s10640_s9 + $0xbac] ss:$28 sps:$4 sm:$0xff]  }
 0x4b5   :  { %6008 = vmatprep.subr.bf16.mxu0 %v7796_v48 }
 0x4b7   :  { %5968 = vmatpush1.bf16.msra.mxu1 %v7791_v8  ;;  %v7854_v8 = vld [vmem:[%s10640_s9 + $0x168] ss:$28 sps:$4 sm:$0xff]  }
 0x4b8   :  { %6009 = vmatpush1.bf16.msra.mxu0 %v7794_v12  ;;  %5969 = vmatprep.subr.bf16.mxu1 %v7799_v15  ;;  %v7858_v15 = vld [vmem:[%s10640_s9 + $0x2f0] ss:$28 sps:$4 sm:$0xff]  }
 0x4b9   :  { %6010 = vmatprep.subr.bf16.mxu0 %v7802_v16 }
 0x4bb   :  { %5970 = vmatpush2.bf16.msra.mxu1 %v7797_v17 }
 0x4bc   :  { %6011 = vmatpush2.bf16.msra.mxu0 %v7800_v19  ;;  %5971 = vmatprep.subr.bf16.mxu1 %v7805_v20  ;;  %v7855_v20 = vld [vmem:[%s10640_s9 + $0xba8] ss:$28 sps:$4 sm:$0xff]  }
 0x4bd   :  { %6012 = vmatprep.subr.bf16.mxu0 %v7808_v21 }
 0x4bf   :  { %5972 = vmatpush2.bf16.msra.mxu1 %v7803_v23 }
 0x4c0   :  { %6013 = vmatpush2.bf16.msra.mxu0 %v7806_v24  ;;  %5973 = vmatprep.subr.bf16.mxu1 %v7811_v25  ;;  %v7862_v24 = vld [vmem:[%s10640_s9 + $0xb74] ss:$28 sps:$4 sm:$0xff]  }
 0x4c1   :  { %6014 = vmatprep.subr.bf16.mxu0 %v7814_v26  ;;  %v7863_v25 = vld [vmem:[%s10640_s9 + $0x2b8] ss:$28 sps:$4 sm:$0xff]   ;;  %v7860_v26 = vld [vmem:[%s10640_s9 + $0xb70] ss:$28 sps:$4 sm:$0xff]  }
 0x4c3   :  { %5974 = vmatpush2.bf16.msra.mxu1 %v7809_v6  ;;  %v7864_v6 = vld [vmem:[%s10640_s9 + $0xf8] ss:$28 sps:$4 sm:$0xff]  }
 0x4c4   :  { %6015 = vmatpush2.bf16.msra.mxu0 %v7812_v27  ;;  %5975 = vmatprep.subr.bf16.mxu1 %v7817_v30  ;;  %v7867_v27 = vld [vmem:[%s10640_s9 + $0xb3c] ss:$28 sps:$4 sm:$0xff]  }
 0x4c5   :  { %6016 = vmatprep.subr.bf16.mxu0 %v7820_v31  ;;  %v7868_v30 = vld [vmem:[%s10640_s9 + $0x280] ss:$28 sps:$4 sm:$0xff]   ;;  %v7865_v31 = vld [vmem:[%s10640_s9 + $0xb38] ss:$28 sps:$4 sm:$0xff]  }
 0x4c7   :  { %5976 = vmatpush2.bf16.msra.mxu1 %v7815_v36  ;;  %v7869_v36 = vld [vmem:[%s10640_s9 + $0xc0] ss:$28 sps:$4 sm:$0xff]  }
 0x4c8   :  { %6017 = vmatpush2.bf16.msra.mxu0 %v7818_v32  ;;  %5977 = vmatprep.subr.bf16.mxu1 %v7823_v38  ;;  %v7872_v32 = vld [vmem:[%s10640_s9 + $0xb04] ss:$28 sps:$4 sm:$0xff]  }
 0x4c9   :  { %6018 = vmatprep.subr.bf16.mxu0 %v7826_v35  ;;  %v7873_v38 = vld [vmem:[%s10640_s9 + $0x248] ss:$28 sps:$4 sm:$0xff]   ;;  %v7870_v35 = vld [vmem:[%s10640_s9 + $0xb00] ss:$28 sps:$4 sm:$0xff]  }
 0x4cb   :  { %5978 = vmatpush2.bf16.msra.mxu1 %v7821_v40 }
 0x4cc   :  { %6019 = vmatpush2.bf16.msra.mxu0 %v7824_v41  ;;  %5979 = vmatprep.subr.bf16.mxu1 %v7829_v42  ;;  %v7874_v41 = vld [vmem:[%s10640_s9 + $0x88] ss:$28 sps:$4 sm:$0xff]  }
 0x4cd   :  { %6020 = vmatprep.subr.bf16.mxu0 %v7832_v43  ;;  %v7877_v42 = vld [vmem:[%s10640_s9 + $0xacc] ss:$28 sps:$4 sm:$0xff]  }
 0x4cf   :  { %5980 = vmatpush2.bf16.msra.mxu1 %v7827_v44  ;;  %v7878_v44 = vld [vmem:[%s10640_s9 + $0x210] ss:$28 sps:$4 sm:$0xff]  }
 0x4d0   :  { %6021 = vmatpush2.bf16.msra.mxu0 %v7830_v47  ;;  %5981 = vmatprep.subr.bf16.mxu1 %v7835_v49 }
 0x4d1   :  { %6022 = vmatprep.subr.bf16.mxu0 %v7838_v51 }
 0x4d3   :  { %5982 = vmatpush2.bf16.msra.mxu1 %v7833_v53  ;;  %v7875_v53 = vld [vmem:[%s10640_s9 + $0xac8] ss:$28 sps:$4 sm:$0xff]  }
 0x4d4   :  { %6023 = vmatpush2.bf16.msra.mxu0 %v7836_v54  ;;  %5983 = vmatprep.subr.bf16.mxu1 %v7841_v55  ;;  %v7879_v54 = vld [vmem:[%s10640_s9 + $0x50] ss:$28 sps:$4 sm:$0xff]  }
 0x4d5   :  { %6024 = vmatprep.subr.bf16.mxu0 %v7844_v56  ;;  %v7882_v55 = vld [vmem:[%s10640_s9 + $0xa94] ss:$28 sps:$4 sm:$0xff]  }
 0x4d7   :  { %5984 = vmatpush2.bf16.msra.mxu1 %v7839_v57  ;;  %v7883_v57 = vld [vmem:[%s10640_s9 + $0x1d8] ss:$28 sps:$4 sm:$0xff]  }
 0x4d8   :  { %6025 = vmatpush2.bf16.msra.mxu0 %v7842_v58  ;;  %6035 = vmatprep.subr.bf16.mxu1 %v7847_v59  ;;  %v7880_v58 = vld [vmem:[%s10640_s9 + $0xa90] ss:$28 sps:$4 sm:$0xff]   ;;  %v7884_v59 = vld [vmem:[%s10640_s9 + $0x18] ss:$28 sps:$4 sm:$0xff]  }
 0x4d9   :  { %7078 = vmatprep.subr.bf16.mxu0 %v7848_v60  ;;  %v7887_v60 = vld [vmem:[%s10640_s9 + $0xddc] ss:$28 sps:$4 sm:$0xff]  }
 0x4da   :  { %v10288_v1 = vpop.f32.mrf.mxu0  ;;  %5986 = vmatmul.mubr.bf16.vlgmr.msra.gmra.mxu1 %v9383_v14  ;;  %v5741_v3 = vpop.f32.mrf.mxu1 }
 0x4db   :  { %6027 = vmatmul.mubr.bf16.vlgmr.msra.gmra.mxu0 %v9567_v34  ;;  %v5742_v10 = vadd.f32 %v5741_v3, %v5701_v62  ;;  %6036 = vmatpush1.bf16.msra.mxu1 %v7845_v61  ;;  %v7888_v61 = vld [vmem:[%s10640_s9 + $0xa60] ss:$28 sps:$4 sm:$0xff]   ;;  %v7893_v3 = vld [vmem:[%s10640_s9 + $0xa28] ss:$28 sps:$4 sm:$0xff]  }
 0x4dc   :  { %6067 = vmatprep.mubr.bf16.mxu1 %v9671_v37  ;;  %7079 = vmatpush3.bf16.msra.mxu0 %v7849_v22  ;;  %v10301_v46 = vpop.f32.mrf.mxu0  ;;  %v5743_v48 = vpop.f32.mrf.mxu1  ;;  %v7885_v22 = vld [vmem:[%s10640_s9 + $0xdd8] ss:$28 sps:$4 sm:$0xff]   ;;  %v7889_v62 = vld [vmem:[%s10640_s9 + $0x8a0] ss:$28 sps:$4 sm:$0xff]  }
 0x4dd   :  { %v6236_v29 = vmul.f32 0.5, %v5742_v10  ;;  %6108 = vmatprep.mubr.bf16.mxu0 %v9190_v52  ;;  %v5744_v12 = vadd.f32 %v5743_v48, %v5703_v7  ;;  %6037 = vmatprep.subr.bf16.mxu1 %v7852_v63  ;;  %v7859_v52 = vld [vmem:[%s10640_s9 + $0x130] ss:$28 sps:$4 sm:$0xff]   ;;  %v7892_v63 = vld [vmem:[%s10640_s9 + $0xda4] ss:$28 sps:$4 sm:$0xff]  }
 0x4de   :  { %v5786_v16 = vpop.f32.mrf.mxu0  ;;  %7080 = vmatprep.subr.bf16.mxu0 %v7853_v4  ;;  %v5745_v17 = vpop.f32.mrf.mxu1  ;;  %v7890_v4 = vld [vmem:[%s10640_s9 + $0xda0] ss:$28 sps:$4 sm:$0xff]   ;;  %v7894_v7 = vld [vmem:[%s10640_s9 + $0x868] ss:$28 sps:$4 sm:$0xff]   ;;  %v7902_v48 = vld [vmem:[%s10640_s9 + $0xd34] ss:$28 sps:$4 sm:$0xff]  }
 0x4df   :  { %7961 = vtanh.f32 %v6236_v29  ;;  %v6237_v19 = vmul.f32 0.5, %v5744_v12  ;;  %6038 = vmatpush1.bf16.msra.mxu1 %v7850_v28  ;;  %v7897_v10 = vld [vmem:[%s10640_s9 + $0xd6c] ss:$28 sps:$4 sm:$0xff]   ;;  %v7904_v29 = vld [vmem:[%s10640_s9 + $0x7f8] ss:$28 sps:$4 sm:$0xff]  }
 0x4e0   :  { %7081 = vmatpush3.bf16.msra.mxu0 %v7854_v8  ;;  %v5787_v21 = vpop.f32.mrf.mxu0  ;;  %v5746_v23 = vpop.f32.mrf.mxu1  ;;  %6039 = vmatprep.subr.bf16.mxu1 %v7857_v18  ;;  %v7895_v28 = vld [vmem:[%s10640_s9 + $0xd68] ss:$28 sps:$4 sm:$0xff]   ;;  %v7903_v8 = vld [vmem:[%s10640_s9 + $0x9b8] ss:$28 sps:$4 sm:$0xff]   ;;  %v7900_v18 = vld [vmem:[%s10640_s9 + $0xd30] ss:$28 sps:$4 sm:$0xff]  }
 0x4e1   :  { %7963 = vtanh.f32 %v6237_v19  ;;  %7082 = vmatprep.subr.bf16.mxu0 %v7858_v15  ;;  %v7907_v12 = vld [vmem:[%s10640_s9 + $0xcfc] ss:$28 sps:$4 sm:$0xff]   ;;  %v7912_v19 = vld [vmem:[%s10640_s9 + $0xcc4] ss:$28 sps:$4 sm:$0xff]  }
 0x4e2   :  { %v7908_v15 = vld [vmem:[%s10640_s9 + $0x980] ss:$28 sps:$4 sm:$0xff]   ;;  %v7905_v16 = vld [vmem:[%s10640_s9 + $0xcf8] ss:$28 sps:$4 sm:$0xff]   ;;  %v7914_v23 = vld [vmem:[%s10640_s9 + $0x788] ss:$28 sps:$4 sm:$0xff]  }
 0x4e3   :  { %6040 = vmatpush1.bf16.msra.mxu1 %v7855_v20  ;;  %v7909_v17 = vld [vmem:[%s10640_s9 + $0x7c0] ss:$28 sps:$4 sm:$0xff]   ;;  %v7913_v20 = vld [vmem:[%s10640_s9 + $0x948] ss:$28 sps:$4 sm:$0xff]  }
 0x4e4   :  { %7083 = vmatpush3.bf16.msra.mxu0 %v7859_v52  ;;  %6041 = vmatprep.subr.bf16.mxu1 %v7862_v24  ;;  %v7910_v21 = vld [vmem:[%s10640_s9 + $0xcc0] ss:$28 sps:$4 sm:$0xff]   ;;  %v7917_v52 = vld [vmem:[%s10640_s9 + $0xc8c] ss:$28 sps:$4 sm:$0xff]  }
 0x4e5   :  { %7084 = vmatprep.subr.bf16.mxu0 %v7863_v25  ;;  %v7918_v24 = vld [vmem:[%s10640_s9 + $0x910] ss:$28 sps:$4 sm:$0xff]   ;;  %v7915_v25 = vld [vmem:[%s10640_s9 + $0xc88] ss:$28 sps:$4 sm:$0xff]  }
 0x4e7   :  { %6042 = vmatpush1.bf16.msra.mxu1 %v7860_v26  ;;  %v7919_v26 = vld [vmem:[%s10640_s9 + $0x750] ss:$28 sps:$4 sm:$0xff]  }
 0x4e8   :  { %7085 = vmatpush3.bf16.msra.mxu0 %v7864_v6  ;;  %6043 = vmatprep.subr.bf16.mxu1 %v7867_v27  ;;  %v7922_v6 = vld [vmem:[%s10640_s9 + $0xc54] ss:$28 sps:$4 sm:$0xff]  }
 0x4e9   :  { %7086 = vmatprep.subr.bf16.mxu0 %v7868_v30  ;;  %v7923_v27 = vld [vmem:[%s10640_s9 + $0x8d8] ss:$28 sps:$4 sm:$0xff]   ;;  %v7920_v30 = vld [vmem:[%s10640_s9 + $0xc50] ss:$28 sps:$4 sm:$0xff]  }
 0x4eb   :  { %6044 = vmatpush1.bf16.msra.mxu1 %v7865_v31  ;;  %v7924_v31 = vld [vmem:[%s10640_s9 + $0x718] ss:$28 sps:$4 sm:$0xff]  }
 0x4ec   :  { %v7962_v40 = vpop.eup %7961  ;;  %7087 = vmatpush3.bf16.msra.mxu0 %v7869_v36  ;;  %6045 = vmatprep.subr.bf16.mxu1 %v7872_v32  ;;  %v7925_v36 = vld [vmem:[%s10640_s9 + $0x6e0] ss:$28 sps:$4 sm:$0xff]  }
 0x4ed   :  { %v6250_v43 = vmul.f32 0.5, %v7962_v40  ;;  %7088 = vmatprep.subr.bf16.mxu0 %v7873_v38  ;;  %v7926_v32 = vld [vmem:[%s10640_s9 + $0x520] ss:$28 sps:$4 sm:$0xff]   ;;  %v7927_v38 = vld [vmem:[%s10640_s9 + $0x6a8] ss:$28 sps:$4 sm:$0xff]  }
 0x4ee   :  { %v7964_v47 = vpop.eup %7963 }
 0x4ef   :  { %v6257_v49 = vadd.f32 0.5, %v6250_v43  ;;  %v6251_v51 = vmul.f32 0.5, %v7964_v47  ;;  %6046 = vmatpush1.bf16.msra.mxu1 %v7870_v35 }
 0x4f0   :  { %7089 = vmatpush3.bf16.msra.mxu0 %v7874_v41  ;;  %6047 = vmatprep.subr.bf16.mxu1 %v7877_v42  ;;  %v7928_v41 = vld [vmem:[%s10640_s9 + $0x4e8] ss:$28 sps:$4 sm:$0xff]  }
 0x4f1   :  { %6264 = vst [vmem:[%s10643_s11] sm:$0xff] %v6257_v49  ;;  %v6258_v56 = vadd.f32 0.5, %v6251_v51  ;;  %7090 = vmatprep.subr.bf16.mxu0 %v7878_v44  ;;  %v7929_v44 = vld [vmem:[%s10640_s9 + $0x670] ss:$28 sps:$4 sm:$0xff]  }
 0x4f3   :  { %6265 = vst [vmem:[%s10643_s11 + $0x8] sm:$0xff] %v6258_v56  ;;  %6048 = vmatpush1.bf16.msra.mxu1 %v7875_v53  ;;  %v7934_v56 = vld [vmem:[%s10640_s9 + $0x440] ss:$28 sps:$4 sm:$0xff]  }
 0x4f4   :  { %7091 = vmatpush3.bf16.msra.mxu0 %v7879_v54  ;;  %6049 = vmatprep.subr.bf16.mxu1 %v7882_v55  ;;  %v7932_v54 = vld [vmem:[%s10640_s9 + $0x478] ss:$28 sps:$4 sm:$0xff]   ;;  %v7933_v55 = vld [vmem:[%s10640_s9 + $0x600] ss:$28 sps:$4 sm:$0xff]  }
 0x4f5   :  { %7092 = vmatprep.subr.bf16.mxu0 %v7883_v57  ;;  %v7935_v57 = vld [vmem:[%s10640_s9 + $0x5c8] ss:$28 sps:$4 sm:$0xff]  }
 0x4f7   :  { %6050 = vmatpush1.bf16.msra.mxu1 %v7880_v58  ;;  %v7936_v58 = vld [vmem:[%s10640_s9 + $0x408] ss:$28 sps:$4 sm:$0xff]  }
 0x4f8   :  { %7093 = vmatpush3.bf16.msra.mxu0 %v7884_v59  ;;  %6051 = vmatprep.subr.bf16.mxu1 %v7887_v60  ;;  %v7937_v59 = vld [vmem:[%s10640_s9 + $0x590] ss:$28 sps:$4 sm:$0xff]  }
 0x4f9   :  { %7122 = vmatprep.subr.bf16.mxu0 %v7888_v61  ;;  %v7938_v60 = vld [vmem:[%s10640_s9 + $0x3d0] ss:$28 sps:$4 sm:$0xff]   ;;  %v7939_v61 = vld [vmem:[%s10640_s9 + $0x558] ss:$28 sps:$4 sm:$0xff]  }
 0x4fb   :  { %6109 = vmatmul.mubr.bf16.vlgmr.msra.gmra.mxu0 %v9349_v50  ;;  %6052 = vmatpush2.bf16.msra.mxu1 %v7885_v22  ;;  %v7898_v50 = vld [vmem:[%s10640_s9 + $0x9f0] ss:$28 sps:$4 sm:$0xff]   ;;  %v7940_v22 = vld [vmem:[%s10640_s9 + $0x398] ss:$28 sps:$4 sm:$0xff]  }
 0x4fc   :  { %7123 = vmatpush3.bf16.msra.mxu0 %v7889_v62  ;;  %6188 = vmatprep.mubr.bf16.mxu0 %v9562_v33  ;;  %v7899_v33 = vld [vmem:[%s10640_s9 + $0x830] ss:$28 sps:$4 sm:$0xff]   ;;  %v7941_v62 = vld [vmem:[%s10640_s9 + $0xde0] ss:$28 sps:$4 sm:$0xff]  }
 0x4fd   :  { %6053 = vmatprep.subr.bf16.mxu1 %v7892_v63  ;;  %7124 = vmatprep.subr.bf16.mxu0 %v7893_v3  ;;  %v7942_v63 = vld [vmem:[%s10640_s9 + $0xc20] ss:$28 sps:$4 sm:$0xff]   ;;  %v7943_v3 = vld [vmem:[%s10640_s9 + $0xda8] ss:$28 sps:$4 sm:$0xff]  }
 0x4ff   :  { %6054 = vmatpush2.bf16.msra.mxu1 %v7890_v4  ;;  %v7944_v4 = vld [vmem:[%s10640_s9 + $0xbe8] ss:$28 sps:$4 sm:$0xff]  }
 0x500   :  { %7125 = vmatpush3.bf16.msra.mxu0 %v7894_v7  ;;  %6055 = vmatprep.subr.bf16.mxu1 %v7897_v10  ;;  %v7945_v7 = vld [vmem:[%s10640_s9 + $0xd70] ss:$28 sps:$4 sm:$0xff]  }
 0x501   :  { %7126 = vmatprep.subr.bf16.mxu0 %v7898_v50  ;;  %v7946_v10 = vld [vmem:[%s10640_s9 + $0xbb0] ss:$28 sps:$4 sm:$0xff]   ;;  %v7949_v50 = vld [vmem:[%s10640_s9 + $0xd00] ss:$28 sps:$4 sm:$0xff]  }
 0x503   :  { %6056 = vmatpush2.bf16.msra.mxu1 %v7895_v28  ;;  %v7950_v28 = vld [vmem:[%s10640_s9 + $0xb40] ss:$28 sps:$4 sm:$0xff]  }
 0x504   :  { %7127 = vmatpush3.bf16.msra.mxu0 %v7899_v33  ;;  %6057 = vmatprep.subr.bf16.mxu1 %v7902_v48  ;;  %v7951_v33 = vld [vmem:[%s10640_s9 + $0xcc8] ss:$28 sps:$4 sm:$0xff]  }
 0x505   :  { %7128 = vmatprep.subr.bf16.mxu0 %v7903_v8  ;;  %v7952_v48 = vld [vmem:[%s10640_s9 + $0xb08] ss:$28 sps:$4 sm:$0xff]   ;;  %v7953_v8 = vld [vmem:[%s10640_s9 + $0xc90] ss:$28 sps:$4 sm:$0xff]  }
 0x507   :  { %6058 = vmatpush2.bf16.msra.mxu1 %v7900_v18  ;;  %v10586_v18 = vld [vmem:[%s10642_s10] sm:$0x7f] }
 0x508   :  { %7129 = vmatpush3.bf16.msra.mxu0 %v7904_v29  ;;  %6059 = vmatprep.subr.bf16.mxu1 %v7907_v12  ;;  %v3256_v29 = vrot.slane %v10586_v18, %v8528_v9  ;;  %v7954_v12 = vld [vmem:[%s10640_s9 + $0xad0] ss:$28 sps:$4 sm:$0xff]   ;;  %v7956_v9 = vld [vmem:[%s10640_s9 + $0xa98] ss:$28 sps:$4 sm:$0xff]  }
 0x509   :  { %7130 = vmatprep.subr.bf16.mxu0 %v7908_v15  ;;  %v7955_v15 = vld [vmem:[%s10640_s9 + $0xc58] ss:$28 sps:$4 sm:$0xff]  }
 0x50b   :  { %6060 = vmatpush2.bf16.msra.mxu1 %v7905_v16  ;;  %v3260_v16 = vrot.slane %v10586_v18, %v8534_v11 }
 0x50c   :  { %7131 = vmatpush3.bf16.msra.mxu0 %v7909_v17  ;;  %6061 = vmatprep.subr.bf16.mxu1 %v7912_v19  ;;  %v5783_v17 = vadd.f32 %v10288_v1, %v3256_v29 }
 0x50d   :  { %7132 = vmatprep.subr.bf16.mxu0 %v7913_v20  ;;  %v5785_v19 = vadd.f32 %v10301_v46, %v3260_v16 }
 0x50f   :  { %6062 = vmatpush2.bf16.msra.mxu1 %v7910_v21 }
 0x510   :  { %7133 = vmatpush3.bf16.msra.mxu0 %v7914_v23  ;;  %6063 = vmatprep.subr.bf16.mxu1 %v7917_v52 }
 0x511   :  { %7134 = vmatprep.subr.bf16.mxu0 %v7918_v24 }
 0x513   :  { %6064 = vmatpush2.bf16.msra.mxu1 %v7915_v25 }
 0x514   :  { %7135 = vmatpush3.bf16.msra.mxu0 %v7919_v26  ;;  %6065 = vmatprep.subr.bf16.mxu1 %v7922_v6 }
 0x515   :  { %7136 = vmatprep.subr.bf16.mxu0 %v7923_v27 }
 0x517   :  { %6066 = vmatpush2.bf16.msra.mxu1 %v7920_v30 }
 0x518   :  { %7137 = vmatpush3.bf16.msra.mxu0 %v7924_v31  ;;  %7100 = vmatprep.subr.bf16.mxu1 %v7925_v36 }
 0x51a   :  { %v10492_v35 = vpop.f32.mrf.mxu1  ;;  %v10494_v40 = vpop.f32.mrf.mxu0  ;;  %6068 = vmatmul.mubr.bf16.vlgmr.msra.gmra.mxu1 %v9679_v39 }
 0x51b   :  { %6189 = vmatmul.mubr.bf16.vlgmr.msra.gmra.mxu0 %v9567_v34  ;;  %7101 = vmatpush3.bf16.msra.mxu1 %v7926_v32  ;;  %v7930_v34 = vld [vmem:[%s10640_s9 + $0x4b0] ss:$28 sps:$4 sm:$0xff]   ;;  %v5824_v20 = vadd.f32 %v10492_v35, %v5783_v17 }
 0x51c   :  { %6148 = vmatprep.mubr.bf16.mxu1 %v9381_v13  ;;  %v10502_v42 = vpop.f32.mrf.mxu1  ;;  %v10504_v43 = vpop.f32.mrf.mxu0  ;;  %7102 = vmatprep.subr.bf16.mxu1 %v7927_v38  ;;  %v7931_v13 = vld [vmem:[%s10640_s9 + $0x638] ss:$28 sps:$4 sm:$0xff]  }
 0x51d   :  { %v5826_v21 = vadd.f32 %v10502_v42, %v5785_v19  ;;  %v5865_v23 = vadd.f32 %v10494_v40, %v5824_v20 }
 0x51e   :  { %v5827_v47 = vpop.f32.mrf.mxu1  ;;  %v5868_v49 = vpop.f32.mrf.mxu0 }
 0x51f   :  { %7103 = vmatpush3.bf16.msra.mxu1 %v7928_v41  ;;  %v5867_v11 = vadd.f32 %v10504_v43, %v5826_v21 }
 0x520   :  { %v5828_v51 = vpop.f32.mrf.mxu1  ;;  %v5869_v53 = vpop.f32.mrf.mxu0  ;;  %7104 = vmatprep.subr.bf16.mxu1 %v7929_v44 }
 0x523   :  { %7105 = vmatpush3.bf16.msra.mxu1 %v7930_v34 }
 0x524   :  { %7106 = vmatprep.subr.bf16.mxu1 %v7931_v13 }
 0x527   :  { %7107 = vmatpush3.bf16.msra.mxu1 %v7932_v54 }
 0x528   :  { %7108 = vmatprep.subr.bf16.mxu1 %v7933_v55 }
 0x52b   :  { %7109 = vmatpush3.bf16.msra.mxu1 %v7934_v56 }
 0x52c   :  { %7110 = vmatprep.subr.bf16.mxu1 %v7935_v57 }
 0x52f   :  { %7111 = vmatpush3.bf16.msra.mxu1 %v7936_v58 }
 0x530   :  { %7112 = vmatprep.subr.bf16.mxu1 %v7937_v59  ;;  %v3264_v59 = vrot.slane %v10586_v18, %v1085_v0 }
 0x533   :  { %7113 = vmatpush3.bf16.msra.mxu1 %v7938_v60  ;;  %v3268_v60 = vrot.slane %v10586_v18, %v1089_v5 }
 0x534   :  { %7114 = vmatprep.subr.bf16.mxu1 %v7939_v61 }
 0x537   :  { %7115 = vmatpush3.bf16.msra.mxu1 %v7940_v22 }
 0x538   :  { %7144 = vmatprep.subr.bf16.mxu1 %v7941_v62 }
 0x53a   :  { %6149 = vmatmul.mubr.bf16.vlgmr.msra.gmra.mxu1 %v9383_v14  ;;  %v7947_v14 = vld [vmem:[%s10640_s9 + $0xd38] ss:$28 sps:$4 sm:$0xff]  }
 0x53b   :  { %7145 = vmatpush3.bf16.msra.mxu1 %v7942_v63  ;;  %6228 = vmatprep.mubr.bf16.mxu1 %v9671_v37  ;;  %v7948_v37 = vld [vmem:[%s10640_s9 + $0xb78] ss:$28 sps:$4 sm:$0xff]  }
 0x53c   :  { %7146 = vmatprep.subr.bf16.mxu1 %v7943_v3 }
 0x53f   :  { %7147 = vmatpush3.bf16.msra.mxu1 %v7944_v4 }
 0x540   :  { %7148 = vmatprep.subr.bf16.mxu1 %v7945_v7 }
 0x543   :  { %7149 = vmatpush3.bf16.msra.mxu1 %v7946_v10 }
 0x544   :  { %7150 = vmatprep.subr.bf16.mxu1 %v7947_v14 }
 0x547   :  { %7151 = vmatpush3.bf16.msra.mxu1 %v7948_v37 }
 0x548   :  { %7152 = vmatprep.subr.bf16.mxu1 %v7949_v50 }
 0x54b   :  { %7153 = vmatpush3.bf16.msra.mxu1 %v7950_v28 }
 0x54c   :  { %7154 = vmatprep.subr.bf16.mxu1 %v7951_v33 }
 0x54f   :  { %7155 = vmatpush3.bf16.msra.mxu1 %v7952_v48 }
 0x550   :  { %7156 = vmatprep.subr.bf16.mxu1 %v7953_v8 }
 0x553   :  { %7157 = vmatpush3.bf16.msra.mxu1 %v7954_v12 }
 0x554   :  { %7158 = vmatprep.subr.bf16.mxu1 %v7955_v15 }
 0x557   :  { %7159 = vmatpush3.bf16.msra.mxu1 %v7956_v9 }
 0x55a   :  { %v5905_v52 = vpop.f32.mrf.mxu1  ;;  %6229 = vmatmul.mubr.bf16.vlgmr.msra.gmra.mxu1 %v9679_v39 }
 0x55b   :  { %v5906_v1 = vadd.f32 %v5905_v52, %v5865_v23  ;;  %v5946_v24 = vpop.f32.mrf.mxu0 }
 0x55c   :  { %v5907_v25 = vpop.f32.mrf.mxu1  ;;  %v5947_v61 = vadd.f32 %v5946_v24, %v3264_v59 }
 0x55d   :  { %v6238_v26 = vmul.f32 0.5, %v5906_v1  ;;  %v5908_v6 = vadd.f32 %v5907_v25, %v5867_v11  ;;  %v5948_v27 = vpop.f32.mrf.mxu0  ;;  %v3272_v11 = vrot.slane %v10586_v18, %v1093_v2 }
 0x55e   :  { %v5909_v30 = vpop.f32.mrf.mxu1  ;;  %v5949_v22 = vadd.f32 %v5948_v27, %v3268_v60 }
 0x55f   :  { %7965 = vtanh.f32 %v6238_v26  ;;  %v6239_v46 = vmul.f32 0.5, %v5908_v6  ;;  %v5950_v31 = vpop.f32.mrf.mxu0 }
 0x560   :  { %v5910_v36 = vpop.f32.mrf.mxu1 }
 0x561   :  { %7967 = vtanh.f32 %v6239_v46  ;;  %v5951_v32 = vpop.f32.mrf.mxu0 }
 0x56c   :  { %v7966_v38 = vpop.eup %7965 }
 0x56d   :  { %v6252_v35 = vmul.f32 0.5, %v7966_v38 }
 0x56e   :  { %v7968_v40 = vpop.eup %7967 }
 0x56f   :  { %v6259_v41 = vadd.f32 0.5, %v6252_v35  ;;  %v6253_v39 = vmul.f32 0.5, %v7968_v40 }
 0x571   :  { %6266 = vst [vmem:[%s10643_s11 + $0x10] sm:$0xff] %v6259_v41  ;;  %v6260_v42 = vadd.f32 0.5, %v6253_v39 }
 0x573   :  { %6267 = vst [vmem:[%s10643_s11 + $0x18] sm:$0xff] %v6260_v42 }
 0x59a   :  { %v5987_v43 = vpop.f32.mrf.mxu1 }
 0x59b   :  { %v6028_v44 = vpop.f32.mrf.mxu0  ;;  %v5988_v62 = vadd.f32 %v5987_v43, %v5947_v61 }
 0x59c   :  { %v5989_v47 = vpop.f32.mrf.mxu1 }
 0x59d   :  { %v6030_v49 = vpop.f32.mrf.mxu0  ;;  %v5990_v63 = vadd.f32 %v5989_v47, %v5949_v22  ;;  %v6029_v3 = vadd.f32 %v6028_v44, %v5988_v62 }
 0x59e   :  { %v5991_v34 = vpop.f32.mrf.mxu1 }
 0x59f   :  { %v6032_v51 = vpop.f32.mrf.mxu0  ;;  %v6031_v7 = vadd.f32 %v6030_v49, %v5990_v63 }
 0x5a0   :  { %v5992_v53 = vpop.f32.mrf.mxu1 }
 0x5a1   :  { %v6033_v13 = vpop.f32.mrf.mxu0 }
 0x5bb   :  { %v7094_v54 = vpop.f32.mrf.mxu0 }
 0x5bd   :  { %v7095_v55 = vpop.f32.mrf.mxu0 }
 0x5be   :  { %v7096_v56 = vadd.f32 %v7095_v55, %v7094_v54 }
 0x5bf   :  { %v7097_v57 = vpop.f32.mrf.mxu0 }
 0x5c0   :  { %v6111_v24 = vadd.f32 %v7096_v56, %v3272_v11 }
 0x5c1   :  { %v7098_v58 = vpop.f32.mrf.mxu0 }
 0x5da   :  { %v6069_v4 = vpop.f32.mrf.mxu1 }
 0x5db   :  { %v6070_v10 = vadd.f32 %v6069_v4, %v6029_v3  ;;  %v7138_v14 = vpop.f32.mrf.mxu0 }
 0x5dc   :  { %v6071_v37 = vpop.f32.mrf.mxu1 }
 0x5dd   :  { %v6240_v50 = vmul.f32 0.5, %v6070_v10  ;;  %v6072_v28 = vadd.f32 %v6071_v37, %v6031_v7  ;;  %v7139_v33 = vpop.f32.mrf.mxu0 }
 0x5de   :  { %v6073_v48 = vpop.f32.mrf.mxu1  ;;  %v7140_v6 = vadd.f32 %v7139_v33, %v7138_v14 }
 0x5df   :  { %7969 = vtanh.f32 %v6240_v50  ;;  %v6241_v0 = vmul.f32 0.5, %v6072_v28  ;;  %v7141_v8 = vpop.f32.mrf.mxu0 }
 0x5e0   :  { %v6074_v29 = vpop.f32.mrf.mxu1 }
 0x5e1   :  { %7971 = vtanh.f32 %v6241_v0  ;;  %v7142_v5 = vpop.f32.mrf.mxu0 }
 0x5ec   :  { %v7970_v12 = vpop.eup %7969 }
 0x5ed   :  { %v6254_v15 = vmul.f32 0.5, %v7970_v12 }
 0x5ee   :  { %v7972_v16 = vpop.eup %7971 }
 0x5ef   :  { %v6261_v17 = vadd.f32 0.5, %v6254_v15  ;;  %v6255_v9 = vmul.f32 0.5, %v7972_v16 }
 0x5f1   :  { %6268 = vst [vmem:[%s10643_s11 + $0x20] sm:$0xff] %v6261_v17  ;;  %v6262_v19 = vadd.f32 0.5, %v6255_v9 }
 0x5f3   :  { %6269 = vst [vmem:[%s10643_s11 + $0x28] sm:$0xff] %v6262_v19 }
 0x5fa   :  { %v7116_v20 = vpop.f32.mrf.mxu1 }
 0x5fc   :  { %v7117_v21 = vpop.f32.mrf.mxu1 }
 0x5fd   :  { %v7118_v1 = vadd.f32 %v7117_v21, %v7116_v20 }
 0x5fe   :  { %v7119_v23 = vpop.f32.mrf.mxu1 }
 0x5ff   :  { %v6151_v25 = vadd.f32 %v7118_v1, %v6111_v24 }
 0x600   :  { %v7120_v52 = vpop.f32.mrf.mxu1 }
 0x601   :  { %v6191_v30 = vadd.f32 %v7140_v6, %v6151_v25 }
 0x61a   :  { %v7160_v26 = vpop.f32.mrf.mxu1 }
 0x61c   :  { %v7161_v27 = vpop.f32.mrf.mxu1 }
 0x61d   :  { %v7162_v46 = vadd.f32 %v7161_v27, %v7160_v26 }
 0x61e   :  { %v7163_v31 = vpop.f32.mrf.mxu1 }
 0x61f   :  { %v6231_v36 = vadd.f32 %v7162_v46, %v6191_v30 }
 0x620   :  { %v7164_v32 = vpop.f32.mrf.mxu1 }
 0x621   :  { %v6242_v38 = vmul.f32 0.5, %v6231_v36 }
 0x623   :  { %7973 = vtanh.f32 %v6242_v38 }
 0x630   :  { %v7974_v35 = vpop.eup %7973 }
 0x631   :  { %v6256_v40 = vmul.f32 0.5, %v7974_v35 }
 0x633   :  { %v6263_v41 = vadd.f32 0.5, %v6256_v40 }
 0x635   :  { %6271 = vst.msk [vmem:[%s10643_s11 + $0x30] sm:$0xff] %vm6270_vm1, %v6263_v41 }

</bundles_post_ra>
